<compile_context>
chip_gen: v7x
topology: tpu7x:2x2x1
jax: 0.10.0
libtpu: 0.0.40
codegen_flags: <defaults>
</compile_context>

<pallas_src>
import math

import jax
import jax.numpy as jnp
from jax.experimental import pallas as pl
from jax.experimental.pallas import tpu as pltpu


# ------------------------------ small helpers -------------------------------

def _round_up(x, m):
    return (x + m - 1) // m * m


def _row_tile(total_rows, cap=512):
    """Largest multiple-of-8 divisor of total_rows that is <= cap."""
    assert total_rows % 8 == 0, total_rows
    t = min(cap, total_rows)
    t -= t % 8
    while t > 8 and total_rows % t:
        t -= 8
    assert total_rows % t == 0
    return t


# ------------------------------ Pallas kernels ------------------------------

def _gemm_bias_relu_kernel(cols_ref, w_ref, b_ref, o_ref):
    """Row tile of the batch-flattened im2col GEMM + bias + ReLU + ai8x FP clamp.

    cols_ref: (TR, KKCp)   bf16 im2col rows (all samples flattened)
    w_ref   : (KKCp, Cop)  conv weight, tap-major / channel-minor, lane-padded
    b_ref   : (1, Cop)     f32 bias row (zeros when bias=False)
    o_ref   : (TR, Cop)    f32
    """
    y = jnp.dot(cols_ref[...], w_ref[...], preferred_element_type=jnp.float32)
    y = y + b_ref[...]
    y = jnp.maximum(y, 0.0)           # fused ReLU
    y = jnp.minimum(y, 1.0)           # ai8x floating-point saturation after ReLU
    o_ref[...] = y


def _linear_kernel(x_ref, w_ref, b_ref, o_ref):
    """Final Linear (wide): y = x @ W^T + b, lane-padded, no activation."""
    o_ref[...] = (jnp.dot(x_ref[...], w_ref[...],
                          preferred_element_type=jnp.float32) + b_ref[...])


# ------------------------------ layer wrappers ------------------------------

def _max_pool_2x2(x):   # NHWC, even H/W, kernel 2 stride 2 (matches nn.MaxPool2d)
    return jnp.maximum(jnp.maximum(x[:, 0::2, 0::2, :], x[:, 0::2, 1::2, :]),
                       jnp.maximum(x[:, 1::2, 0::2, :], x[:, 1::2, 1::2, :]))


def _avg_pool_2x2(x):   # NHWC, even H/W, kernel 2 stride 2 (matches nn.AvgPool2d)
    return 0.25 * (x[:, 0::2, 0::2, :] + x[:, 0::2, 1::2, :]
                   + x[:, 1::2, 0::2, :] + x[:, 1::2, 1::2, :])


def _prep_conv_weight(w_oikk, bias, cin_pad, matmul_dtype):
    """PyTorch (Cout,Cin,K,K) conv weight -> GEMM-ready (KKC_pad, Cout_pad).

    cin_pad is the (possibly lane-padded) channel count of the activations the
    layer will actually see; extra input channels are zero-filled so the
    carried padding contributes nothing to the contraction.
    """
    Cout, Cin, K, _ = w_oikk.shape
    assert Cin <= cin_pad
    Cout_pad = _round_up(Cout, 128)
    KKC = K * K * cin_pad
    KKC_pad = _round_up(KKC, 128)

    w = jnp.transpose(w_oikk, (2, 3, 1, 0))                        # (K,K,Cin,Cout)
    w = jnp.pad(w, ((0, 0), (0, 0), (0, cin_pad - Cin), (0, Cout_pad - Cout)))
    w = w.reshape(KKC, Cout_pad)
    w = jnp.pad(w, ((0, KKC_pad - KKC), (0, 0))).astype(matmul_dtype)

    if bias is None:
        b = jnp.zeros((1, Cout_pad), jnp.float32)
    else:
        b = jnp.pad(bias.astype(jnp.float32), (0, Cout_pad - Cout)).reshape(1, Cout_pad)
    return w, b, K


def conv2d_relu(x_nhwc, w2d, b2d, ksize, pad, *, matmul_dtype=jnp.bfloat16,
                row_cap=512):
    """FusedConv2dReLU forward (stride 1), batch-flattened row-tiled GEMM.

    x_nhwc : (N, H, W, Cp)   activations; channels may be lane-padded already.
    w2d    : (KKC_pad, Cout_pad)  prepped GEMM weight (see _prep_conv_weight).
    b2d    : (1, Cout_pad)        f32 bias row.
    Returns (N, Ho, Wo, Cout_pad) f32.
    """
    N, H, W, Cp = x_nhwc.shape
    KKC_pad, Cout_pad = w2d.shape
    K = ksize
    KKC = K * K * Cp
    assert KKC_pad == _round_up(KKC, 128)

    x_pad = jnp.pad(x_nhwc, ((0, 0), (pad, pad), (pad, pad), (0, 0)))
    Hp, Wp = H + 2 * pad, W + 2 * pad
    Ho, Wo = Hp - K + 1, Wp - K + 1
    P = Ho * Wo

    # im2col (XLA glue): (N*P, KKC), tap-major / channel-minor (matches w2d).
    cols = jnp.concatenate(
        [x_pad[:, kh:kh + Ho, kw:kw + Wo, :].reshape(N, P, Cp)
         for kh in range(K) for kw in range(K)],
        axis=-1).reshape(N * P, KKC)
    if KKC_pad != KKC:
        cols = jnp.pad(cols, ((0, 0), (0, KKC_pad - KKC)))
    cols = cols.astype(matmul_dtype)

    rows = N * P
    tr = _row_tile(rows, row_cap)
    out = pl.pallas_call(
        _gemm_bias_relu_kernel,
        out_shape=jax.ShapeDtypeStruct((rows, Cout_pad), jnp.float32),
        grid=(rows // tr,),
        in_specs=[
            pl.BlockSpec((tr, KKC_pad), lambda i: (i, 0)),
            pl.BlockSpec((KKC_pad, Cout_pad), lambda i: (0, 0)),
            pl.BlockSpec((1, Cout_pad), lambda i: (0, 0)),
        ],
        out_specs=pl.BlockSpec((tr, Cout_pad), lambda i: (i, 0)),
        compiler_params=pltpu.CompilerParams(dimension_semantics=("parallel",)),
    )(cols, w2d, b2d)
    return out.reshape(N, Ho, Wo, Cout_pad)


def linear(x, w2d, b2d, n_out, *, matmul_dtype=jnp.bfloat16, row_cap=256):
    """ai8x.Linear(wide=True): x: (N, Fin); prepped w2d: (Fin_pad, Fout_pad)."""
    N, Fin = x.shape
    Fin_pad, Fout_pad = w2d.shape
    R = _round_up(N, 8)

    xp = jnp.pad(x, ((0, R - N), (0, Fin_pad - Fin))).astype(matmul_dtype)

    tr = _row_tile(R, row_cap)
    out = pl.pallas_call(
        _linear_kernel,
        out_shape=jax.ShapeDtypeStruct((R, Fout_pad), jnp.float32),
        grid=(R // tr,),
        in_specs=[
            pl.BlockSpec((tr, Fin_pad), lambda i: (i, 0)),
            pl.BlockSpec((Fin_pad, Fout_pad), lambda i: (0, 0)),
            pl.BlockSpec((1, Fout_pad), lambda i: (0, 0)),
        ],
        out_specs=pl.BlockSpec((tr, Fout_pad), lambda i: (i, 0)),
        compiler_params=pltpu.CompilerParams(dimension_semantics=("parallel",)),
    )(xp, w2d, b2d)
    return out[:N, :n_out]


# --------------------------------- model ------------------------------------

class AlexNetPallas:
    """Pallas port of the ai8x AlexNet (MNIST) forward pass, FP mode."""

    def __init__(self, num_classes=10, num_channels=1, dimensions=(28, 28),
                 planes=60, pool=2, fc_inputs=12, bias=False,
                 matmul_dtype=jnp.bfloat16, key=jax.random.PRNGKey(0)):
        assert pool == 2, "only pool=2 supported"
        dim = dimensions[0]
        mid = 128 - planes - fc_inputs
        self.pad2 = 2 if dim == 28 else 1
        self.matmul_dtype = matmul_dtype
        self.num_classes = num_classes
        self.fc_inputs = fc_inputs
        ks = jax.random.split(key, 12)

        def kaiming(k, cout, cin, ksz):
            fan_out = cout * ksz * ksz            # kaiming_normal_(mode='fan_out', relu)
            return math.sqrt(2.0 / fan_out) * jax.random.normal(
                k, (cout, cin, ksz, ksz), jnp.float32)

        def conv_bias(k, cout, cin, ksz):
            if not bias:
                return None                       # reference default: bias=False
            bound = 1.0 / math.sqrt(cin * ksz * ksz)   # PyTorch Conv2d bias init
            return jax.random.uniform(k, (cout,), jnp.float32, -bound, bound)

        w1 = kaiming(ks[0], planes, num_channels, 3)   # conv1
        w2 = kaiming(ks[1], planes, planes, 3)         # conv2
        w3 = kaiming(ks[2], mid, planes, 3)            # conv3
        w4 = kaiming(ks[3], mid, mid, 3)               # conv4
        w5 = kaiming(ks[4], fc_inputs, mid, 3)         # conv5
        b1 = conv_bias(ks[7], planes, num_channels, 3)
        b2 = conv_bias(ks[8], planes, planes, 3)
        b3 = conv_bias(ks[9], mid, planes, 3)
        b4 = conv_bias(ks[10], mid, mid, 3)
        b5 = conv_bias(ks[11], fc_inputs, mid, 3)

        # GEMM-ready, lane-padded, bf16 weights (computed once here, not per call).
        carried = _round_up(planes, 128)   # every conv output carries 128-lane padding
        self.W1, self.B1, self.K1 = _prep_conv_weight(w1, b1, num_channels, matmul_dtype)
        self.W2, self.B2, self.K2 = _prep_conv_weight(w2, b2, carried, matmul_dtype)
        self.W3, self.B3, self.K3 = _prep_conv_weight(w3, b3, carried, matmul_dtype)
        self.W4, self.B4, self.K4 = _prep_conv_weight(w4, b4, carried, matmul_dtype)
        self.W5, self.B5, self.K5 = _prep_conv_weight(w5, b5, carried, matmul_dtype)

        # fc1 in_features sized from the *actual* activation shape (the
        # reference's scalar `dim` bookkeeping halves once too often at conv4,
        # which does not match the real tensor; we follow the tensors).
        s = dim // 2 + (2 if self.pad2 == 2 else 0)   # conv2: maxpool/2, pad 2
        s = s // 2                                     # conv3: maxpool/2
        s = s // 2                                     # conv5: avgpool/2
        fc_in = fc_inputs * s * s
        bound = 1.0 / math.sqrt(fc_in)                 # PyTorch Linear default init
        w_fc = jax.random.uniform(ks[5], (num_classes, fc_in),
                                  jnp.float32, -bound, bound)
        b_fc = jax.random.uniform(ks[6], (num_classes,),
                                  jnp.float32, -bound, bound)
        Fin_pad = _round_up(fc_in, 128)
        Fout_pad = _round_up(num_classes, 128)
        self.Wfc = jnp.pad(jnp.transpose(w_fc),
                           ((0, Fin_pad - fc_in),
                            (0, Fout_pad - num_classes))).astype(matmul_dtype)
        self.Bfc = jnp.pad(b_fc.astype(jnp.float32),
                           (0, Fout_pad - num_classes)).reshape(1, Fout_pad)

    def __call__(self, x_nchw):
        md = self.matmul_dtype
        x = jnp.transpose(x_nchw, (0, 2, 3, 1)).astype(jnp.float32)           # -> NHWC
        x = conv2d_relu(x, self.W1, self.B1, self.K1, pad=1, matmul_dtype=md)       # FusedConv2dReLU
        x = conv2d_relu(_max_pool_2x2(x), self.W2, self.B2, self.K2,                # FusedMaxPoolConv2dReLU
                        pad=self.pad2, matmul_dtype=md)
        x = conv2d_relu(_max_pool_2x2(x), self.W3, self.B3, self.K3,                # FusedMaxPoolConv2dReLU
                        pad=1, matmul_dtype=md)
        x = conv2d_relu(x, self.W4, self.B4, self.K4, pad=1, matmul_dtype=md)       # FusedConv2dReLU
        x = conv2d_relu(_avg_pool_2x2(x), self.W5, self.B5, self.K5,                # FusedAvgPoolConv2dReLU
                        pad=1, matmul_dtype=md)
        n = x.shape[0]
        x = x[..., :self.fc_inputs]                        # drop carried lane padding
        x = jnp.transpose(x, (0, 3, 1, 2)).reshape(n, -1)  # PyTorch x.view(N, -1) order
        # TODO(synk): ai8x quantization / output_shift and the wide-Linear
        # saturation bounds are hardware-simulation details not modeled here.
        return linear(x, self.Wfc, self.Bfc, self.num_classes, matmul_dtype=md)


if __name__ == "__main__":
    key = jax.random.PRNGKey(0)
    k_param, k_x = jax.random.split(key)
    model = AlexNetPallas(key=k_param)
    x = jax.random.uniform(k_x, (2, 1, 28, 28), jnp.float32, minval=-1.0, maxval=1.0)
    out = jax.jit(model.__call__)(x)
    out = jax.block_until_ready(out)
    assert out.shape == (2, 10) and out.dtype == jnp.float32
    assert bool(jnp.all(jnp.isfinite(out)))
    print("KERNEL_OK")
</pallas_src>

<mosaic_0001>
module attributes {stable_mosaic.version = 11 : i64} {
  func.func @_gemm_bias_relu_kernel(%arg0: i32, %arg1: memref<392x128xbf16, #tpu.memory_space<vmem>>, %arg2: memref<128x128xbf16, #tpu.memory_space<vmem>>, %arg3: memref<1x128xf32, #tpu.memory_space<vmem>>, %arg4: memref<392x128xf32, #tpu.memory_space<vmem>>) attributes {dimension_semantics = [#tpu.dimension_semantics<parallel>], iteration_bounds = array<i64: 4>, scalar_prefetch = 0 : i64, scratch_operands = 0 : i64, tpu.core_type = #tpu.core_type<tc>, window_params = [{transform_indices = @transform_0, window_bounds = array<i64: 392, 128>}, {pipeline_mode = #tpu.pipeline_mode<synchronous>, transform_indices = @transform_1, window_bounds = array<i64: 128, 128>}, {pipeline_mode = #tpu.pipeline_mode<synchronous>, transform_indices = @transform_2, window_bounds = array<i64: 1, 128>}, {transform_indices = @transform_3, window_bounds = array<i64: 392, 128>}]} {
    %c0 = arith.constant 0 : index
    %c0_0 = arith.constant 0 : index
    %0 = vector.load %arg1[%c0, %c0_0] : memref<392x128xbf16, #tpu.memory_space<vmem>>, vector<392x128xbf16>
    %c0_1 = arith.constant 0 : index
    %c0_2 = arith.constant 0 : index
    %1 = vector.load %arg2[%c0_1, %c0_2] : memref<128x128xbf16, #tpu.memory_space<vmem>>, vector<128x128xbf16>
    %cst = arith.constant dense<0.000000e+00> : vector<392x128xf32>
    %2 = tpu.matmul %0, %1, %cst {dimension_numbers = #tpu.dot_dimension_numbers<[1], [0], [0], [1], [0, 0, 1, 1], [], []>} : vector<392x128xbf16>, vector<128x128xbf16>, vector<392x128xf32> -> vector<392x128xf32>
    %c0_3 = arith.constant 0 : index
    %c0_4 = arith.constant 0 : index
    %3 = vector.load %arg3[%c0_3, %c0_4] : memref<1x128xf32, #tpu.memory_space<vmem>>, vector<1x128xf32>
    %4 = vector.broadcast %3 : vector<1x128xf32> to vector<392x128xf32>
    %5 = arith.addf %2, %4 : vector<392x128xf32>
    %cst_5 = arith.constant 0.000000e+00 : f32
    %6 = vector.broadcast %cst_5 : f32 to vector<392x128xf32>
    %7 = arith.maximumf %5, %6 : vector<392x128xf32>
    %cst_6 = arith.constant 1.000000e+00 : f32
    %8 = vector.broadcast %cst_6 : f32 to vector<392x128xf32>
    %9 = arith.minimumf %7, %8 : vector<392x128xf32>
    %c0_7 = arith.constant 0 : index
    %c0_8 = arith.constant 0 : index
    %10 = vector.load %arg4[%c0_7, %c0_8] : memref<392x128xf32, #tpu.memory_space<vmem>>, vector<392x128xf32>
    tpu.vector_store %arg4[%c0_7, %c0_8], %9 {strides = array<i32>} : memref<392x128xf32, #tpu.memory_space<vmem>>, vector<392x128xf32>,
    return
  }
  func.func @transform_0(%arg0: i32) -> (i32, i32) {
    %c0_i32 = arith.constant 0 : i32
    %c0_i32_0 = arith.constant 0 : i32
    return %arg0, %c0_i32 : i32, i32
  }
  func.func @transform_1(%arg0: i32) -> (i32, i32) {
    %c0_i32 = arith.constant 0 : i32
    %c0_i32_0 = arith.constant 0 : i32
    %c0_i32_1 = arith.constant 0 : i32
    return %c0_i32, %c0_i32_0 : i32, i32
  }
  func.func @transform_2(%arg0: i32) -> (i32, i32) {
    %c0_i32 = arith.constant 0 : i32
    %c0_i32_0 = arith.constant 0 : i32
    %c0_i32_1 = arith.constant 0 : i32
    return %c0_i32, %c0_i32_0 : i32, i32
  }
  func.func @transform_3(%arg0: i32) -> (i32, i32) {
    %c0_i32 = arith.constant 0 : i32
    %c0_i32_0 = arith.constant 0 : i32
    return %arg0, %c0_i32 : i32, i32
  }
}

module attributes {stable_mosaic.version = 11 : i64} {
  func.func @_gemm_bias_relu_kernel(%arg0: i32, %arg1: memref<512x1152xbf16, #tpu.memory_space<vmem>>, %arg2: memref<1152x128xbf16, #tpu.memory_space<vmem>>, %arg3: memref<1x128xf32, #tpu.memory_space<vmem>>, %arg4: memref<512x128xf32, #tpu.memory_space<vmem>>) attributes {dimension_semantics = [#tpu.dimension_semantics<parallel>], iteration_bounds = array<i64: 1>, scalar_prefetch = 0 : i64, scratch_operands = 0 : i64, tpu.core_type = #tpu.core_type<tc>, window_params = [{transform_indices = @transform_0, window_bounds = array<i64: 512, 1152>}, {pipeline_mode = #tpu.pipeline_mode<synchronous>, transform_indices = @transform_1, window_bounds = array<i64: 1152, 128>}, {pipeline_mode = #tpu.pipeline_mode<synchronous>, transform_indices = @transform_2, window_bounds = array<i64: 1, 128>}, {transform_indices = @transform_3, window_bounds = array<i64: 512, 128>}]} {
    %c0 = arith.constant 0 : index
    %c0_0 = arith.constant 0 : index
    %0 = vector.load %arg1[%c0, %c0_0] : memref<512x1152xbf16, #tpu.memory_space<vmem>>, vector<512x1152xbf16>
    %c0_1 = arith.constant 0 : index
    %c0_2 = arith.constant 0 : index
    %1 = vector.load %arg2[%c0_1, %c0_2] : memref<1152x128xbf16, #tpu.memory_space<vmem>>, vector<1152x128xbf16>
    %cst = arith.constant dense<0.000000e+00> : vector<512x128xf32>
    %2 = tpu.matmul %0, %1, %cst {dimension_numbers = #tpu.dot_dimension_numbers<[1], [0], [0], [1], [0, 0, 1, 1], [], []>} : vector<512x1152xbf16>, vector<1152x128xbf16>, vector<512x128xf32> -> vector<512x128xf32>
    %c0_3 = arith.constant 0 : index
    %c0_4 = arith.constant 0 : index
    %3 = vector.load %arg3[%c0_3, %c0_4] : memref<1x128xf32, #tpu.memory_space<vmem>>, vector<1x128xf32>
    %4 = vector.broadcast %3 : vector<1x128xf32> to vector<512x128xf32>
    %5 = arith.addf %2, %4 : vector<512x128xf32>
    %cst_5 = arith.constant 0.000000e+00 : f32
    %6 = vector.broadcast %cst_5 : f32 to vector<512x128xf32>
    %7 = arith.maximumf %5, %6 : vector<512x128xf32>
    %cst_6 = arith.constant 1.000000e+00 : f32
    %8 = vector.broadcast %cst_6 : f32 to vector<512x128xf32>
    %9 = arith.minimumf %7, %8 : vector<512x128xf32>
    %c0_7 = arith.constant 0 : index
    %c0_8 = arith.constant 0 : index
    %10 = vector.load %arg4[%c0_7, %c0_8] : memref<512x128xf32, #tpu.memory_space<vmem>>, vector<512x128xf32>
    tpu.vector_store %arg4[%c0_7, %c0_8], %9 {strides = array<i32>} : memref<512x128xf32, #tpu.memory_space<vmem>>, vector<512x128xf32>,
    return
  }
  func.func @transform_0(%arg0: i32) -> (i32, i32) {
    %c0_i32 = arith.constant 0 : i32
    %c0_i32_0 = arith.constant 0 : i32
    return %arg0, %c0_i32 : i32, i32
  }
  func.func @transform_1(%arg0: i32) -> (i32, i32) {
    %c0_i32 = arith.constant 0 : i32
    %c0_i32_0 = arith.constant 0 : i32
    %c0_i32_1 = arith.constant 0 : i32
    return %c0_i32, %c0_i32_0 : i32, i32
  }
  func.func @transform_2(%arg0: i32) -> (i32, i32) {
    %c0_i32 = arith.constant 0 : i32
    %c0_i32_0 = arith.constant 0 : i32
    %c0_i32_1 = arith.constant 0 : i32
    return %c0_i32, %c0_i32_0 : i32, i32
  }
  func.func @transform_3(%arg0: i32) -> (i32, i32) {
    %c0_i32 = arith.constant 0 : i32
    %c0_i32_0 = arith.constant 0 : i32
    return %arg0, %c0_i32 : i32, i32
  }
}

module attributes {stable_mosaic.version = 11 : i64} {
  func.func @_gemm_bias_relu_kernel(%arg0: i32, %arg1: memref<128x1152xbf16, #tpu.memory_space<vmem>>, %arg2: memref<1152x128xbf16, #tpu.memory_space<vmem>>, %arg3: memref<1x128xf32, #tpu.memory_space<vmem>>, %arg4: memref<128x128xf32, #tpu.memory_space<vmem>>) attributes {dimension_semantics = [#tpu.dimension_semantics<parallel>], iteration_bounds = array<i64: 1>, scalar_prefetch = 0 : i64, scratch_operands = 0 : i64, tpu.core_type = #tpu.core_type<tc>, window_params = [{transform_indices = @transform_0, window_bounds = array<i64: 128, 1152>}, {pipeline_mode = #tpu.pipeline_mode<synchronous>, transform_indices = @transform_1, window_bounds = array<i64: 1152, 128>}, {pipeline_mode = #tpu.pipeline_mode<synchronous>, transform_indices = @transform_2, window_bounds = array<i64: 1, 128>}, {transform_indices = @transform_3, window_bounds = array<i64: 128, 128>}]} {
    %c0 = arith.constant 0 : index
    %c0_0 = arith.constant 0 : index
    %0 = vector.load %arg1[%c0, %c0_0] : memref<128x1152xbf16, #tpu.memory_space<vmem>>, vector<128x1152xbf16>
    %c0_1 = arith.constant 0 : index
    %c0_2 = arith.constant 0 : index
    %1 = vector.load %arg2[%c0_1, %c0_2] : memref<1152x128xbf16, #tpu.memory_space<vmem>>, vector<1152x128xbf16>
    %cst = arith.constant dense<0.000000e+00> : vector<128x128xf32>
    %2 = tpu.matmul %0, %1, %cst {dimension_numbers = #tpu.dot_dimension_numbers<[1], [0], [0], [1], [0, 0, 1, 1], [], []>} : vector<128x1152xbf16>, vector<1152x128xbf16>, vector<128x128xf32> -> vector<128x128xf32>
    %c0_3 = arith.constant 0 : index
    %c0_4 = arith.constant 0 : index
    %3 = vector.load %arg3[%c0_3, %c0_4] : memref<1x128xf32, #tpu.memory_space<vmem>>, vector<1x128xf32>
    %4 = vector.broadcast %3 : vector<1x128xf32> to vector<128x128xf32>
    %5 = arith.addf %2, %4 : vector<128x128xf32>
    %cst_5 = arith.constant 0.000000e+00 : f32
    %6 = vector.broadcast %cst_5 : f32 to vector<128x128xf32>
    %7 = arith.maximumf %5, %6 : vector<128x128xf32>
    %cst_6 = arith.constant 1.000000e+00 : f32
    %8 = vector.broadcast %cst_6 : f32 to vector<128x128xf32>
    %9 = arith.minimumf %7, %8 : vector<128x128xf32>
    %c0_7 = arith.constant 0 : index
    %c0_8 = arith.constant 0 : index
    %10 = vector.load %arg4[%c0_7, %c0_8] : memref<128x128xf32, #tpu.memory_space<vmem>>, vector<128x128xf32>
    tpu.vector_store %arg4[%c0_7, %c0_8], %9 {strides = array<i32>} : memref<128x128xf32, #tpu.memory_space<vmem>>, vector<128x128xf32>,
    return
  }
  func.func @transform_0(%arg0: i32) -> (i32, i32) {
    %c0_i32 = arith.constant 0 : i32
    %c0_i32_0 = arith.constant 0 : i32
    return %arg0, %c0_i32 : i32, i32
  }
  func.func @transform_1(%arg0: i32) -> (i32, i32) {
    %c0_i32 = arith.constant 0 : i32
    %c0_i32_0 = arith.constant 0 : i32
    %c0_i32_1 = arith.constant 0 : i32
    return %c0_i32, %c0_i32_0 : i32, i32
  }
  func.func @transform_2(%arg0: i32) -> (i32, i32) {
    %c0_i32 = arith.constant 0 : i32
    %c0_i32_0 = arith.constant 0 : i32
    %c0_i32_1 = arith.constant 0 : i32
    return %c0_i32, %c0_i32_0 : i32, i32
  }
  func.func @transform_3(%arg0: i32) -> (i32, i32) {
    %c0_i32 = arith.constant 0 : i32
    %c0_i32_0 = arith.constant 0 : i32
    return %arg0, %c0_i32 : i32, i32
  }
}

module attributes {stable_mosaic.version = 11 : i64} {
  func.func @_gemm_bias_relu_kernel(%arg0: i32, %arg1: memref<32x1152xbf16, #tpu.memory_space<vmem>>, %arg2: memref<1152x128xbf16, #tpu.memory_space<vmem>>, %arg3: memref<1x128xf32, #tpu.memory_space<vmem>>, %arg4: memref<32x128xf32, #tpu.memory_space<vmem>>) attributes {dimension_semantics = [#tpu.dimension_semantics<parallel>], iteration_bounds = array<i64: 1>, scalar_prefetch = 0 : i64, scratch_operands = 0 : i64, tpu.core_type = #tpu.core_type<tc>, window_params = [{transform_indices = @transform_0, window_bounds = array<i64: 32, 1152>}, {pipeline_mode = #tpu.pipeline_mode<synchronous>, transform_indices = @transform_1, window_bounds = array<i64: 1152, 128>}, {pipeline_mode = #tpu.pipeline_mode<synchronous>, transform_indices = @transform_2, window_bounds = array<i64: 1, 128>}, {transform_indices = @transform_3, window_bounds = array<i64: 32, 128>}]} {
    %c0 = arith.constant 0 : index
    %c0_0 = arith.constant 0 : index
    %0 = vector.load %arg1[%c0, %c0_0] : memref<32x1152xbf16, #tpu.memory_space<vmem>>, vector<32x1152xbf16>
    %c0_1 = arith.constant 0 : index
    %c0_2 = arith.constant 0 : index
    %1 = vector.load %arg2[%c0_1, %c0_2] : memref<1152x128xbf16, #tpu.memory_space<vmem>>, vector<1152x128xbf16>
    %cst = arith.constant dense<0.000000e+00> : vector<32x128xf32>
    %2 = tpu.matmul %0, %1, %cst {dimension_numbers = #tpu.dot_dimension_numbers<[1], [0], [0], [1], [0, 0, 1, 1], [], []>} : vector<32x1152xbf16>, vector<1152x128xbf16>, vector<32x128xf32> -> vector<32x128xf32>
    %c0_3 = arith.constant 0 : index
    %c0_4 = arith.constant 0 : index
    %3 = vector.load %arg3[%c0_3, %c0_4] : memref<1x128xf32, #tpu.memory_space<vmem>>, vector<1x128xf32>
    %4 = vector.broadcast %3 : vector<1x128xf32> to vector<32x128xf32>
    %5 = arith.addf %2, %4 : vector<32x128xf32>
    %cst_5 = arith.constant 0.000000e+00 : f32
    %6 = vector.broadcast %cst_5 : f32 to vector<32x128xf32>
    %7 = arith.maximumf %5, %6 : vector<32x128xf32>
    %cst_6 = arith.constant 1.000000e+00 : f32
    %8 = vector.broadcast %cst_6 : f32 to vector<32x128xf32>
    %9 = arith.minimumf %7, %8 : vector<32x128xf32>
    %c0_7 = arith.constant 0 : index
    %c0_8 = arith.constant 0 : index
    %10 = vector.load %arg4[%c0_7, %c0_8] : memref<32x128xf32, #tpu.memory_space<vmem>>, vector<32x128xf32>
    tpu.vector_store %arg4[%c0_7, %c0_8], %9 {strides = array<i32>} : memref<32x128xf32, #tpu.memory_space<vmem>>, vector<32x128xf32>,
    return
  }
  func.func @transform_0(%arg0: i32) -> (i32, i32) {
    %c0_i32 = arith.constant 0 : i32
    %c0_i32_0 = arith.constant 0 : i32
    return %arg0, %c0_i32 : i32, i32
  }
  func.func @transform_1(%arg0: i32) -> (i32, i32) {
    %c0_i32 = arith.constant 0 : i32
    %c0_i32_0 = arith.constant 0 : i32
    %c0_i32_1 = arith.constant 0 : i32
    return %c0_i32, %c0_i32_0 : i32, i32
  }
  func.func @transform_2(%arg0: i32) -> (i32, i32) {
    %c0_i32 = arith.constant 0 : i32
    %c0_i32_0 = arith.constant 0 : i32
    %c0_i32_1 = arith.constant 0 : i32
    return %c0_i32, %c0_i32_0 : i32, i32
  }
  func.func @transform_3(%arg0: i32) -> (i32, i32) {
    %c0_i32 = arith.constant 0 : i32
    %c0_i32_0 = arith.constant 0 : i32
    return %arg0, %c0_i32 : i32, i32
  }
}

module attributes {stable_mosaic.version = 11 : i64} {
  func.func @_linear_kernel(%arg0: i32, %arg1: memref<8x256xbf16, #tpu.memory_space<vmem>>, %arg2: memref<256x128xbf16, #tpu.memory_space<vmem>>, %arg3: memref<1x128xf32, #tpu.memory_space<vmem>>, %arg4: memref<8x128xf32, #tpu.memory_space<vmem>>) attributes {dimension_semantics = [#tpu.dimension_semantics<parallel>], iteration_bounds = array<i64: 1>, scalar_prefetch = 0 : i64, scratch_operands = 0 : i64, tpu.core_type = #tpu.core_type<tc>, window_params = [{transform_indices = @transform_0, window_bounds = array<i64: 8, 256>}, {pipeline_mode = #tpu.pipeline_mode<synchronous>, transform_indices = @transform_1, window_bounds = array<i64: 256, 128>}, {pipeline_mode = #tpu.pipeline_mode<synchronous>, transform_indices = @transform_2, window_bounds = array<i64: 1, 128>}, {transform_indices = @transform_3, window_bounds = array<i64: 8, 128>}]} {
    %c0 = arith.constant 0 : index
    %c0_0 = arith.constant 0 : index
    %0 = vector.load %arg1[%c0, %c0_0] : memref<8x256xbf16, #tpu.memory_space<vmem>>, vector<8x256xbf16>
    %c0_1 = arith.constant 0 : index
    %c0_2 = arith.constant 0 : index
    %1 = vector.load %arg2[%c0_1, %c0_2] : memref<256x128xbf16, #tpu.memory_space<vmem>>, vector<256x128xbf16>
    %cst = arith.constant dense<0.000000e+00> : vector<8x128xf32>
    %2 = tpu.matmul %0, %1, %cst {dimension_numbers = #tpu.dot_dimension_numbers<[1], [0], [0], [1], [0, 0, 1, 1], [], []>} : vector<8x256xbf16>, vector<256x128xbf16>, vector<8x128xf32> -> vector<8x128xf32>
    %c0_3 = arith.constant 0 : index
    %c0_4 = arith.constant 0 : index
    %3 = vector.load %arg3[%c0_3, %c0_4] : memref<1x128xf32, #tpu.memory_space<vmem>>, vector<1x128xf32>
    %4 = vector.broadcast %3 : vector<1x128xf32> to vector<8x128xf32>
    %5 = arith.addf %2, %4 : vector<8x128xf32>
    %c0_5 = arith.constant 0 : index
    %c0_6 = arith.constant 0 : index
    %6 = vector.load %arg4[%c0_5, %c0_6] : memref<8x128xf32, #tpu.memory_space<vmem>>, vector<8x128xf32>
    tpu.vector_store %arg4[%c0_5, %c0_6], %5 {strides = array<i32>} : memref<8x128xf32, #tpu.memory_space<vmem>>, vector<8x128xf32>,
    return
  }
  func.func @transform_0(%arg0: i32) -> (i32, i32) {
    %c0_i32 = arith.constant 0 : i32
    %c0_i32_0 = arith.constant 0 : i32
    return %arg0, %c0_i32 : i32, i32
  }
  func.func @transform_1(%arg0: i32) -> (i32, i32) {
    %c0_i32 = arith.constant 0 : i32
    %c0_i32_0 = arith.constant 0 : i32
    %c0_i32_1 = arith.constant 0 : i32
    return %c0_i32, %c0_i32_0 : i32, i32
  }
  func.func @transform_2(%arg0: i32) -> (i32, i32) {
    %c0_i32 = arith.constant 0 : i32
    %c0_i32_0 = arith.constant 0 : i32
    %c0_i32_1 = arith.constant 0 : i32
    return %c0_i32, %c0_i32_0 : i32, i32
  }
  func.func @transform_3(%arg0: i32) -> (i32, i32) {
    %c0_i32 = arith.constant 0 : i32
    %c0_i32_0 = arith.constant 0 : i32
    return %arg0, %c0_i32 : i32, i32
  }
}

</mosaic_0001>

<bundles_post_ra>
// kernel: a_call__.6
= control target key start
LH: loop header
LB: loop body
LE: loop exit
PB: predicated region body
PF: predicated region fallthrough
CT: control target
= control target key end

     0   :  { %s1159_s12 = smov 0   ;;  %s1402_s0 = inlined_call_operand.vmem [shape: bf16[1568,128], index: 0, kind: input, shape index: {}]   ;;  %s1403_s1 = inlined_call_operand.vmem [shape: bf16[128,128], index: 1, kind: input, shape index: {}]   ;;  %s1404_s2 = inlined_call_operand.vmem [shape: f32[1,128], index: 2, kind: input, shape index: {}]   ;;  %s1405_s3 = inlined_call_operand.vmem [shape: f32[1568,128], index: 3, kind: output, shape index: {}]  }
   0x1 LB: > { %s878_s13 = sadd.s32 4294967295, %s1135_s12   ;;  %p882_p0 = scmp.ge.s32.totalorder %s1135_s12, 1  ;;  %s1135_s12 = sphi %s1159_s12, %s13_s12  }
   0x2   : > { %p138_p1 = scmp.lt.s32.totalorder %s1135_s12, 5 }
   0x4   : > { %p139_p2 = pnand %p882_p0, %p138_p1 }
   0x5   : > { %v1096_v0 = vld [vmem:[%s1403_s1] sm:$0xff] (!%p139_p2)   ;;  %v1137_v1 = vmov (!%p139_p2), 0.0   ;;  %v1097_v2 = vld [vmem:[%s1403_s1 + $0x8] sm:$0xff] (!%p139_p2)   ;;  %s162_s18 = smul.u32 (!%p139_p2), 49, %s878_s13  ;;  %vm1138_vm0 = vmmov (!%p139_p2), 0   ;;  %v1098_v3 = vld [vmem:[%s1403_s1 + $0x10] sm:$0xff] (!%p139_p2)  }
   0x6   : > { %142 = sbr.rel (%p139_p2) target bundleno = 355 (0x163), region = 32  ;;  %954 = vmatprep.subr.bf16.mxu0 (!%p139_p2), %v1137_v1  ;;  %1070 = vmatprep.subr.bf16.mxu1 (!%p139_p2), %v1137_v1  ;;  %v1099_v4 = vld [vmem:[%s1403_s1 + $0x18] sm:$0xff] (!%p139_p2)   ;;  %v1100_v5 = vld [vmem:[%s1403_s1 + $0x20] sm:$0xff] (!%p139_p2)   ;;  %v1101_v6 = vld [vmem:[%s1403_s1 + $0x28] sm:$0xff] (!%p139_p2)  }
   0x7   : > { %955 = vmatpush3.bf16.msra.mxu0 (!%p139_p2), %v1096_v0  ;;  %1078 = vmatpush3.bf16.msra.mxu1 (!%p139_p2), %v1096_v0  ;;  %p163_p3 = scmp.lt.s32.totalorder (!%p139_p2), %s162_s18, 195  ;;  %v1102_v7 = vld [vmem:[%s1403_s1 + $0x30] sm:$0xff] (!%p139_p2)   ;;  %v1103_v8 = vld [vmem:[%s1403_s1 + $0x38] sm:$0xff] (!%p139_p2)   ;;  %v1293_v34 = vld [vmem:[%s1404_s2] ss:$0 sm:$0xff] (!%p139_p2) }
   0x8   : > { %956 = vmatprep.subr.bf16.mxu0 (!%p139_p2), %v1137_v1  ;;  %1071 = vmatprep.subr.bf16.mxu1 (!%p139_p2), %v1137_v1 }
   0x9   : > { %970 = vmatprep.mubr.msk.bf16.mxu0 (!%p139_p2), %vm1138_vm0, %v1137_v1  ;;  %1022 = vmatprep.mubr.msk.bf16.mxu1 (!%p139_p2), %vm1138_vm0, %v1137_v1 }
   0xb   : > { %957 = vmatpush3.bf16.msra.mxu0 (!%p139_p2), %v1097_v2  ;;  %1079 = vmatpush3.bf16.msra.mxu1 (!%p139_p2), %v1097_v2 }
   0xc   : > { %958 = vmatprep.subr.bf16.mxu0 (!%p139_p2), %v1137_v1  ;;  %1072 = vmatprep.subr.bf16.mxu1 (!%p139_p2), %v1137_v1 }
   0xd   : > { %s1407_s18 = smov (!%p163_p3, %s162_s18), 195 }
   0xe   : > { %s883_s21 = sshll.u32 %s1407_s18, 2  ;;  %s884_s10 = sshll.u32 %s1407_s18, 3 }
   0xf   : > { %s1192_s24 = scalar_lea.vmem %s1402_s0, %s883_s21  ;;  %959 = vmatpush3.bf16.msra.mxu0 %v1098_v3  ;;  %1080 = vmatpush3.bf16.msra.mxu1 %v1098_v3  ;;  %s1303_s14 = scalar_lea.vmem %s1405_s3, %s884_s10 }
  0x10   : > { %960 = vmatprep.subr.bf16.mxu0 %v1137_v1  ;;  %1073 = vmatprep.subr.bf16.mxu1 %v1137_v1  ;;  %v1104_v9 = vld [vmem:[%s1192_s24] sm:$0xff]   ;;  %v1105_v10 = vld [vmem:[%s1192_s24 + $0x68] sm:$0xff]   ;;  %v1107_v12 = vld [vmem:[%s1192_s24 + $0x70] sm:$0xff]  }
  0x11   : > { %v1106_v11 = vld [vmem:[%s1192_s24 + $0x8] sm:$0xff]   ;;  %v1108_v13 = vld [vmem:[%s1192_s24 + $0x10] sm:$0xff]   ;;  %v1109_v14 = vld [vmem:[%s1192_s24 + $0x78] sm:$0xff]  }
  0x12   : > { %v1110_v15 = vld [vmem:[%s1192_s24 + $0x18] sm:$0xff]   ;;  %v1111_v16 = vld [vmem:[%s1192_s24 + $0x80] sm:$0xff]   ;;  %v1113_v18 = vld [vmem:[%s1192_s24 + $0x88] sm:$0xff]  }
  0x13   : > { %961 = vmatpush3.bf16.msra.mxu0 %v1099_v4  ;;  %1081 = vmatpush3.bf16.msra.mxu1 %v1099_v4  ;;  %v1112_v17 = vld [vmem:[%s1192_s24 + $0x20] sm:$0xff]   ;;  %v1114_v19 = vld [vmem:[%s1192_s24 + $0x28] sm:$0xff]   ;;  %v1115_v20 = vld [vmem:[%s1192_s24 + $0x90] sm:$0xff]  }
  0x14   : > { %962 = vmatprep.subr.bf16.mxu0 %v1137_v1  ;;  %1074 = vmatprep.subr.bf16.mxu1 %v1137_v1  ;;  %v1116_v21 = vld [vmem:[%s1192_s24 + $0x30] sm:$0xff]   ;;  %v1117_v22 = vld [vmem:[%s1192_s24 + $0x98] sm:$0xff]   ;;  %v1119_v24 = vld [vmem:[%s1192_s24 + $0xa0] sm:$0xff]  }
  0x15   : > { %v1118_v23 = vld [vmem:[%s1192_s24 + $0x38] sm:$0xff]   ;;  %v1120_v25 = vld [vmem:[%s1192_s24 + $0x40] sm:$0xff]   ;;  %v1121_v26 = vld [vmem:[%s1192_s24 + $0xa8] sm:$0xff]  }
  0x16   : > { %v1122_v27 = vld [vmem:[%s1192_s24 + $0x48] sm:$0xff]   ;;  %v1123_v28 = vld [vmem:[%s1192_s24 + $0xb0] sm:$0xff]   ;;  %v1125_v30 = vld [vmem:[%s1192_s24 + $0xb8] sm:$0xff]  }
  0x17   : > { %963 = vmatpush3.bf16.msra.mxu0 %v1100_v5  ;;  %1082 = vmatpush3.bf16.msra.mxu1 %v1100_v5  ;;  %v1124_v29 = vld [vmem:[%s1192_s24 + $0x50] sm:$0xff]   ;;  %v1126_v31 = vld [vmem:[%s1192_s24 + $0x58] sm:$0xff]   ;;  %v1127_v32 = vld [vmem:[%s1192_s24 + $0xc0] ss:$0 sps:$4 sm:$0xff]  }
  0x18   : > { %964 = vmatprep.subr.bf16.mxu0 %v1137_v1  ;;  %1075 = vmatprep.subr.bf16.mxu1 %v1137_v1  ;;  %v1128_v33 = vld [vmem:[%s1192_s24 + $0x60] sm:$0xff]  }
  0x1b   : > { %965 = vmatpush3.bf16.msra.mxu0 %v1101_v6  ;;  %1083 = vmatpush3.bf16.msra.mxu1 %v1101_v6 }
  0x1c   : > { %966 = vmatprep.subr.bf16.mxu0 %v1137_v1  ;;  %1076 = vmatprep.subr.bf16.mxu1 %v1137_v1 }
  0x1f   : > { %967 = vmatpush3.bf16.msra.mxu0 %v1102_v7  ;;  %1084 = vmatpush3.bf16.msra.mxu1 %v1102_v7 }
  0x20   : > { %968 = vmatprep.subr.bf16.mxu0 %v1137_v1  ;;  %1077 = vmatprep.subr.bf16.mxu1 %v1137_v1 }
  0x23   : > { %969 = vmatpush3.bf16.msra.mxu0 %v1103_v8  ;;  %1085 = vmatpush3.bf16.msra.mxu1 %v1103_v8 }
  0x26   : > { %971 = vmatmul.mubr.bf16.vlgmr.msra.gmra.mrb[0].mxu0 %v1104_v9  ;;  %1023 = vmatmul.mubr.bf16.vlgmr.msra.gmra.mrb[0].mxu1 %v1105_v10 }
  0x27   : > { %974 = vmatprep.mubr.msk.bf16.mxu0 %vm1138_vm0, %v1137_v1  ;;  %1026 = vmatprep.mubr.msk.bf16.mxu1 %vm1138_vm0, %v1137_v1 }
  0x2e   : > { %975 = vmatmul.mubr.bf16.gmra.mrb[4].mxu0 %v1106_v11  ;;  %1027 = vmatmul.mubr.bf16.gmra.mrb[4].mxu1 %v1107_v12 }
  0x2f   : > { %978 = vmatprep.mubr.msk.bf16.mxu0 %vm1138_vm0, %v1137_v1  ;;  %1030 = vmatprep.mubr.msk.bf16.mxu1 %vm1138_vm0, %v1137_v1 }
  0x36   : > { %979 = vmatmul.mubr.bf16.gmra.mrb[8].mxu0 %v1108_v13  ;;  %1031 = vmatmul.mubr.bf16.gmra.mrb[8].mxu1 %v1109_v14 }
  0x37   : > { %982 = vmatprep.mubr.msk.bf16.mxu0 %vm1138_vm0, %v1137_v1  ;;  %1034 = vmatprep.mubr.msk.bf16.mxu1 %vm1138_vm0, %v1137_v1 }
  0x3e   : > { %983 = vmatmul.mubr.bf16.gmra.mrb[12].mxu0 %v1110_v15  ;;  %1035 = vmatmul.mubr.bf16.gmra.mrb[12].mxu1 %v1111_v16 }
  0x3f   : > { %986 = vmatprep.mubr.msk.bf16.mxu0 %vm1138_vm0, %v1137_v1  ;;  %1038 = vmatprep.mubr.msk.bf16.mxu1 %vm1138_vm0, %v1137_v1 }
  0x46   : > { %987 = vmatmul.mubr.bf16.gmra.mrb[16].mxu0 %v1112_v17  ;;  %1039 = vmatmul.mubr.bf16.gmra.mrb[16].mxu1 %v1113_v18 }
  0x47   : > { %990 = vmatprep.mubr.msk.bf16.mxu0 %vm1138_vm0, %v1137_v1  ;;  %1042 = vmatprep.mubr.msk.bf16.mxu1 %vm1138_vm0, %v1137_v1 }
  0x4e   : > { %991 = vmatmul.mubr.bf16.gmra.mrb[20].mxu0 %v1114_v19  ;;  %1043 = vmatmul.mubr.bf16.gmra.mrb[20].mxu1 %v1115_v20 }
  0x4f   : > { %994 = vmatprep.mubr.msk.bf16.mxu0 %vm1138_vm0, %v1137_v1  ;;  %1046 = vmatprep.mubr.msk.bf16.mxu1 %vm1138_vm0, %v1137_v1 }
  0x56   : > { %995 = vmatmul.mubr.bf16.gmra.mrb[24].mxu0 %v1116_v21  ;;  %1047 = vmatmul.mubr.bf16.gmra.mrb[24].mxu1 %v1117_v22 }
  0x57   : > { %998 = vmatprep.mubr.msk.bf16.mxu0 %vm1138_vm0, %v1137_v1  ;;  %1050 = vmatprep.mubr.msk.bf16.mxu1 %vm1138_vm0, %v1137_v1 }
  0x5e   : > { %999 = vmatmul.mubr.bf16.gmra.mrb[28].mxu0 %v1118_v23  ;;  %1051 = vmatmul.mubr.bf16.gmra.mrb[28].mxu1 %v1119_v24 }
  0x5f   : > { %1002 = vmatprep.mubr.msk.bf16.mxu0 %vm1138_vm0, %v1137_v1  ;;  %1054 = vmatprep.mubr.msk.bf16.mxu1 %vm1138_vm0, %v1137_v1 }
  0x66   : > { %1003 = vmatmul.mubr.bf16.gmra.mrb[32].mxu0 %v1120_v25  ;;  %1055 = vmatmul.mubr.bf16.gmra.mrb[32].mxu1 %v1121_v26 }
  0x67   : > { %1006 = vmatprep.mubr.msk.bf16.mxu0 %vm1138_vm0, %v1137_v1  ;;  %1058 = vmatprep.mubr.msk.bf16.mxu1 %vm1138_vm0, %v1137_v1 }
  0x6e   : > { %1007 = vmatmul.mubr.bf16.gmra.mrb[36].mxu0 %v1122_v27  ;;  %1059 = vmatmul.mubr.bf16.gmra.mrb[36].mxu1 %v1123_v28 }
  0x6f   : > { %1010 = vmatprep.mubr.msk.bf16.mxu0 %vm1138_vm0, %v1137_v1  ;;  %1062 = vmatprep.mubr.msk.bf16.mxu1 %vm1138_vm0, %v1137_v1 }
  0x76   : > { %1011 = vmatmul.mubr.bf16.gmra.mrb[40].mxu0 %v1124_v29  ;;  %1063 = vmatmul.mubr.bf16.gmra.mrb[40].mxu1 %v1125_v30 }
  0x77   : > { %1014 = vmatprep.mubr.msk.bf16.mxu0 %vm1138_vm0, %v1137_v1  ;;  %1066 = vmatprep.mubr.msk.bf16.mxu1 %vm1138_vm0, %v1137_v1 }
  0x7e   : > { %1015 = vmatmul.mubr.bf16.gmra.mrb[44].mxu0 %v1126_v31  ;;  %1067 = vmatmul.mubr.bf16.gmra.mrb[44].mxu1 %v1127_v32 }
  0x7f   : > { %1018 = vmatprep.mubr.msk.bf16.mxu0 %vm1138_vm0, %v1137_v1 }
  0x86   : > { %1019 = vmatmul.mubr.bf16.gmra.mrb[48].mxu0 %v1128_v33 }
  0xf9   : > { %v477_v35 = vpop.f32.mrb[0].mxu0  ;;  %v581_v36 = vpop.f32.mrb[0].mxu1 }
  0xfa   : > { %v478_v37 = vadd.f32 %v1293_v34, %v477_v35  ;;  %v972_v38 = vpop.f32.mrb[1].mxu0  ;;  %v582_v39 = vadd.f32 %v1293_v34, %v581_v36  ;;  %v1024_v40 = vpop.f32.mrb[1].mxu1 }
  0xfb   : > { %v480_v41 = vpop.f32.mrb[2].mxu0  ;;  %v584_v42 = vpop.f32.mrb[2].mxu1 }
  0xfc   : > { %v675_v43 = vmax.f32 %v478_v37, 0.0  ;;  %v481_v44 = vadd.f32 %v1293_v34, %v480_v41  ;;  %v973_v45 = vpop.f32.mrb[3].mxu0  ;;  %v701_v46 = vmax.f32 %v582_v39, 0.0  ;;  %v585_v47 = vadd.f32 %v1293_v34, %v584_v42  ;;  %v1025_v48 = vpop.f32.mrb[3].mxu1 }
  0xfe   : > { %v724_v49 = vmin.f32 %v675_v43, 1.0  ;;  %v676_v50 = vmax.f32 %v481_v44, 0.0  ;;  %v750_v51 = vmin.f32 %v701_v46, 1.0  ;;  %v702_v52 = vmax.f32 %v585_v47, 0.0 }
 0x100   : > { %773 = vst [vmem:[%s1303_s14] sm:$0xff] %v724_v49  ;;  %v725_v53 = vmin.f32 %v676_v50, 1.0  ;;  %799 = vst [vmem:[%s1303_s14 + $0xd0] sm:$0xff] %v750_v51  ;;  %v751_v54 = vmin.f32 %v702_v52, 1.0 }
 0x101   : > { %v485_v55 = vpop.f32.mrb[4].mxu0  ;;  %v589_v56 = vpop.f32.mrb[4].mxu1 }
 0x102   : > { %774 = vst [vmem:[%s1303_s14 + $0x8] sm:$0xff] %v725_v53  ;;  %v486_v57 = vadd.f32 %v1293_v34, %v485_v55  ;;  %v976_v58 = vpop.f32.mrb[5].mxu0  ;;  %800 = vst [vmem:[%s1303_s14 + $0xd8] sm:$0xff] %v751_v54  ;;  %v590_v59 = vadd.f32 %v1293_v34, %v589_v56  ;;  %v1028_v60 = vpop.f32.mrb[5].mxu1 }
 0x103   : > { %v488_v61 = vpop.f32.mrb[6].mxu0  ;;  %v592_v62 = vpop.f32.mrb[6].mxu1 }
 0x104   : > { %v677_v63 = vmax.f32 %v486_v57, 0.0  ;;  %v489_v0 = vadd.f32 %v1293_v34, %v488_v61  ;;  %v977_v1 = vpop.f32.mrb[7].mxu0  ;;  %v703_v2 = vmax.f32 %v590_v59, 0.0  ;;  %v593_v3 = vadd.f32 %v1293_v34, %v592_v62  ;;  %v1029_v4 = vpop.f32.mrb[7].mxu1 }
 0x106   : > { %v726_v5 = vmin.f32 %v677_v63, 1.0  ;;  %v678_v6 = vmax.f32 %v489_v0, 0.0  ;;  %v752_v7 = vmin.f32 %v703_v2, 1.0  ;;  %v704_v8 = vmax.f32 %v593_v3, 0.0 }
 0x108   : > { %775 = vst [vmem:[%s1303_s14 + $0x10] sm:$0xff] %v726_v5  ;;  %v727_v9 = vmin.f32 %v678_v6, 1.0  ;;  %801 = vst [vmem:[%s1303_s14 + $0xe0] sm:$0xff] %v752_v7  ;;  %v753_v10 = vmin.f32 %v704_v8, 1.0 }
 0x109   : > { %v493_v11 = vpop.f32.mrb[8].mxu0  ;;  %v597_v12 = vpop.f32.mrb[8].mxu1 }
 0x10a   : > { %776 = vst [vmem:[%s1303_s14 + $0x18] sm:$0xff] %v727_v9  ;;  %v494_v13 = vadd.f32 %v1293_v34, %v493_v11  ;;  %v980_v14 = vpop.f32.mrb[9].mxu0  ;;  %802 = vst [vmem:[%s1303_s14 + $0xe8] sm:$0xff] %v753_v10  ;;  %v598_v15 = vadd.f32 %v1293_v34, %v597_v12  ;;  %v1032_v16 = vpop.f32.mrb[9].mxu1 }
 0x10b   : > { %v496_v17 = vpop.f32.mrb[10].mxu0  ;;  %v600_v18 = vpop.f32.mrb[10].mxu1 }
 0x10c   : > { %v679_v19 = vmax.f32 %v494_v13, 0.0  ;;  %v497_v20 = vadd.f32 %v1293_v34, %v496_v17  ;;  %v981_v21 = vpop.f32.mrb[11].mxu0  ;;  %v705_v22 = vmax.f32 %v598_v15, 0.0  ;;  %v601_v23 = vadd.f32 %v1293_v34, %v600_v18  ;;  %v1033_v24 = vpop.f32.mrb[11].mxu1 }
 0x10e   : > { %v728_v25 = vmin.f32 %v679_v19, 1.0  ;;  %v680_v26 = vmax.f32 %v497_v20, 0.0  ;;  %v754_v27 = vmin.f32 %v705_v22, 1.0  ;;  %v706_v28 = vmax.f32 %v601_v23, 0.0 }
 0x110   : > { %777 = vst [vmem:[%s1303_s14 + $0x20] sm:$0xff] %v728_v25  ;;  %v729_v29 = vmin.f32 %v680_v26, 1.0  ;;  %803 = vst [vmem:[%s1303_s14 + $0xf0] sm:$0xff] %v754_v27  ;;  %v755_v30 = vmin.f32 %v706_v28, 1.0 }
 0x111   : > { %v501_v31 = vpop.f32.mrb[12].mxu0  ;;  %v605_v32 = vpop.f32.mrb[12].mxu1 }
 0x112   : > { %778 = vst [vmem:[%s1303_s14 + $0x28] sm:$0xff] %v729_v29  ;;  %v502_v33 = vadd.f32 %v1293_v34, %v501_v31  ;;  %v984_v35 = vpop.f32.mrb[13].mxu0  ;;  %804 = vst [vmem:[%s1303_s14 + $0xf8] sm:$0xff] %v755_v30  ;;  %v606_v36 = vadd.f32 %v1293_v34, %v605_v32  ;;  %v1036_v37 = vpop.f32.mrb[13].mxu1 }
 0x113   : > { %v504_v38 = vpop.f32.mrb[14].mxu0  ;;  %v608_v39 = vpop.f32.mrb[14].mxu1 }
 0x114   : > { %v681_v40 = vmax.f32 %v502_v33, 0.0  ;;  %v505_v41 = vadd.f32 %v1293_v34, %v504_v38  ;;  %v985_v42 = vpop.f32.mrb[15].mxu0  ;;  %v707_v43 = vmax.f32 %v606_v36, 0.0  ;;  %v609_v44 = vadd.f32 %v1293_v34, %v608_v39  ;;  %v1037_v45 = vpop.f32.mrb[15].mxu1 }
 0x116   : > { %v730_v46 = vmin.f32 %v681_v40, 1.0  ;;  %v682_v47 = vmax.f32 %v505_v41, 0.0  ;;  %v756_v48 = vmin.f32 %v707_v43, 1.0  ;;  %v708_v49 = vmax.f32 %v609_v44, 0.0 }
 0x118   : > { %779 = vst [vmem:[%s1303_s14 + $0x30] sm:$0xff] %v730_v46  ;;  %v731_v50 = vmin.f32 %v682_v47, 1.0  ;;  %805 = vst [vmem:[%s1303_s14 + $0x100] sm:$0xff] %v756_v48  ;;  %v757_v51 = vmin.f32 %v708_v49, 1.0 }
 0x119   : > { %v509_v52 = vpop.f32.mrb[16].mxu0  ;;  %v613_v53 = vpop.f32.mrb[16].mxu1 }
 0x11a   : > { %780 = vst [vmem:[%s1303_s14 + $0x38] sm:$0xff] %v731_v50  ;;  %v510_v54 = vadd.f32 %v1293_v34, %v509_v52  ;;  %v988_v55 = vpop.f32.mrb[17].mxu0  ;;  %806 = vst [vmem:[%s1303_s14 + $0x108] sm:$0xff] %v757_v51  ;;  %v614_v56 = vadd.f32 %v1293_v34, %v613_v53  ;;  %v1040_v57 = vpop.f32.mrb[17].mxu1 }
 0x11b   : > { %v512_v58 = vpop.f32.mrb[18].mxu0  ;;  %v616_v59 = vpop.f32.mrb[18].mxu1 }
 0x11c   : > { %v683_v60 = vmax.f32 %v510_v54, 0.0  ;;  %v513_v61 = vadd.f32 %v1293_v34, %v512_v58  ;;  %v989_v62 = vpop.f32.mrb[19].mxu0  ;;  %v709_v63 = vmax.f32 %v614_v56, 0.0  ;;  %v617_v0 = vadd.f32 %v1293_v34, %v616_v59  ;;  %v1041_v1 = vpop.f32.mrb[19].mxu1 }
 0x11e   : > { %v732_v2 = vmin.f32 %v683_v60, 1.0  ;;  %v684_v3 = vmax.f32 %v513_v61, 0.0  ;;  %v758_v4 = vmin.f32 %v709_v63, 1.0  ;;  %v710_v5 = vmax.f32 %v617_v0, 0.0 }
 0x120   : > { %781 = vst [vmem:[%s1303_s14 + $0x40] sm:$0xff] %v732_v2  ;;  %v733_v6 = vmin.f32 %v684_v3, 1.0  ;;  %807 = vst [vmem:[%s1303_s14 + $0x110] sm:$0xff] %v758_v4  ;;  %v759_v7 = vmin.f32 %v710_v5, 1.0 }
 0x121   : > { %v517_v8 = vpop.f32.mrb[20].mxu0  ;;  %v621_v9 = vpop.f32.mrb[20].mxu1 }
 0x122   : > { %782 = vst [vmem:[%s1303_s14 + $0x48] sm:$0xff] %v733_v6  ;;  %v518_v10 = vadd.f32 %v1293_v34, %v517_v8  ;;  %v992_v11 = vpop.f32.mrb[21].mxu0  ;;  %808 = vst [vmem:[%s1303_s14 + $0x118] sm:$0xff] %v759_v7  ;;  %v622_v12 = vadd.f32 %v1293_v34, %v621_v9  ;;  %v1044_v13 = vpop.f32.mrb[21].mxu1 }
 0x123   : > { %v520_v14 = vpop.f32.mrb[22].mxu0  ;;  %v624_v15 = vpop.f32.mrb[22].mxu1 }
 0x124   : > { %v685_v16 = vmax.f32 %v518_v10, 0.0  ;;  %v521_v17 = vadd.f32 %v1293_v34, %v520_v14  ;;  %v993_v18 = vpop.f32.mrb[23].mxu0  ;;  %v711_v19 = vmax.f32 %v622_v12, 0.0  ;;  %v625_v20 = vadd.f32 %v1293_v34, %v624_v15  ;;  %v1045_v21 = vpop.f32.mrb[23].mxu1 }
 0x126   : > { %v734_v22 = vmin.f32 %v685_v16, 1.0  ;;  %v686_v23 = vmax.f32 %v521_v17, 0.0  ;;  %v760_v24 = vmin.f32 %v711_v19, 1.0  ;;  %v712_v25 = vmax.f32 %v625_v20, 0.0 }
 0x128   : > { %783 = vst [vmem:[%s1303_s14 + $0x50] sm:$0xff] %v734_v22  ;;  %v735_v26 = vmin.f32 %v686_v23, 1.0  ;;  %809 = vst [vmem:[%s1303_s14 + $0x120] sm:$0xff] %v760_v24  ;;  %v761_v27 = vmin.f32 %v712_v25, 1.0 }
 0x129   : > { %v525_v28 = vpop.f32.mrb[24].mxu0  ;;  %v629_v29 = vpop.f32.mrb[24].mxu1 }
 0x12a   : > { %784 = vst [vmem:[%s1303_s14 + $0x58] sm:$0xff] %v735_v26  ;;  %v526_v30 = vadd.f32 %v1293_v34, %v525_v28  ;;  %v996_v31 = vpop.f32.mrb[25].mxu0  ;;  %810 = vst [vmem:[%s1303_s14 + $0x128] sm:$0xff] %v761_v27  ;;  %v630_v32 = vadd.f32 %v1293_v34, %v629_v29  ;;  %v1048_v33 = vpop.f32.mrb[25].mxu1 }
 0x12b   : > { %v528_v35 = vpop.f32.mrb[26].mxu0  ;;  %v632_v36 = vpop.f32.mrb[26].mxu1 }
 0x12c   : > { %v687_v37 = vmax.f32 %v526_v30, 0.0  ;;  %v529_v38 = vadd.f32 %v1293_v34, %v528_v35  ;;  %v997_v39 = vpop.f32.mrb[27].mxu0  ;;  %v713_v40 = vmax.f32 %v630_v32, 0.0  ;;  %v633_v41 = vadd.f32 %v1293_v34, %v632_v36  ;;  %v1049_v42 = vpop.f32.mrb[27].mxu1 }
 0x12e   : > { %v736_v43 = vmin.f32 %v687_v37, 1.0  ;;  %v688_v44 = vmax.f32 %v529_v38, 0.0  ;;  %v762_v45 = vmin.f32 %v713_v40, 1.0  ;;  %v714_v46 = vmax.f32 %v633_v41, 0.0 }
 0x130   : > { %785 = vst [vmem:[%s1303_s14 + $0x60] sm:$0xff] %v736_v43  ;;  %v737_v47 = vmin.f32 %v688_v44, 1.0  ;;  %811 = vst [vmem:[%s1303_s14 + $0x130] sm:$0xff] %v762_v45  ;;  %v763_v48 = vmin.f32 %v714_v46, 1.0 }
 0x131   : > { %v533_v49 = vpop.f32.mrb[28].mxu0  ;;  %v637_v50 = vpop.f32.mrb[28].mxu1 }
 0x132   : > { %786 = vst [vmem:[%s1303_s14 + $0x68] sm:$0xff] %v737_v47  ;;  %v534_v51 = vadd.f32 %v1293_v34, %v533_v49  ;;  %v1000_v52 = vpop.f32.mrb[29].mxu0  ;;  %812 = vst [vmem:[%s1303_s14 + $0x138] sm:$0xff] %v763_v48  ;;  %v638_v53 = vadd.f32 %v1293_v34, %v637_v50  ;;  %v1052_v54 = vpop.f32.mrb[29].mxu1 }
 0x133   : > { %v536_v55 = vpop.f32.mrb[30].mxu0  ;;  %v640_v56 = vpop.f32.mrb[30].mxu1 }
 0x134   : > { %v689_v57 = vmax.f32 %v534_v51, 0.0  ;;  %v537_v58 = vadd.f32 %v1293_v34, %v536_v55  ;;  %v1001_v59 = vpop.f32.mrb[31].mxu0  ;;  %v715_v60 = vmax.f32 %v638_v53, 0.0  ;;  %v641_v61 = vadd.f32 %v1293_v34, %v640_v56  ;;  %v1053_v62 = vpop.f32.mrb[31].mxu1 }
 0x136   : > { %v738_v63 = vmin.f32 %v689_v57, 1.0  ;;  %v690_v0 = vmax.f32 %v537_v58, 0.0  ;;  %v764_v1 = vmin.f32 %v715_v60, 1.0  ;;  %v716_v2 = vmax.f32 %v641_v61, 0.0 }
 0x138   : > { %787 = vst [vmem:[%s1303_s14 + $0x70] sm:$0xff] %v738_v63  ;;  %v739_v3 = vmin.f32 %v690_v0, 1.0  ;;  %813 = vst [vmem:[%s1303_s14 + $0x140] sm:$0xff] %v764_v1  ;;  %v765_v4 = vmin.f32 %v716_v2, 1.0 }
 0x139   : > { %v541_v5 = vpop.f32.mrb[32].mxu0  ;;  %v645_v6 = vpop.f32.mrb[32].mxu1 }
 0x13a   : > { %788 = vst [vmem:[%s1303_s14 + $0x78] sm:$0xff] %v739_v3  ;;  %v542_v7 = vadd.f32 %v1293_v34, %v541_v5  ;;  %v1004_v8 = vpop.f32.mrb[33].mxu0  ;;  %814 = vst [vmem:[%s1303_s14 + $0x148] sm:$0xff] %v765_v4  ;;  %v646_v9 = vadd.f32 %v1293_v34, %v645_v6  ;;  %v1056_v10 = vpop.f32.mrb[33].mxu1 }
 0x13b   : > { %v544_v11 = vpop.f32.mrb[34].mxu0  ;;  %v648_v12 = vpop.f32.mrb[34].mxu1 }
 0x13c   : > { %v691_v13 = vmax.f32 %v542_v7, 0.0  ;;  %v545_v14 = vadd.f32 %v1293_v34, %v544_v11  ;;  %v1005_v15 = vpop.f32.mrb[35].mxu0  ;;  %v717_v16 = vmax.f32 %v646_v9, 0.0  ;;  %v649_v17 = vadd.f32 %v1293_v34, %v648_v12  ;;  %v1057_v18 = vpop.f32.mrb[35].mxu1 }
 0x13e   : > { %v740_v19 = vmin.f32 %v691_v13, 1.0  ;;  %v692_v20 = vmax.f32 %v545_v14, 0.0  ;;  %v766_v21 = vmin.f32 %v717_v16, 1.0  ;;  %v718_v22 = vmax.f32 %v649_v17, 0.0 }
 0x140   : > { %789 = vst [vmem:[%s1303_s14 + $0x80] sm:$0xff] %v740_v19  ;;  %v741_v23 = vmin.f32 %v692_v20, 1.0  ;;  %815 = vst [vmem:[%s1303_s14 + $0x150] sm:$0xff] %v766_v21  ;;  %v767_v24 = vmin.f32 %v718_v22, 1.0 }
 0x141   : > { %v549_v25 = vpop.f32.mrb[36].mxu0  ;;  %v653_v26 = vpop.f32.mrb[36].mxu1 }
 0x142   : > { %790 = vst [vmem:[%s1303_s14 + $0x88] sm:$0xff] %v741_v23  ;;  %v550_v27 = vadd.f32 %v1293_v34, %v549_v25  ;;  %v1008_v28 = vpop.f32.mrb[37].mxu0  ;;  %816 = vst [vmem:[%s1303_s14 + $0x158] sm:$0xff] %v767_v24  ;;  %v654_v29 = vadd.f32 %v1293_v34, %v653_v26  ;;  %v1060_v30 = vpop.f32.mrb[37].mxu1 }
 0x143   : > { %v552_v31 = vpop.f32.mrb[38].mxu0  ;;  %v656_v32 = vpop.f32.mrb[38].mxu1 }
 0x144   : > { %v693_v33 = vmax.f32 %v550_v27, 0.0  ;;  %v553_v35 = vadd.f32 %v1293_v34, %v552_v31  ;;  %v1009_v36 = vpop.f32.mrb[39].mxu0  ;;  %v719_v37 = vmax.f32 %v654_v29, 0.0  ;;  %v657_v38 = vadd.f32 %v1293_v34, %v656_v32  ;;  %v1061_v39 = vpop.f32.mrb[39].mxu1 }
 0x146   : > { %v742_v40 = vmin.f32 %v693_v33, 1.0  ;;  %v694_v41 = vmax.f32 %v553_v35, 0.0  ;;  %v768_v42 = vmin.f32 %v719_v37, 1.0  ;;  %v720_v43 = vmax.f32 %v657_v38, 0.0 }
 0x148   : > { %791 = vst [vmem:[%s1303_s14 + $0x90] sm:$0xff] %v742_v40  ;;  %v743_v44 = vmin.f32 %v694_v41, 1.0  ;;  %817 = vst [vmem:[%s1303_s14 + $0x160] sm:$0xff] %v768_v42  ;;  %v769_v45 = vmin.f32 %v720_v43, 1.0 }
 0x149   : > { %v557_v46 = vpop.f32.mrb[40].mxu0  ;;  %v661_v47 = vpop.f32.mrb[40].mxu1 }
 0x14a   : > { %792 = vst [vmem:[%s1303_s14 + $0x98] sm:$0xff] %v743_v44  ;;  %v558_v48 = vadd.f32 %v1293_v34, %v557_v46  ;;  %v1012_v49 = vpop.f32.mrb[41].mxu0  ;;  %818 = vst [vmem:[%s1303_s14 + $0x168] sm:$0xff] %v769_v45  ;;  %v662_v50 = vadd.f32 %v1293_v34, %v661_v47  ;;  %v1064_v51 = vpop.f32.mrb[41].mxu1 }
 0x14b   : > { %v560_v52 = vpop.f32.mrb[42].mxu0  ;;  %v664_v53 = vpop.f32.mrb[42].mxu1 }
 0x14c   : > { %v695_v54 = vmax.f32 %v558_v48, 0.0  ;;  %v561_v55 = vadd.f32 %v1293_v34, %v560_v52  ;;  %v1013_v56 = vpop.f32.mrb[43].mxu0  ;;  %v721_v57 = vmax.f32 %v662_v50, 0.0  ;;  %v665_v58 = vadd.f32 %v1293_v34, %v664_v53  ;;  %v1065_v59 = vpop.f32.mrb[43].mxu1 }
 0x14e   : > { %v744_v60 = vmin.f32 %v695_v54, 1.0  ;;  %v696_v61 = vmax.f32 %v561_v55, 0.0  ;;  %v770_v62 = vmin.f32 %v721_v57, 1.0  ;;  %v722_v63 = vmax.f32 %v665_v58, 0.0 }
 0x150   : > { %793 = vst [vmem:[%s1303_s14 + $0xa0] sm:$0xff] %v744_v60  ;;  %v745_v0 = vmin.f32 %v696_v61, 1.0  ;;  %819 = vst [vmem:[%s1303_s14 + $0x170] sm:$0xff] %v770_v62  ;;  %v771_v1 = vmin.f32 %v722_v63, 1.0 }
 0x151   : > { %v565_v2 = vpop.f32.mrb[44].mxu0  ;;  %v669_v3 = vpop.f32.mrb[44].mxu1 }
 0x152   : > { %794 = vst [vmem:[%s1303_s14 + $0xa8] sm:$0xff] %v745_v0  ;;  %v566_v4 = vadd.f32 %v1293_v34, %v565_v2  ;;  %v1016_v5 = vpop.f32.mrb[45].mxu0  ;;  %820 = vst [vmem:[%s1303_s14 + $0x178] sm:$0xff] %v771_v1  ;;  %v670_v6 = vadd.f32 %v1293_v34, %v669_v3  ;;  %v1068_v7 = vpop.f32.mrb[45].mxu1 }
 0x153   : > { %v568_v8 = vpop.f32.mrb[46].mxu0  ;;  %v672_v9 = vpop.f32.mrb[46].mxu1 }
 0x154   : > { %v697_v10 = vmax.f32 %v566_v4, 0.0  ;;  %v569_v11 = vadd.f32 %v1293_v34, %v568_v8  ;;  %v1017_v12 = vpop.f32.mrb[47].mxu0  ;;  %v723_v13 = vmax.f32 %v670_v6, 0.0  ;;  %v1069_v14 = vpop.f32.mrb[47].mxu1 }
 0x156   : > { %v746_v15 = vmin.f32 %v697_v10, 1.0  ;;  %v698_v16 = vmax.f32 %v569_v11, 0.0  ;;  %v772_v17 = vmin.f32 %v723_v13, 1.0 }
 0x158   : > { %795 = vst [vmem:[%s1303_s14 + $0xb0] sm:$0xff] %v746_v15  ;;  %v747_v18 = vmin.f32 %v698_v16, 1.0  ;;  %821 = vst [vmem:[%s1303_s14 + $0x180] sm:$0xff] %v772_v17 }
 0x159   : > { %v573_v19 = vpop.f32.mrb[48].mxu0 }
 0x15a   : > { %796 = vst [vmem:[%s1303_s14 + $0xb8] sm:$0xff] %v747_v18  ;;  %v574_v20 = vadd.f32 %v1293_v34, %v573_v19  ;;  %v1020_v21 = vpop.f32.mrb[49].mxu0 }
 0x15b   : > { %v576_v22 = vpop.f32.mrb[50].mxu0 }
 0x15c   : > { %v699_v23 = vmax.f32 %v574_v20, 0.0  ;;  %v577_v24 = vadd.f32 %v1293_v34, %v576_v22  ;;  %v1021_v25 = vpop.f32.mrb[51].mxu0 }
 0x15e   : > { %v748_v26 = vmin.f32 %v699_v23, 1.0  ;;  %v700_v27 = vmax.f32 %v577_v24, 0.0 }
 0x160   : > { %797 = vst [vmem:[%s1303_s14 + $0xc0] sm:$0xff] %v748_v26  ;;  %v749_v28 = vmin.f32 %v700_v27, 1.0 }
 0x162   : > { %798 = vst [vmem:[%s1303_s14 + $0xc8] sm:$0xff] %v749_v28 }
 0x163 PF: > { %s13_s12 = sadd.s32 1, %s1135_s12  }
 0x164   : > { %p10_p4 = scmp.ge.s32.totalorder %s13_s12, 6  }
 0x166   :  { %12 = sbr.rel (!%p10_p4) target bundleno = 1 (0x1), region = 62 }

// kernel: a_call__.7
= control target key start
LH: loop header
LB: loop body
LE: loop exit
PB: predicated region body
PF: predicated region fallthrough
CT: control target
= control target key end

     0   :  { %v5418_v0 = vmov 0   ;;  %s7287_s1 = inlined_call_operand.vmem [shape: bf16[1152,128], index: 1, kind: input, shape index: {}]   ;;  %s7288_s0 = inlined_call_operand.vmem [shape: bf16[512,1152], index: 0, kind: input, shape index: {}]   ;;  %s7289_s2 = inlined_call_operand.vmem [shape: f32[1,128], index: 2, kind: input, shape index: {}]   ;;  %s7290_s3 = inlined_call_operand.vmem [shape: f32[512,128], index: 3, kind: output, shape index: {}]  }
   0x1   :  { %2390 = vmatprep.subr.bf16.mxu1 %v5418_v0  ;;  %2679 = vmatprep.subr.bf16.mxu0 %v5418_v0  ;;  %v4929_v1 = vld [vmem:[%s7287_s1] sm:$0xff]   ;;  %v4931_v3 = vld [vmem:[%s7287_s1 + $0x8] sm:$0xff]   ;;  %v4933_v5 = vld [vmem:[%s7287_s1 + $0x10] sm:$0xff]  }
   0x2   :  { %v5447_v2 = vld [vmem:[%s7287_s1 + $0x80] sm:$0xff]   ;;  %2391 = vmatpush1.bf16.msra.mxu1 %v4929_v1  ;;  %v5457_v4 = vld [vmem:[%s7287_s1 + $0x88] sm:$0xff]   ;;  %v5468_v6 = vld [vmem:[%s7287_s1 + $0x90] sm:$0xff]  }
   0x3   :  { %2680 = vmatpush1.bf16.msra.mxu0 %v5447_v2  ;;  %2392 = vmatprep.subr.bf16.mxu1 %v5418_v0  ;;  %v4935_v7 = vld [vmem:[%s7287_s1 + $0x18] sm:$0xff]   ;;  %v4937_v9 = vld [vmem:[%s7287_s1 + $0x20] sm:$0xff]   ;;  %v4939_v11 = vld [vmem:[%s7287_s1 + $0x28] sm:$0xff]  }
   0x4   :  { %2681 = vmatprep.subr.bf16.mxu0 %v5418_v0  ;;  %v5479_v8 = vld [vmem:[%s7287_s1 + $0x98] sm:$0xff]   ;;  %v5490_v10 = vld [vmem:[%s7287_s1 + $0xa0] sm:$0xff]   ;;  %v5501_v12 = vld [vmem:[%s7287_s1 + $0xa8] sm:$0xff]  }
   0x5   :  { %v4941_v13 = vld [vmem:[%s7287_s1 + $0x30] sm:$0xff]   ;;  %v4943_v15 = vld [vmem:[%s7287_s1 + $0x38] sm:$0xff]   ;;  %v4945_v17 = vld [vmem:[%s7287_s1 + $0x40] sm:$0xff]  }
   0x6   :  { %2393 = vmatpush1.bf16.msra.mxu1 %v4931_v3  ;;  %v5512_v14 = vld [vmem:[%s7287_s1 + $0xb0] sm:$0xff]   ;;  %v5523_v16 = vld [vmem:[%s7287_s1 + $0xb8] sm:$0xff]   ;;  %v5534_v18 = vld [vmem:[%s7287_s1 + $0xc0] sm:$0xff]  }
   0x7   :  { %2682 = vmatpush1.bf16.msra.mxu0 %v5457_v4  ;;  %2394 = vmatprep.subr.bf16.mxu1 %v5418_v0  ;;  %v4963_v19 = vld [vmem:[%s7288_s0 + $0x4] ss:$36 sps:$4 sm:$0xff]   ;;  %v4966_v21 = vld [vmem:[%s7288_s0 + $0xc] ss:$36 sps:$4 sm:$0xff]   ;;  %v4951_v25 = vld [vmem:[%s7287_s1 + $0x58] sm:$0xff]  }
   0x8   :  { %2683 = vmatprep.subr.bf16.mxu0 %v5418_v0  ;;  %v4947_v20 = vld [vmem:[%s7287_s1 + $0x48] sm:$0xff]   ;;  %2422 = vmatprep.mubr.bf16.mxu1 %v4963_v19  ;;  %v4949_v23 = vld [vmem:[%s7287_s1 + $0x50] sm:$0xff]   ;;  %v5573_v26 = vld [vmem:[%s7287_s1 + $0xd8] sm:$0xff]  }
   0x9   :  { %v5551_v22 = vld [vmem:[%s7287_s1 + $0xc8] sm:$0xff]   ;;  %2711 = vmatprep.mubr.bf16.mxu0 %v4966_v21  ;;  %v5562_v24 = vld [vmem:[%s7287_s1 + $0xd0] sm:$0xff]   ;;  %v4953_v27 = vld [vmem:[%s7287_s1 + $0x60] sm:$0xff]  }
   0xa   :  { %2395 = vmatpush1.bf16.msra.mxu1 %v4933_v5  ;;  %v5584_v28 = vld [vmem:[%s7287_s1 + $0xe0] sm:$0xff]   ;;  %v4955_v29 = vld [vmem:[%s7287_s1 + $0x68] sm:$0xff]   ;;  %v4957_v31 = vld [vmem:[%s7287_s1 + $0x70] sm:$0xff]  }
   0xb   :  { %2684 = vmatpush1.bf16.msra.mxu0 %v5468_v6  ;;  %2396 = vmatprep.subr.bf16.mxu1 %v5418_v0  ;;  %v5595_v30 = vld [vmem:[%s7287_s1 + $0xe8] sm:$0xff]   ;;  %v5606_v32 = vld [vmem:[%s7287_s1 + $0xf0] sm:$0xff]   ;;  %v4959_v33 = vld [vmem:[%s7287_s1 + $0x78] sm:$0xff]  }
   0xc   :  { %2685 = vmatprep.subr.bf16.mxu0 %v5418_v0  ;;  %v5617_v34 = vld [vmem:[%s7287_s1 + $0xf8] sm:$0xff]   ;;  %v4961_v35 = vld [vmem:[%s7288_s0] ss:$36 sps:$4 sm:$0xff]   ;;  %v4964_v36 = vld [vmem:[%s7288_s0 + $0x8] ss:$36 sps:$4 sm:$0xff]  }
   0xd   :  { %v4967_v37 = vld [vmem:[%s7287_s1 + $0x100] sm:$0xff]   ;;  %v4969_v38 = vld [vmem:[%s7288_s0 + $0x4c] ss:$36 sps:$4 sm:$0xff]   ;;  %v4971_v39 = vld [vmem:[%s7288_s0 + $0x54] ss:$36 sps:$4 sm:$0xff]  }
   0xe   :  { %2397 = vmatpush1.bf16.msra.mxu1 %v4935_v7  ;;  %v4968_v40 = vld [vmem:[%s7287_s1 + $0x108] sm:$0xff]   ;;  %v4974_v42 = vld [vmem:[%s7288_s0 + $0x50] ss:$36 sps:$4 sm:$0xff]   ;;  %v4979_v45 = vld [vmem:[%s7288_s0 + $0x9c] ss:$36 sps:$4 sm:$0xff]  }
   0xf   :  { %2686 = vmatpush1.bf16.msra.mxu0 %v5479_v8  ;;  %2398 = vmatprep.subr.bf16.mxu1 %v5418_v0  ;;  %v4973_v41 = vld [vmem:[%s7288_s0 + $0x48] ss:$36 sps:$4 sm:$0xff]   ;;  %v4977_v43 = vld [vmem:[%s7288_s0 + $0x94] ss:$36 sps:$4 sm:$0xff]   ;;  %v4983_v49 = vld [vmem:[%s7287_s1 + $0x120] sm:$0xff]  }
  0x10   :  { %2687 = vmatprep.subr.bf16.mxu0 %v5418_v0  ;;  %v4975_v44 = vld [vmem:[%s7287_s1 + $0x110] sm:$0xff]   ;;  %v4976_v46 = vld [vmem:[%s7287_s1 + $0x118] sm:$0xff]   ;;  %v4987_v51 = vld [vmem:[%s7288_s0 + $0xe4] ss:$36 sps:$4 sm:$0xff]  }
  0x11   :  { %v4981_v47 = vld [vmem:[%s7288_s0 + $0x90] ss:$36 sps:$4 sm:$0xff]   ;;  %v4982_v48 = vld [vmem:[%s7288_s0 + $0x98] ss:$36 sps:$4 sm:$0xff]   ;;  %v4984_v52 = vld [vmem:[%s7287_s1 + $0x128] sm:$0xff]  }
  0x12   :  { %2399 = vmatpush1.bf16.msra.mxu1 %v4937_v9  ;;  %v4985_v50 = vld [vmem:[%s7288_s0 + $0xdc] ss:$36 sps:$4 sm:$0xff]   ;;  %v4993_v55 = vld [vmem:[%s7288_s0 + $0x124] ss:$36 sps:$4 sm:$0xff]   ;;  %v4991_v56 = vld [vmem:[%s7287_s1 + $0x130] sm:$0xff]  }
  0x13   :  { %2688 = vmatpush1.bf16.msra.mxu0 %v5490_v10  ;;  %2400 = vmatprep.subr.bf16.mxu1 %v5418_v0  ;;  %v4989_v53 = vld [vmem:[%s7288_s0 + $0xd8] ss:$36 sps:$4 sm:$0xff]   ;;  %v4990_v54 = vld [vmem:[%s7288_s0 + $0xe0] ss:$36 sps:$4 sm:$0xff]   ;;  %v4995_v57 = vld [vmem:[%s7288_s0 + $0x12c] ss:$36 sps:$4 sm:$0xff]  }
  0x14   :  { %2689 = vmatprep.subr.bf16.mxu0 %v5418_v0  ;;  %v4992_v58 = vld [vmem:[%s7287_s1 + $0x138] sm:$0xff]   ;;  %v4997_v59 = vld [vmem:[%s7288_s0 + $0x120] ss:$36 sps:$4 sm:$0xff]   ;;  %v4998_v60 = vld [vmem:[%s7288_s0 + $0x128] ss:$36 sps:$4 sm:$0xff]  }
  0x15   :  { %v4999_v61 = vld [vmem:[%s7287_s1 + $0x140] sm:$0xff]   ;;  %v5001_v62 = vld [vmem:[%s7288_s0 + $0x16c] ss:$36 sps:$4 sm:$0xff]   ;;  %v5003_v63 = vld [vmem:[%s7288_s0 + $0x174] ss:$36 sps:$4 sm:$0xff]  }
  0x16   :  { %2401 = vmatpush1.bf16.msra.mxu1 %v4939_v11  ;;  %v5000_v1 = vld [vmem:[%s7287_s1 + $0x148] sm:$0xff]   ;;  %v5006_v3 = vld [vmem:[%s7288_s0 + $0x170] ss:$36 sps:$4 sm:$0xff]   ;;  %v5008_v7 = vld [vmem:[%s7287_s1 + $0x158] sm:$0xff]  }
  0x17   :  { %2690 = vmatpush1.bf16.msra.mxu0 %v5501_v12  ;;  %2402 = vmatprep.subr.bf16.mxu1 %v5418_v0  ;;  %v5007_v5 = vld [vmem:[%s7287_s1 + $0x150] sm:$0xff]   ;;  %v5014_v9 = vld [vmem:[%s7288_s0 + $0x1b8] ss:$36 sps:$4 sm:$0xff]  }
  0x18   :  { %2691 = vmatprep.subr.bf16.mxu0 %v5418_v0  ;;  %v5017_v11 = vld [vmem:[%s7288_s0 + $0x1fc] ss:$36 sps:$4 sm:$0xff]   ;;  %v5027_v21 = vld [vmem:[%s7288_s0 + $0x10] ss:$36 sps:$4 sm:$0xff]  }
  0x19   :  { %v5024_v19 = vld [vmem:[%s7287_s1 + $0x178] sm:$0xff]  }
  0x1a   :  { %2403 = vmatpush1.bf16.msra.mxu1 %v4941_v13  ;;  %v5016_v13 = vld [vmem:[%s7287_s1 + $0x168] sm:$0xff]  }
  0x1b   :  { %2692 = vmatpush1.bf16.msra.mxu0 %v5512_v14  ;;  %2404 = vmatprep.subr.bf16.mxu1 %v5418_v0 }
  0x1c   :  { %2693 = vmatprep.subr.bf16.mxu0 %v5418_v0 }
  0x1e   :  { %2405 = vmatpush1.bf16.msra.mxu1 %v4943_v15  ;;  %v5022_v15 = vld [vmem:[%s7288_s0 + $0x200] ss:$36 sps:$4 sm:$0xff]  }
  0x1f   :  { %2694 = vmatpush1.bf16.msra.mxu0 %v5523_v16  ;;  %2406 = vmatprep.subr.bf16.mxu1 %v5418_v0 }
  0x20   :  { %2695 = vmatprep.subr.bf16.mxu0 %v5418_v0 }
  0x22   :  { %2407 = vmatpush1.bf16.msra.mxu1 %v4945_v17  ;;  %v5023_v17 = vld [vmem:[%s7287_s1 + $0x170] sm:$0xff]  }
  0x23   :  { %2696 = vmatpush1.bf16.msra.mxu0 %v5534_v18  ;;  %2408 = vmatprep.subr.bf16.mxu1 %v5418_v0 }
  0x24   :  { %2697 = vmatprep.subr.bf16.mxu0 %v5418_v0 }
  0x26   :  { %2409 = vmatpush1.bf16.msra.mxu1 %v4947_v20  ;;  %v5030_v20 = vld [vmem:[%s7288_s0 + $0x240] ss:$36 sps:$4 sm:$0xff]  }
  0x27   :  { %2698 = vmatpush1.bf16.msra.mxu0 %v5551_v22  ;;  %2410 = vmatprep.subr.bf16.mxu1 %v5418_v0 }
  0x28   :  { %2699 = vmatprep.subr.bf16.mxu0 %v5418_v0 }
  0x2a   :  { %2411 = vmatpush1.bf16.msra.mxu1 %v4949_v23  ;;  %v5031_v23 = vld [vmem:[%s7287_s1 + $0x180] sm:$0xff]  }
  0x2b   :  { %2700 = vmatpush1.bf16.msra.mxu0 %v5562_v24  ;;  %2412 = vmatprep.subr.bf16.mxu1 %v5418_v0 }
  0x2c   :  { %2701 = vmatprep.subr.bf16.mxu0 %v5418_v0 }
  0x2e   :  { %2413 = vmatpush1.bf16.msra.mxu1 %v4951_v25  ;;  %v5036_v25 = vld [vmem:[%s7288_s0 + $0x288] ss:$36 sps:$4 sm:$0xff]  }
  0x2f   :  { %2702 = vmatpush1.bf16.msra.mxu0 %v5573_v26  ;;  %2414 = vmatprep.subr.bf16.mxu1 %v5418_v0 }
  0x30   :  { %2703 = vmatprep.subr.bf16.mxu0 %v5418_v0 }
  0x32   :  { %2415 = vmatpush1.bf16.msra.mxu1 %v4953_v27  ;;  %v5037_v27 = vld [vmem:[%s7288_s0 + $0x58] ss:$36 sps:$4 sm:$0xff]  }
  0x33   :  { %2704 = vmatpush1.bf16.msra.mxu0 %v5584_v28  ;;  %2416 = vmatprep.subr.bf16.mxu1 %v5418_v0 }
  0x34   :  { %2705 = vmatprep.subr.bf16.mxu0 %v5418_v0 }
  0x36   :  { %2417 = vmatpush1.bf16.msra.mxu1 %v4955_v29  ;;  %v5040_v29 = vld [vmem:[%s7288_s0 + $0xa4] ss:$36 sps:$4 sm:$0xff]  }
  0x37   :  { %2706 = vmatpush1.bf16.msra.mxu0 %v5595_v30  ;;  %2418 = vmatprep.subr.bf16.mxu1 %v5418_v0 }
  0x38   :  { %2707 = vmatprep.subr.bf16.mxu0 %v5418_v0 }
  0x3a   :  { %2419 = vmatpush1.bf16.msra.mxu1 %v4957_v31  ;;  %v5042_v31 = vld [vmem:[%s7288_s0 + $0x2d0] ss:$36 sps:$4 sm:$0xff]  }
  0x3b   :  { %2708 = vmatpush1.bf16.msra.mxu0 %v5606_v32  ;;  %2420 = vmatprep.subr.bf16.mxu1 %v5418_v0 }
  0x3c   :  { %2709 = vmatprep.subr.bf16.mxu0 %v5418_v0 }
  0x3e   :  { %2421 = vmatpush1.bf16.msra.mxu1 %v4959_v33  ;;  %v5043_v33 = vld [vmem:[%s7288_s0 + $0xa0] ss:$36 sps:$4 sm:$0xff]  }
  0x3f   :  { %2710 = vmatpush1.bf16.msra.mxu0 %v5617_v34  ;;  %4512 = vmatprep.subr.bf16.mxu1 %v5418_v0 }
  0x40   :  { %2968 = vmatprep.subr.bf16.mxu0 %v5418_v0 }
  0x41   :  { %2423 = vmatmul.mubr.bf16.vlgmr.msra.gmra.mrb[0].mxu1 %v4961_v35  ;;  %v5047_v35 = vld [vmem:[%s7288_s0 + $0xec] ss:$36 sps:$4 sm:$0xff]  }
  0x42   :  { %2712 = vmatmul.mubr.bf16.vlgmr.msra.gmra.mrb[0].mxu0 %v4964_v36  ;;  %4528 = vmatpush1.bf16.msra.mxu1 %v5447_v2  ;;  %v5005_v2 = vld [vmem:[%s7288_s0 + $0x168] ss:$36 sps:$4 sm:$0xff]   ;;  %v5083_v36 = vld [vmem:[%s7287_s1 + $0x1a0] sm:$0xff]  }
  0x43   :  { %2969 = vmatpush1.bf16.msra.mxu0 %v4967_v37  ;;  %2430 = vmatprep.mubr.bf16.mxu1 %v4969_v38  ;;  %v5049_v37 = vld [vmem:[%s7288_s0 + $0x318] ss:$36 sps:$4 sm:$0xff]   ;;  %v5096_v38 = vld [vmem:[%s7287_s1 + $0x1a8] sm:$0xff]  }
  0x44   :  { %2970 = vmatprep.subr.bf16.mxu0 %v5418_v0  ;;  %2719 = vmatprep.mubr.bf16.mxu0 %v4971_v39  ;;  %v5050_v39 = vld [vmem:[%s7288_s0 + $0xe8] ss:$36 sps:$4 sm:$0xff]  }
  0x45   :  { %4513 = vmatprep.subr.bf16.mxu1 %v5418_v0 }
  0x46   :  { %4529 = vmatpush1.bf16.msra.mxu1 %v5457_v4  ;;  %v5009_v4 = vld [vmem:[%s7288_s0 + $0x1b4] ss:$36 sps:$4 sm:$0xff]  }
  0x47   :  { %2971 = vmatpush1.bf16.msra.mxu0 %v4968_v40  ;;  %4514 = vmatprep.subr.bf16.mxu1 %v5418_v0  ;;  %v5051_v40 = vld [vmem:[%s7288_s0 + $0x364] ss:$36 sps:$4 sm:$0xff]  }
  0x48   :  { %2972 = vmatprep.subr.bf16.mxu0 %v5418_v0 }
  0x49   :  { %2431 = vmatmul.mubr.bf16.gmra.mrb[4].mxu1 %v4973_v41  ;;  %v5053_v41 = vld [vmem:[%s7288_s0 + $0x134] ss:$36 sps:$4 sm:$0xff]  }
  0x4a   :  { %2720 = vmatmul.mubr.bf16.gmra.mrb[4].mxu0 %v4974_v42  ;;  %2438 = vmatprep.mubr.bf16.mxu1 %v4977_v43  ;;  %v5109_v42 = vld [vmem:[%s7287_s1 + $0x1b0] sm:$0xff]   ;;  %v5122_v43 = vld [vmem:[%s7287_s1 + $0x1b8] sm:$0xff]  }
  0x4b   :  { %2973 = vmatpush1.bf16.msra.mxu0 %v4975_v44  ;;  %2727 = vmatprep.mubr.bf16.mxu0 %v4979_v45  ;;  %v5055_v44 = vld [vmem:[%s7288_s0 + $0x360] ss:$36 sps:$4 sm:$0xff]   ;;  %v5056_v45 = vld [vmem:[%s7288_s0 + $0x130] ss:$36 sps:$4 sm:$0xff]  }
  0x4c   :  { %2974 = vmatprep.subr.bf16.mxu0 %v5418_v0  ;;  %4530 = vmatpush1.bf16.msra.mxu1 %v5468_v6  ;;  %v5011_v6 = vld [vmem:[%s7288_s0 + $0x1bc] ss:$36 sps:$4 sm:$0xff]  }
  0x4d   :  { %4515 = vmatprep.subr.bf16.mxu1 %v5418_v0 }
  0x4f   :  { %2975 = vmatpush1.bf16.msra.mxu0 %v4976_v46  ;;  %v5058_v46 = vld [vmem:[%s7288_s0 + $0x3ac] ss:$36 sps:$4 sm:$0xff]  }
  0x50   :  { %2976 = vmatprep.subr.bf16.mxu0 %v5418_v0  ;;  %4531 = vmatpush1.bf16.msra.mxu1 %v5479_v8  ;;  %v5013_v8 = vld [vmem:[%s7288_s0 + $0x1b0] ss:$36 sps:$4 sm:$0xff]  }
  0x51   :  { %2439 = vmatmul.mubr.bf16.gmra.mrb[8].mxu1 %v4981_v47  ;;  %4516 = vmatprep.subr.bf16.mxu1 %v5418_v0  ;;  %v5060_v47 = vld [vmem:[%s7288_s0 + $0x17c] ss:$36 sps:$4 sm:$0xff]  }
  0x52   :  { %2728 = vmatmul.mubr.bf16.gmra.mrb[8].mxu0 %v4982_v48  ;;  %2446 = vmatprep.mubr.bf16.mxu1 %v4985_v50  ;;  %v5135_v48 = vld [vmem:[%s7287_s1 + $0x1c0] sm:$0xff]   ;;  %v5062_v50 = vld [vmem:[%s7288_s0 + $0x3a8] ss:$36 sps:$4 sm:$0xff]  }
  0x53   :  { %2977 = vmatpush1.bf16.msra.mxu0 %v4983_v49  ;;  %2735 = vmatprep.mubr.bf16.mxu0 %v4987_v51  ;;  %v5148_v49 = vld [vmem:[%s7287_s1 + $0x1c8] sm:$0xff]   ;;  %v5063_v51 = vld [vmem:[%s7288_s0 + $0x178] ss:$36 sps:$4 sm:$0xff]  }
  0x54   :  { %2978 = vmatprep.subr.bf16.mxu0 %v5418_v0  ;;  %4532 = vmatpush1.bf16.msra.mxu1 %v5490_v10  ;;  %v5015_v10 = vld [vmem:[%s7287_s1 + $0x160] sm:$0xff]  }
  0x55   :  { %4517 = vmatprep.subr.bf16.mxu1 %v5418_v0 }
  0x57   :  { %2979 = vmatpush1.bf16.msra.mxu0 %v4984_v52  ;;  %v5064_v52 = vld [vmem:[%s7288_s0 + $0x3f4] ss:$36 sps:$4 sm:$0xff]  }
  0x58   :  { %2980 = vmatprep.subr.bf16.mxu0 %v5418_v0  ;;  %4533 = vmatpush1.bf16.msra.mxu1 %v5501_v12  ;;  %v5019_v12 = vld [vmem:[%s7288_s0 + $0x204] ss:$36 sps:$4 sm:$0xff]  }
  0x59   :  { %2447 = vmatmul.mubr.bf16.gmra.mrb[12].mxu1 %v4989_v53  ;;  %4518 = vmatprep.subr.bf16.mxu1 %v5418_v0  ;;  %v5066_v53 = vld [vmem:[%s7288_s0 + $0x1c4] ss:$36 sps:$4 sm:$0xff]  }
  0x5a   :  { %2736 = vmatmul.mubr.bf16.gmra.mrb[12].mxu0 %v4990_v54  ;;  %2454 = vmatprep.mubr.bf16.mxu1 %v4993_v55  ;;  %v5161_v54 = vld [vmem:[%s7287_s1 + $0x1d0] sm:$0xff]  }
  0x5b   :  { %2981 = vmatpush1.bf16.msra.mxu0 %v4991_v56  ;;  %2743 = vmatprep.mubr.bf16.mxu0 %v4995_v57  ;;  %v5068_v55 = vld [vmem:[%s7288_s0 + $0x3f0] ss:$36 sps:$4 sm:$0xff]   ;;  %v5069_v56 = vld [vmem:[%s7288_s0 + $0x1c0] ss:$36 sps:$4 sm:$0xff]  }
  0x5c   :  { %2982 = vmatprep.subr.bf16.mxu0 %v5418_v0  ;;  %4534 = vmatpush1.bf16.msra.mxu1 %v5512_v14  ;;  %v5021_v14 = vld [vmem:[%s7288_s0 + $0x1f8] ss:$36 sps:$4 sm:$0xff]  }
  0x5d   :  { %4519 = vmatprep.subr.bf16.mxu1 %v5418_v0  ;;  %v5071_v57 = vld [vmem:[%s7288_s0 + $0x43c] ss:$36 sps:$4 sm:$0xff]  }
  0x5f   :  { %2983 = vmatpush1.bf16.msra.mxu0 %v4992_v58  ;;  %v5073_v58 = vld [vmem:[%s7288_s0 + $0x20c] ss:$36 sps:$4 sm:$0xff]  }
  0x60   :  { %2984 = vmatprep.subr.bf16.mxu0 %v5418_v0  ;;  %4535 = vmatpush1.bf16.msra.mxu1 %v5523_v16  ;;  %v5025_v16 = vld [vmem:[%s7288_s0 + $0x244] ss:$36 sps:$4 sm:$0xff]  }
  0x61   :  { %2455 = vmatmul.mubr.bf16.gmra.mrb[16].mxu1 %v4997_v59  ;;  %4520 = vmatprep.subr.bf16.mxu1 %v5418_v0  ;;  %v5174_v59 = vld [vmem:[%s7287_s1 + $0x1d8] sm:$0xff]  }
  0x62   :  { %2744 = vmatmul.mubr.bf16.gmra.mrb[16].mxu0 %v4998_v60  ;;  %2462 = vmatprep.mubr.bf16.mxu1 %v5001_v62  ;;  %v5075_v60 = vld [vmem:[%s7288_s0 + $0x438] ss:$36 sps:$4 sm:$0xff]   ;;  %v5077_v62 = vld [vmem:[%s7288_s0 + $0x484] ss:$36 sps:$4 sm:$0xff]  }
  0x63   :  { %2985 = vmatpush1.bf16.msra.mxu0 %v4999_v61  ;;  %2751 = vmatprep.mubr.bf16.mxu0 %v5003_v63  ;;  %v5076_v61 = vld [vmem:[%s7288_s0 + $0x208] ss:$36 sps:$4 sm:$0xff]   ;;  %v5079_v63 = vld [vmem:[%s7288_s0 + $0x254] ss:$36 sps:$4 sm:$0xff]  }
  0x64   :  { %2986 = vmatprep.subr.bf16.mxu0 %v5418_v0  ;;  %4536 = vmatpush1.bf16.msra.mxu1 %v5534_v18  ;;  %v5029_v18 = vld [vmem:[%s7288_s0 + $0x14] ss:$36 sps:$4 sm:$0xff]  }
  0x65   :  { %4521 = vmatprep.subr.bf16.mxu1 %v5418_v0 }
  0x67   :  { %2987 = vmatpush1.bf16.msra.mxu0 %v5000_v1  ;;  %v5081_v1 = vld [vmem:[%s7288_s0 + $0x480] ss:$36 sps:$4 sm:$0xff]  }
  0x68   :  { %2988 = vmatprep.subr.bf16.mxu0 %v5418_v0  ;;  %4537 = vmatpush1.bf16.msra.mxu1 %v5551_v22  ;;  %v5032_v22 = vld [vmem:[%s7288_s0 + $0x28c] ss:$36 sps:$4 sm:$0xff]  }
  0x69   :  { %2463 = vmatmul.mubr.bf16.gmra.mrb[20].mxu1 %v5005_v2  ;;  %4522 = vmatprep.subr.bf16.mxu1 %v5418_v0  ;;  %v5082_v2 = vld [vmem:[%s7288_s0 + $0x250] ss:$36 sps:$4 sm:$0xff]  }
  0x6a   :  { %2752 = vmatmul.mubr.bf16.gmra.mrb[20].mxu0 %v5006_v3  ;;  %2470 = vmatprep.mubr.bf16.mxu1 %v5009_v4  ;;  %v5084_v3 = vld [vmem:[%s7288_s0 + $0x4cc] ss:$36 sps:$4 sm:$0xff]   ;;  %v5086_v4 = vld [vmem:[%s7288_s0 + $0x29c] ss:$36 sps:$4 sm:$0xff]  }
  0x6b   :  { %2989 = vmatpush1.bf16.msra.mxu0 %v5007_v5  ;;  %2759 = vmatprep.mubr.bf16.mxu0 %v5011_v6  ;;  %v5187_v5 = vld [vmem:[%s7287_s1 + $0x1e0] sm:$0xff]  }
  0x6c   :  { %2990 = vmatprep.subr.bf16.mxu0 %v5418_v0  ;;  %4538 = vmatpush1.bf16.msra.mxu1 %v5562_v24  ;;  %v5034_v24 = vld [vmem:[%s7288_s0 + $0x5c] ss:$36 sps:$4 sm:$0xff]  }
  0x6d   :  { %4523 = vmatprep.subr.bf16.mxu1 %v5418_v0  ;;  %v5976_v6 = vld [vmem:[%s7287_s1 + $0x200] sm:$0xff]  }
  0x6f   :  { %2991 = vmatpush1.bf16.msra.mxu0 %v5008_v7  ;;  %v5088_v7 = vld [vmem:[%s7288_s0 + $0x4c8] ss:$36 sps:$4 sm:$0xff]  }
  0x70   :  { %2992 = vmatprep.subr.bf16.mxu0 %v5418_v0  ;;  %4539 = vmatpush1.bf16.msra.mxu1 %v5573_v26  ;;  %v5044_v26 = vld [vmem:[%s7287_s1 + $0x188] sm:$0xff]  }
  0x71   :  { %2471 = vmatmul.mubr.bf16.gmra.mrb[24].mxu1 %v5013_v8  ;;  %4524 = vmatprep.subr.bf16.mxu1 %v5418_v0  ;;  %v5089_v8 = vld [vmem:[%s7288_s0 + $0x298] ss:$36 sps:$4 sm:$0xff]  }
  0x72   :  { %2760 = vmatmul.mubr.bf16.gmra.mrb[24].mxu0 %v5014_v9  ;;  %2478 = vmatprep.mubr.bf16.mxu1 %v5017_v11  ;;  %v5090_v9 = vld [vmem:[%s7288_s0 + $0x514] ss:$36 sps:$4 sm:$0xff]  }
  0x73   :  { %2993 = vmatpush1.bf16.msra.mxu0 %v5015_v10  ;;  %2767 = vmatprep.mubr.bf16.mxu0 %v5019_v12  ;;  %v5092_v10 = vld [vmem:[%s7288_s0 + $0x2e4] ss:$36 sps:$4 sm:$0xff]   ;;  %v5094_v11 = vld [vmem:[%s7288_s0 + $0x510] ss:$36 sps:$4 sm:$0xff]  }
  0x74   :  { %2994 = vmatprep.subr.bf16.mxu0 %v5418_v0  ;;  %4540 = vmatpush1.bf16.msra.mxu1 %v5584_v28  ;;  %v5038_v28 = vld [vmem:[%s7288_s0 + $0x2d4] ss:$36 sps:$4 sm:$0xff]   ;;  %v5095_v12 = vld [vmem:[%s7288_s0 + $0x2e0] ss:$36 sps:$4 sm:$0xff]  }
  0x75   :  { %4525 = vmatprep.subr.bf16.mxu1 %v5418_v0 }
  0x77   :  { %2995 = vmatpush1.bf16.msra.mxu0 %v5016_v13  ;;  %v5097_v13 = vld [vmem:[%s7288_s0 + $0x55c] ss:$36 sps:$4 sm:$0xff]  }
  0x78   :  { %2996 = vmatprep.subr.bf16.mxu0 %v5418_v0  ;;  %4541 = vmatpush1.bf16.msra.mxu1 %v5595_v30  ;;  %v5057_v30 = vld [vmem:[%s7287_s1 + $0x190] sm:$0xff]  }
  0x79   :  { %2479 = vmatmul.mubr.bf16.gmra.mrb[28].mxu1 %v5021_v14  ;;  %4526 = vmatprep.subr.bf16.mxu1 %v5418_v0  ;;  %v5099_v14 = vld [vmem:[%s7288_s0 + $0x32c] ss:$36 sps:$4 sm:$0xff]  }
  0x7a   :  { %2768 = vmatmul.mubr.bf16.gmra.mrb[28].mxu0 %v5022_v15  ;;  %2486 = vmatprep.mubr.bf16.mxu1 %v5025_v16  ;;  %v5201_v15 = vld [vmem:[%s7287_s1 + $0x1e8] sm:$0xff]   ;;  %v5101_v16 = vld [vmem:[%s7288_s0 + $0x558] ss:$36 sps:$4 sm:$0xff]  }
  0x7b   :  { %2997 = vmatpush1.bf16.msra.mxu0 %v5023_v17  ;;  %3000 = vmatprep.mubr.bf16.mxu0 %v5029_v18  ;;  %v5102_v17 = vld [vmem:[%s7288_s0 + $0x328] ss:$36 sps:$4 sm:$0xff]  }
  0x7c   :  { %2998 = vmatprep.subr.bf16.mxu0 %v5418_v0  ;;  %4542 = vmatpush1.bf16.msra.mxu1 %v5606_v32  ;;  %v5070_v32 = vld [vmem:[%s7287_s1 + $0x198] sm:$0xff]   ;;  %v5103_v18 = vld [vmem:[%s7288_s0 + $0x5a4] ss:$36 sps:$4 sm:$0xff]  }
  0x7d   :  { %4527 = vmatprep.subr.bf16.mxu1 %v5418_v0 }
  0x7f   :  { %2999 = vmatpush1.bf16.msra.mxu0 %v5024_v19  ;;  %v5105_v19 = vld [vmem:[%s7288_s0 + $0x374] ss:$36 sps:$4 sm:$0xff]  }
  0x80   :  { %3257 = vmatprep.subr.bf16.mxu0 %v5418_v0  ;;  %4543 = vmatpush1.bf16.msra.mxu1 %v5617_v34  ;;  %v5045_v34 = vld [vmem:[%s7288_s0 + $0x31c] ss:$36 sps:$4 sm:$0xff]  }
  0x81   :  { %2487 = vmatmul.mubr.bf16.gmra.mrb[32].mxu1 %v5030_v20  ;;  %4432 = vmatprep.subr.bf16.mxu1 %v5976_v6  ;;  %v5107_v20 = vld [vmem:[%s7288_s0 + $0x5a0] ss:$36 sps:$4 sm:$0xff]  }
  0x82   :  { %3001 = vmatmul.mubr.bf16.vlgmr.msra.gmra.mrb[0].mxu0 %v5027_v21  ;;  %2494 = vmatprep.mubr.bf16.mxu1 %v5032_v22  ;;  %v5108_v21 = vld [vmem:[%s7288_s0 + $0x370] ss:$36 sps:$4 sm:$0xff]  }
  0x83   :  { %3258 = vmatpush1.bf16.msra.mxu0 %v5031_v23  ;;  %3008 = vmatprep.mubr.bf16.mxu0 %v5034_v24  ;;  %v5110_v22 = vld [vmem:[%s7288_s0 + $0x5ec] ss:$36 sps:$4 sm:$0xff]   ;;  %v5112_v23 = vld [vmem:[%s7288_s0 + $0x3bc] ss:$36 sps:$4 sm:$0xff]  }
  0x84   :  { %3259 = vmatprep.subr.bf16.mxu0 %v5418_v0  ;;  %v5215_v24 = vld [vmem:[%s7287_s1 + $0x1f0] sm:$0xff]  }
  0x87   :  { %3260 = vmatpush1.bf16.msra.mxu0 %v5044_v26  ;;  %v5115_v26 = vld [vmem:[%s7288_s0 + $0x3b8] ss:$36 sps:$4 sm:$0xff]  }
  0x88   :  { %3261 = vmatprep.subr.bf16.mxu0 %v5418_v0 }
  0x89   :  { %2495 = vmatmul.mubr.bf16.gmra.mrb[36].mxu1 %v5036_v25  ;;  %v5114_v25 = vld [vmem:[%s7288_s0 + $0x5e8] ss:$36 sps:$4 sm:$0xff]  }
  0x8a   :  { %3009 = vmatmul.mubr.bf16.gmra.mrb[4].mxu0 %v5037_v27  ;;  %2502 = vmatprep.mubr.bf16.mxu1 %v5038_v28  ;;  %v5116_v27 = vld [vmem:[%s7288_s0 + $0x634] ss:$36 sps:$4 sm:$0xff]   ;;  %v5118_v28 = vld [vmem:[%s7288_s0 + $0x404] ss:$36 sps:$4 sm:$0xff]  }
  0x8b   :  { %3016 = vmatprep.mubr.bf16.mxu0 %v5040_v29  ;;  %3262 = vmatpush1.bf16.msra.mxu0 %v5057_v30  ;;  %v5121_v29 = vld [vmem:[%s7288_s0 + $0x400] ss:$36 sps:$4 sm:$0xff]  }
  0x8c   :  { %3263 = vmatprep.subr.bf16.mxu0 %v5418_v0  ;;  %v5123_v30 = vld [vmem:[%s7288_s0 + $0x67c] ss:$36 sps:$4 sm:$0xff]  }
  0x8f   :  { %3264 = vmatpush1.bf16.msra.mxu0 %v5070_v32  ;;  %v5228_v32 = vld [vmem:[%s7287_s1 + $0x1f8] sm:$0xff]  }
  0x90   :  { %3265 = vmatprep.subr.bf16.mxu0 %v5418_v0 }
  0x91   :  { %2503 = vmatmul.mubr.bf16.gmra.mrb[40].mxu1 %v5042_v31  ;;  %v5125_v31 = vld [vmem:[%s7288_s0 + $0x44c] ss:$36 sps:$4 sm:$0xff]  }
  0x92   :  { %3017 = vmatmul.mubr.bf16.gmra.mrb[8].mxu0 %v5043_v33  ;;  %2510 = vmatprep.mubr.bf16.mxu1 %v5045_v34  ;;  %v5127_v33 = vld [vmem:[%s7288_s0 + $0x678] ss:$36 sps:$4 sm:$0xff]   ;;  %v5128_v34 = vld [vmem:[%s7288_s0 + $0x448] ss:$36 sps:$4 sm:$0xff]  }
  0x93   :  { %3024 = vmatprep.mubr.bf16.mxu0 %v5047_v35  ;;  %3266 = vmatpush1.bf16.msra.mxu0 %v5083_v36  ;;  %v5129_v35 = vld [vmem:[%s7288_s0 + $0x6c4] ss:$36 sps:$4 sm:$0xff]   ;;  %v5131_v36 = vld [vmem:[%s7288_s0 + $0x494] ss:$36 sps:$4 sm:$0xff]  }
  0x94   :  { %3267 = vmatprep.subr.bf16.mxu0 %v5418_v0 }
  0x97   :  { %3268 = vmatpush1.bf16.msra.mxu0 %v5096_v38  ;;  %v5134_v38 = vld [vmem:[%s7288_s0 + $0x490] ss:$36 sps:$4 sm:$0xff]  }
  0x98   :  { %3269 = vmatprep.subr.bf16.mxu0 %v5418_v0 }
  0x99   :  { %2511 = vmatmul.mubr.bf16.gmra.mrb[44].mxu1 %v5049_v37  ;;  %v5133_v37 = vld [vmem:[%s7288_s0 + $0x6c0] ss:$36 sps:$4 sm:$0xff]  }
  0x9a   :  { %3025 = vmatmul.mubr.bf16.gmra.mrb[12].mxu0 %v5050_v39  ;;  %2518 = vmatprep.mubr.bf16.mxu1 %v5051_v40  ;;  %v5136_v39 = vld [vmem:[%s7288_s0 + $0x70c] ss:$36 sps:$4 sm:$0xff]   ;;  %v5138_v40 = vld [vmem:[%s7288_s0 + $0x4dc] ss:$36 sps:$4 sm:$0xff]  }
  0x9b   :  { %3032 = vmatprep.mubr.bf16.mxu0 %v5053_v41  ;;  %3270 = vmatpush1.bf16.msra.mxu0 %v5109_v42  ;;  %v5140_v41 = vld [vmem:[%s7288_s0 + $0x708] ss:$36 sps:$4 sm:$0xff]   ;;  %v5141_v42 = vld [vmem:[%s7288_s0 + $0x4d8] ss:$36 sps:$4 sm:$0xff]  }
  0x9c   :  { %3271 = vmatprep.subr.bf16.mxu0 %v5418_v0 }
  0x9f   :  { %3272 = vmatpush1.bf16.msra.mxu0 %v5122_v43  ;;  %v5142_v43 = vld [vmem:[%s7288_s0 + $0x754] ss:$36 sps:$4 sm:$0xff]  }
  0xa0   :  { %3273 = vmatprep.subr.bf16.mxu0 %v5418_v0 }
  0xa1   :  { %2519 = vmatmul.mubr.bf16.gmra.mrb[48].mxu1 %v5055_v44  ;;  %v5144_v44 = vld [vmem:[%s7288_s0 + $0x524] ss:$36 sps:$4 sm:$0xff]  }
  0xa2   :  { %3033 = vmatmul.mubr.bf16.gmra.mrb[16].mxu0 %v5056_v45  ;;  %2526 = vmatprep.mubr.bf16.mxu1 %v5058_v46  ;;  %v5146_v45 = vld [vmem:[%s7288_s0 + $0x750] ss:$36 sps:$4 sm:$0xff]   ;;  %v5147_v46 = vld [vmem:[%s7288_s0 + $0x520] ss:$36 sps:$4 sm:$0xff]  }
  0xa3   :  { %3040 = vmatprep.mubr.bf16.mxu0 %v5060_v47  ;;  %3274 = vmatpush1.bf16.msra.mxu0 %v5135_v48  ;;  %v5149_v47 = vld [vmem:[%s7288_s0 + $0x79c] ss:$36 sps:$4 sm:$0xff]   ;;  %v5151_v48 = vld [vmem:[%s7288_s0 + $0x56c] ss:$36 sps:$4 sm:$0xff]  }
  0xa4   :  { %3275 = vmatprep.subr.bf16.mxu0 %v5418_v0 }
  0xa7   :  { %3276 = vmatpush1.bf16.msra.mxu0 %v5148_v49 }
  0xa8   :  { %3277 = vmatprep.subr.bf16.mxu0 %v5418_v0 }
  0xa9   :  { %2527 = vmatmul.mubr.bf16.gmra.mrb[52].mxu1 %v5062_v50 }
  0xaa   :  { %3041 = vmatmul.mubr.bf16.gmra.mrb[20].mxu0 %v5063_v51  ;;  %2534 = vmatprep.mubr.bf16.mxu1 %v5064_v52  ;;  %v5153_v51 = vld [vmem:[%s7288_s0 + $0x798] ss:$36 sps:$4 sm:$0xff]  }
  0xab   :  { %3048 = vmatprep.mubr.bf16.mxu0 %v5066_v53  ;;  %3278 = vmatpush1.bf16.msra.mxu0 %v5161_v54  ;;  %v5154_v53 = vld [vmem:[%s7288_s0 + $0x568] ss:$36 sps:$4 sm:$0xff]  }
  0xac   :  { %3279 = vmatprep.subr.bf16.mxu0 %v5418_v0  ;;  %v5155_v54 = vld [vmem:[%s7288_s0 + $0x7e4] ss:$36 sps:$4 sm:$0xff]  }
  0xaf   :  { %3280 = vmatpush1.bf16.msra.mxu0 %v5174_v59  ;;  %v5159_v59 = vld [vmem:[%s7288_s0 + $0x7e0] ss:$36 sps:$4 sm:$0xff]  }
  0xb0   :  { %3281 = vmatprep.subr.bf16.mxu0 %v5418_v0 }
  0xb1   :  { %2535 = vmatmul.mubr.bf16.gmra.mrb[56].mxu1 %v5068_v55 }
  0xb2   :  { %3049 = vmatmul.mubr.bf16.gmra.mrb[24].mxu0 %v5069_v56  ;;  %2542 = vmatprep.mubr.bf16.mxu1 %v5071_v57  ;;  %v5157_v56 = vld [vmem:[%s7288_s0 + $0x5b4] ss:$36 sps:$4 sm:$0xff]  }
  0xb3   :  { %3056 = vmatprep.mubr.bf16.mxu0 %v5073_v58  ;;  %3282 = vmatpush1.bf16.msra.mxu0 %v5187_v5 }
  0xb4   :  { %3283 = vmatprep.subr.bf16.mxu0 %v5418_v0 }
  0xb7   :  { %3284 = vmatpush1.bf16.msra.mxu0 %v5201_v15  ;;  %v5173_v15 = vld [vmem:[%s7288_s0 + $0x640] ss:$36 sps:$4 sm:$0xff]  }
  0xb8   :  { %3285 = vmatprep.subr.bf16.mxu0 %v5418_v0 }
  0xb9   :  { %2543 = vmatmul.mubr.bf16.gmra.mrb[60].mxu1 %v5075_v60 }
  0xba   :  { %3057 = vmatmul.mubr.bf16.gmra.mrb[28].mxu0 %v5076_v61  ;;  %2550 = vmatprep.mubr.bf16.mxu1 %v5077_v62  ;;  %v5160_v61 = vld [vmem:[%s7288_s0 + $0x5b0] ss:$36 sps:$4 sm:$0xff]  }
  0xbb   :  { %3064 = vmatprep.mubr.bf16.mxu0 %v5079_v63  ;;  %3286 = vmatpush1.bf16.msra.mxu0 %v5215_v24  ;;  %v5162_v62 = vld [vmem:[%s7288_s0 + $0x82c] ss:$36 sps:$4 sm:$0xff]  }
  0xbc   :  { %3287 = vmatprep.subr.bf16.mxu0 %v5418_v0  ;;  %v5120_v0 = vld [vmem:[%s7288_s0 + $0x630] ss:$36 sps:$4 sm:$0xff]  }
  0xbd   :  { %v5183_v24 = vld [vmem:[%s7288_s0 + $0x24c] ss:$36 sps:$4 sm:$0xff]  }
  0xbf   :  { %3288 = vmatpush1.bf16.msra.mxu0 %v5228_v32  ;;  %v5189_v32 = vld [vmem:[%s7288_s0 + $0x294] ss:$36 sps:$4 sm:$0xff]  }
  0xc1   :  { %2551 = vmatmul.mubr.bf16.gmra.mrb[64].mxu1 %v5081_v1  ;;  %v5164_v1 = vld [vmem:[%s7288_s0 + $0x5fc] ss:$36 sps:$4 sm:$0xff]  }
  0xc2   :  { %3065 = vmatmul.mubr.bf16.gmra.mrb[32].mxu0 %v5082_v2  ;;  %2558 = vmatprep.mubr.bf16.mxu1 %v5084_v3 }
  0xc3   :  { %3072 = vmatprep.mubr.bf16.mxu0 %v5086_v4  ;;  %v5166_v4 = vld [vmem:[%s7288_s0 + $0x828] ss:$36 sps:$4 sm:$0xff]  }
  0xc9   :  { %2559 = vmatmul.mubr.bf16.gmra.mrb[68].mxu1 %v5088_v7  ;;  %v5167_v7 = vld [vmem:[%s7288_s0 + $0x5f8] ss:$36 sps:$4 sm:$0xff]  }
  0xca   :  { %3073 = vmatmul.mubr.bf16.gmra.mrb[36].mxu0 %v5089_v8  ;;  %2566 = vmatprep.mubr.bf16.mxu1 %v5090_v9  ;;  %v5168_v8 = vld [vmem:[%s7288_s0 + $0x874] ss:$36 sps:$4 sm:$0xff]  }
  0xcb   :  { %3080 = vmatprep.mubr.bf16.mxu0 %v5092_v10  ;;  %v5170_v10 = vld [vmem:[%s7288_s0 + $0x644] ss:$36 sps:$4 sm:$0xff]  }
  0xd1   :  { %2567 = vmatmul.mubr.bf16.gmra.mrb[72].mxu1 %v5094_v11 }
  0xd2   :  { %3081 = vmatmul.mubr.bf16.gmra.mrb[40].mxu0 %v5095_v12  ;;  %2574 = vmatprep.mubr.bf16.mxu1 %v5097_v13  ;;  %v5172_v13 = vld [vmem:[%s7288_s0 + $0x870] ss:$36 sps:$4 sm:$0xff]  }
  0xd3   :  { %3088 = vmatprep.mubr.bf16.mxu0 %v5099_v14 }
  0xd9   :  { %2575 = vmatmul.mubr.bf16.gmra.mrb[76].mxu1 %v5101_v16  ;;  %v5175_v16 = vld [vmem:[%s7288_s0 + $0x8bc] ss:$36 sps:$4 sm:$0xff]  }
  0xda   :  { %3089 = vmatmul.mubr.bf16.gmra.mrb[44].mxu0 %v5102_v17  ;;  %2582 = vmatprep.mubr.bf16.mxu1 %v5103_v18  ;;  %v5177_v18 = vld [vmem:[%s7288_s0 + $0x68c] ss:$36 sps:$4 sm:$0xff]  }
  0xdb   :  { %3096 = vmatprep.mubr.bf16.mxu0 %v5105_v19 }
  0xe1   :  { %2583 = vmatmul.mubr.bf16.gmra.mrb[80].mxu1 %v5107_v20 }
  0xe2   :  { %3097 = vmatmul.mubr.bf16.gmra.mrb[48].mxu0 %v5108_v21  ;;  %2590 = vmatprep.mubr.bf16.mxu1 %v5110_v22  ;;  %v5179_v21 = vld [vmem:[%s7288_s0 + $0x8b8] ss:$36 sps:$4 sm:$0xff]  }
  0xe3   :  { %3104 = vmatprep.mubr.bf16.mxu0 %v5112_v23  ;;  %v5180_v23 = vld [vmem:[%s7288_s0 + $0x688] ss:$36 sps:$4 sm:$0xff]  }
  0xe9   :  { %2591 = vmatmul.mubr.bf16.gmra.mrb[84].mxu1 %v5114_v25 }
  0xea   :  { %3105 = vmatmul.mubr.bf16.gmra.mrb[52].mxu0 %v5115_v26  ;;  %2598 = vmatprep.mubr.bf16.mxu1 %v5116_v27  ;;  %v5184_v26 = vld [vmem:[%s7288_s0 + $0x6d4] ss:$36 sps:$4 sm:$0xff]  }
  0xeb   :  { %3112 = vmatprep.mubr.bf16.mxu0 %v5118_v28 }
  0xf1   :  { %2599 = vmatmul.mubr.bf16.gmra.mrb[88].mxu1 %v5120_v0  ;;  %v5181_v0 = vld [vmem:[%s7288_s0 + $0x248] ss:$36 sps:$4 sm:$0xff]  }
  0xf2   :  { %3113 = vmatmul.mubr.bf16.gmra.mrb[56].mxu0 %v5121_v29  ;;  %2606 = vmatprep.mubr.bf16.mxu1 %v5123_v30  ;;  %v5186_v30 = vld [vmem:[%s7288_s0 + $0x6d0] ss:$36 sps:$4 sm:$0xff]  }
  0xf3   :  { %3120 = vmatprep.mubr.bf16.mxu0 %v5125_v31 }
  0xf9   :  { %2607 = vmatmul.mubr.bf16.gmra.mrb[92].mxu1 %v5127_v33  ;;  %v5191_v33 = vld [vmem:[%s7288_s0 + $0x71c] ss:$36 sps:$4 sm:$0xff]  }
  0xfa   :  { %3121 = vmatmul.mubr.bf16.gmra.mrb[60].mxu0 %v5128_v34  ;;  %2614 = vmatprep.mubr.bf16.mxu1 %v5129_v35  ;;  %v5208_v34 = vld [vmem:[%s7287_s1 + $0x208] sm:$0xff]   ;;  %v5229_v35 = vld [vmem:[%s7287_s1 + $0x210] sm:$0xff]  }
  0xfb   :  { %3128 = vmatprep.mubr.bf16.mxu0 %v5131_v36 }
 0x101   :  { %2615 = vmatmul.mubr.bf16.gmra.mrb[96].mxu1 %v5133_v37 }
 0x102   :  { %3129 = vmatmul.mubr.bf16.gmra.mrb[64].mxu0 %v5134_v38  ;;  %2622 = vmatprep.mubr.bf16.mxu1 %v5136_v39  ;;  %v5193_v38 = vld [vmem:[%s7288_s0 + $0x290] ss:$36 sps:$4 sm:$0xff]  }
 0x103   :  { %3136 = vmatprep.mubr.bf16.mxu0 %v5138_v40  ;;  %v5195_v40 = vld [vmem:[%s7288_s0 + $0x2dc] ss:$36 sps:$4 sm:$0xff]  }
 0x109   :  { %2623 = vmatmul.mubr.bf16.gmra.mrb[100].mxu1 %v5140_v41 }
 0x10a   :  { %3137 = vmatmul.mubr.bf16.gmra.mrb[68].mxu0 %v5141_v42  ;;  %2630 = vmatprep.mubr.bf16.mxu1 %v5142_v43  ;;  %v5197_v42 = vld [vmem:[%s7288_s0 + $0x764] ss:$36 sps:$4 sm:$0xff]   ;;  %v5248_v43 = vld [vmem:[%s7287_s1 + $0x218] sm:$0xff]  }
 0x10b   :  { %3144 = vmatprep.mubr.bf16.mxu0 %v5144_v44 }
 0x111   :  { %2631 = vmatmul.mubr.bf16.gmra.mrb[104].mxu1 %v5146_v45  ;;  %v5267_v45 = vld [vmem:[%s7287_s1 + $0x220] sm:$0xff]  }
 0x112   :  { %3145 = vmatmul.mubr.bf16.gmra.mrb[72].mxu0 %v5147_v46  ;;  %2638 = vmatprep.mubr.bf16.mxu1 %v5149_v47  ;;  %v5199_v47 = vld [vmem:[%s7288_s0 + $0x2d8] ss:$36 sps:$4 sm:$0xff]  }
 0x113   :  { %3152 = vmatprep.mubr.bf16.mxu0 %v5151_v48 }
 0x114   :  { %v6111_v49 = vpop.f32.mrb[0].mxu1 }
 0x115   :  { %v2426_v50 = vpop.f32.mrb[1].mxu1 }
 0x116   :  { %v6116_v52 = vpop.f32.mrb[2].mxu1  ;;  %v5200_v50 = vld [vmem:[%s7288_s0 + $0x760] ss:$36 sps:$4 sm:$0xff]  }
 0x117   :  { %v2429_v55 = vpop.f32.mrb[3].mxu1 }
 0x118   :  { %v5286_v55 = vld [vmem:[%s7287_s1 + $0x228] sm:$0xff]  }
 0x119   :  { %2639 = vmatmul.mubr.bf16.gmra.mrb[108].mxu1 %v5153_v51  ;;  %v5202_v51 = vld [vmem:[%s7288_s0 + $0x324] ss:$36 sps:$4 sm:$0xff]  }
 0x11a   :  { %3153 = vmatmul.mubr.bf16.gmra.mrb[76].mxu0 %v5154_v53  ;;  %2646 = vmatprep.mubr.bf16.mxu1 %v5155_v54  ;;  %v5204_v54 = vld [vmem:[%s7288_s0 + $0x7ac] ss:$36 sps:$4 sm:$0xff]  }
 0x11b   :  { %3160 = vmatprep.mubr.bf16.mxu0 %v5157_v56  ;;  %v5305_v56 = vld [vmem:[%s7287_s1 + $0x230] sm:$0xff]  }
 0x11c   :  { %v6127_v57 = vpop.f32.mrb[4].mxu1 }
 0x11d   :  { %v2434_v58 = vpop.f32.mrb[5].mxu1 }
 0x11e   :  { %v6132_v60 = vpop.f32.mrb[6].mxu1  ;;  %v5206_v58 = vld [vmem:[%s7288_s0 + $0x320] ss:$36 sps:$4 sm:$0xff]  }
 0x11f   :  { %v2437_v63 = vpop.f32.mrb[7].mxu1 }
 0x120   :  { %v5213_v63 = vld [vmem:[%s7288_s0 + $0x368] ss:$36 sps:$4 sm:$0xff]  }
 0x121   :  { %2647 = vmatmul.mubr.bf16.gmra.mrb[112].mxu1 %v5159_v59  ;;  %v5207_v59 = vld [vmem:[%s7288_s0 + $0x7a8] ss:$36 sps:$4 sm:$0xff]  }
 0x122   :  { %3161 = vmatmul.mubr.bf16.gmra.mrb[80].mxu0 %v5160_v61  ;;  %2654 = vmatprep.mubr.bf16.mxu1 %v5162_v62  ;;  %v5209_v61 = vld [vmem:[%s7288_s0 + $0x36c] ss:$36 sps:$4 sm:$0xff]   ;;  %v5211_v62 = vld [vmem:[%s7288_s0 + $0x7f4] ss:$36 sps:$4 sm:$0xff]  }
 0x123   :  { %3168 = vmatprep.mubr.bf16.mxu0 %v5164_v1  ;;  %v5214_v1 = vld [vmem:[%s7288_s0 + $0x7f0] ss:$36 sps:$4 sm:$0xff]  }
 0x124   :  { %v6143_v2 = vpop.f32.mrb[8].mxu1 }
 0x125   :  { %v2442_v3 = vpop.f32.mrb[9].mxu1 }
 0x126   :  { %v6148_v5 = vpop.f32.mrb[10].mxu1  ;;  %v5216_v3 = vld [vmem:[%s7288_s0 + $0x3b4] ss:$36 sps:$4 sm:$0xff]  }
 0x127   :  { %v2445_v9 = vpop.f32.mrb[11].mxu1 }
 0x128   :  { %v5222_v9 = vld [vmem:[%s7288_s0 + $0x3fc] ss:$36 sps:$4 sm:$0xff]  }
 0x129   :  { %2655 = vmatmul.mubr.bf16.gmra.mrb[116].mxu1 %v5166_v4  ;;  %v5218_v4 = vld [vmem:[%s7288_s0 + $0x83c] ss:$36 sps:$4 sm:$0xff]  }
 0x12a   :  { %3169 = vmatmul.mubr.bf16.gmra.mrb[84].mxu0 %v5167_v7  ;;  %2662 = vmatprep.mubr.bf16.mxu1 %v5168_v8  ;;  %v5220_v7 = vld [vmem:[%s7288_s0 + $0x3b0] ss:$36 sps:$4 sm:$0xff]   ;;  %v5221_v8 = vld [vmem:[%s7288_s0 + $0x838] ss:$36 sps:$4 sm:$0xff]  }
 0x12b   :  { %3176 = vmatprep.mubr.bf16.mxu0 %v5170_v10  ;;  %v5224_v10 = vld [vmem:[%s7288_s0 + $0x884] ss:$36 sps:$4 sm:$0xff]  }
 0x12c   :  { %v6159_v11 = vpop.f32.mrb[12].mxu1 }
 0x12d   :  { %v2450_v12 = vpop.f32.mrb[13].mxu1 }
 0x12e   :  { %v6164_v14 = vpop.f32.mrb[14].mxu1  ;;  %v5324_v12 = vld [vmem:[%s7287_s1 + $0x238] sm:$0xff]  }
 0x12f   :  { %v2453_v17 = vpop.f32.mrb[15].mxu1 }
 0x130   :  { %v5232_v17 = vld [vmem:[%s7288_s0 + $0x8cc] ss:$36 sps:$4 sm:$0xff]  }
 0x131   :  { %2663 = vmatmul.mubr.bf16.gmra.mrb[120].mxu1 %v5172_v13  ;;  %v5226_v13 = vld [vmem:[%s7288_s0 + $0x3f8] ss:$36 sps:$4 sm:$0xff]  }
 0x132   :  { %3177 = vmatmul.mubr.bf16.gmra.mrb[88].mxu0 %v5173_v15  ;;  %2670 = vmatprep.mubr.bf16.mxu1 %v5175_v16  ;;  %v5227_v15 = vld [vmem:[%s7288_s0 + $0x880] ss:$36 sps:$4 sm:$0xff]  }
 0x133   :  { %3184 = vmatprep.mubr.bf16.mxu0 %v5177_v18  ;;  %v5230_v16 = vld [vmem:[%s7288_s0 + $0x444] ss:$36 sps:$4 sm:$0xff]  }
 0x134   :  { %v6175_v19 = vpop.f32.mrb[16].mxu1  ;;  %v5234_v18 = vld [vmem:[%s7288_s0 + $0x440] ss:$36 sps:$4 sm:$0xff]  }
 0x135   :  { %v2458_v20 = vpop.f32.mrb[17].mxu1 }
 0x136   :  { %v6180_v22 = vpop.f32.mrb[18].mxu1  ;;  %v5235_v20 = vld [vmem:[%s7288_s0 + $0x8c8] ss:$36 sps:$4 sm:$0xff]  }
 0x137   :  { %v2461_v25 = vpop.f32.mrb[19].mxu1 }
 0x138   :  { %v5238_v25 = vld [vmem:[%s7288_s0 + $0x18] ss:$36 sps:$4 sm:$0xff]  }
 0x139   :  { %2671 = vmatmul.mubr.bf16.gmra.mrb[124].mxu1 %v5179_v21  ;;  %v5236_v21 = vld [vmem:[%s7288_s0 + $0x48c] ss:$36 sps:$4 sm:$0xff]  }
 0x13a   :  { %3185 = vmatmul.mubr.bf16.gmra.mrb[92].mxu0 %v5180_v23  ;;  %2775 = vmatprep.mubr.bf16.mxu1 %v5183_v24  ;;  %v5240_v23 = vld [vmem:[%s7288_s0 + $0x1c] ss:$36 sps:$4 sm:$0xff]   ;;  %v5241_v24 = vld [vmem:[%s7288_s0 + $0x488] ss:$36 sps:$4 sm:$0xff]  }
 0x13b   :  { %3192 = vmatprep.mubr.bf16.mxu0 %v5184_v26  ;;  %v5242_v26 = vld [vmem:[%s7288_s0 + $0x4d4] ss:$36 sps:$4 sm:$0xff]  }
 0x13c   :  { %v6191_v27 = vpop.f32.mrb[20].mxu1 }
 0x13d   :  { %v2466_v28 = vpop.f32.mrb[21].mxu1 }
 0x13e   :  { %v6196_v29 = vpop.f32.mrb[22].mxu1  ;;  %v5244_v28 = vld [vmem:[%s7288_s0 + $0x64] ss:$36 sps:$4 sm:$0xff]  }
 0x13f   :  { %v2469_v31 = vpop.f32.mrb[23].mxu1 }
 0x140   :  { %v5249_v31 = vld [vmem:[%s7288_s0 + $0x51c] ss:$36 sps:$4 sm:$0xff]  }
 0x141   :  { %2776 = vmatmul.mubr.bf16.vlgmr.msra.gmra.mrb[32].mxu1 %v5181_v0  ;;  %v5246_v0 = vld [vmem:[%s7288_s0 + $0x4d0] ss:$36 sps:$4 sm:$0xff]  }
 0x142   :  { %3193 = vmatmul.mubr.bf16.gmra.mrb[96].mxu0 %v5186_v30  ;;  %4433 = vmatpush3.bf16.msra.mxu1 %v5976_v6  ;;  %v5194_v6 = vld [vmem:[%s7288_s0 + $0x718] ss:$36 sps:$4 sm:$0xff]   ;;  %v5247_v30 = vld [vmem:[%s7288_s0 + $0x60] ss:$36 sps:$4 sm:$0xff]  }
 0x143   :  { %2783 = vmatprep.mubr.bf16.mxu1 %v5189_v32  ;;  %3200 = vmatprep.mubr.bf16.mxu0 %v5191_v33  ;;  %v5251_v32 = vld [vmem:[%s7288_s0 + $0xac] ss:$36 sps:$4 sm:$0xff]   ;;  %v5253_v33 = vld [vmem:[%s7288_s0 + $0x518] ss:$36 sps:$4 sm:$0xff]  }
 0x144   :  { %v6214_v36 = vpop.f32.mrb[24].mxu1  ;;  %4434 = vmatprep.subr.bf16.mxu1 %v5208_v34 }
 0x145   :  { %v2474_v37 = vpop.f32.mrb[25].mxu1 }
 0x146   :  { %v6219_v39 = vpop.f32.mrb[26].mxu1  ;;  %4435 = vmatpush3.bf16.msra.mxu1 %v5208_v34  ;;  %v5254_v34 = vld [vmem:[%s7288_s0 + $0xa8] ss:$36 sps:$4 sm:$0xff]   ;;  %v5257_v37 = vld [vmem:[%s7288_s0 + $0xf4] ss:$36 sps:$4 sm:$0xff]  }
 0x147   :  { %v2477_v41 = vpop.f32.mrb[27].mxu1  ;;  %4436 = vmatprep.subr.bf16.mxu1 %v5229_v35 }
 0x148   :  { %v5263_v41 = vld [vmem:[%s7288_s0 + $0x13c] ss:$36 sps:$4 sm:$0xff]  }
 0x149   :  { %2784 = vmatmul.mubr.bf16.gmra.mrb[36].mxu1 %v5193_v38  ;;  %v5259_v38 = vld [vmem:[%s7288_s0 + $0x560] ss:$36 sps:$4 sm:$0xff]  }
 0x14a   :  { %3201 = vmatmul.mubr.bf16.gmra.mrb[100].mxu0 %v5194_v6  ;;  %2791 = vmatprep.mubr.bf16.mxu1 %v5195_v40  ;;  %v5260_v6 = vld [vmem:[%s7288_s0 + $0xf0] ss:$36 sps:$4 sm:$0xff]  }
 0x14b   :  { %3208 = vmatprep.mubr.bf16.mxu0 %v5197_v42  ;;  %4437 = vmatpush3.bf16.msra.mxu1 %v5229_v35  ;;  %v5255_v35 = vld [vmem:[%s7288_s0 + $0x564] ss:$36 sps:$4 sm:$0xff]   ;;  %v5261_v40 = vld [vmem:[%s7288_s0 + $0x5ac] ss:$36 sps:$4 sm:$0xff]  }
 0x14c   :  { %v6233_v44 = vpop.f32.mrb[28].mxu1  ;;  %4438 = vmatprep.subr.bf16.mxu1 %v5248_v43  ;;  %v5265_v42 = vld [vmem:[%s7288_s0 + $0x5a8] ss:$36 sps:$4 sm:$0xff]  }
 0x14d   :  { %v2482_v46 = vpop.f32.mrb[29].mxu1 }
 0x14e   :  { %v6241_v48 = vpop.f32.mrb[30].mxu1  ;;  %v5270_v46 = vld [vmem:[%s7288_s0 + $0x184] ss:$36 sps:$4 sm:$0xff]  }
 0x14f   :  { %v2485_v53 = vpop.f32.mrb[31].mxu1  ;;  %4439 = vmatpush3.bf16.msra.mxu1 %v5248_v43  ;;  %v5266_v43 = vld [vmem:[%s7288_s0 + $0x138] ss:$36 sps:$4 sm:$0xff]  }
 0x150   :  { %4440 = vmatprep.subr.bf16.mxu1 %v5267_v45  ;;  %v5276_v53 = vld [vmem:[%s7288_s0 + $0x1cc] ss:$36 sps:$4 sm:$0xff]  }
 0x151   :  { %2792 = vmatmul.mubr.bf16.gmra.mrb[40].mxu1 %v5199_v47  ;;  %v5272_v47 = vld [vmem:[%s7288_s0 + $0x5f0] ss:$36 sps:$4 sm:$0xff]  }
 0x152   :  { %3209 = vmatmul.mubr.bf16.gmra.mrb[104].mxu0 %v5200_v50  ;;  %2799 = vmatprep.mubr.bf16.mxu1 %v5202_v51  ;;  %v5273_v50 = vld [vmem:[%s7288_s0 + $0x180] ss:$36 sps:$4 sm:$0xff]  }
 0x153   :  { %3216 = vmatprep.mubr.bf16.mxu0 %v5204_v54  ;;  %4441 = vmatpush3.bf16.msra.mxu1 %v5267_v45  ;;  %v5268_v45 = vld [vmem:[%s7288_s0 + $0x5f4] ss:$36 sps:$4 sm:$0xff]   ;;  %v5274_v51 = vld [vmem:[%s7288_s0 + $0x63c] ss:$36 sps:$4 sm:$0xff]  }
 0x154   :  { %4442 = vmatprep.subr.bf16.mxu1 %v5286_v55  ;;  %v5278_v54 = vld [vmem:[%s7288_s0 + $0x638] ss:$36 sps:$4 sm:$0xff]  }
 0x157   :  { %4443 = vmatpush3.bf16.msra.mxu1 %v5286_v55  ;;  %v5279_v55 = vld [vmem:[%s7288_s0 + $0x1c8] ss:$36 sps:$4 sm:$0xff]  }
 0x158   :  { %4444 = vmatprep.subr.bf16.mxu1 %v5305_v56 }
 0x159   :  { %2800 = vmatmul.mubr.bf16.gmra.mrb[44].mxu1 %v5206_v58  ;;  %v5282_v58 = vld [vmem:[%s7288_s0 + $0x214] ss:$36 sps:$4 sm:$0xff]  }
 0x15a   :  { %3217 = vmatmul.mubr.bf16.gmra.mrb[108].mxu0 %v5207_v59  ;;  %2807 = vmatprep.mubr.bf16.mxu1 %v5209_v61  ;;  %v5284_v59 = vld [vmem:[%s7288_s0 + $0x680] ss:$36 sps:$4 sm:$0xff]   ;;  %v5285_v61 = vld [vmem:[%s7288_s0 + $0x210] ss:$36 sps:$4 sm:$0xff]  }
 0x15b   :  { %3224 = vmatprep.mubr.bf16.mxu0 %v5211_v62  ;;  %4445 = vmatpush3.bf16.msra.mxu1 %v5305_v56  ;;  %v5280_v56 = vld [vmem:[%s7288_s0 + $0x684] ss:$36 sps:$4 sm:$0xff]   ;;  %v5287_v62 = vld [vmem:[%s7288_s0 + $0x6cc] ss:$36 sps:$4 sm:$0xff]  }
 0x15c   :  { %4446 = vmatprep.subr.bf16.mxu1 %v5324_v12 }
 0x15f   :  { %4447 = vmatpush3.bf16.msra.mxu1 %v5324_v12  ;;  %v5301_v12 = vld [vmem:[%s7288_s0 + $0x2ec] ss:$36 sps:$4 sm:$0xff]  }
 0x161   :  { %2808 = vmatmul.mubr.bf16.gmra.mrb[48].mxu1 %v5213_v63  ;;  %v5289_v63 = vld [vmem:[%s7288_s0 + $0x25c] ss:$36 sps:$4 sm:$0xff]  }
 0x162   :  { %3225 = vmatmul.mubr.bf16.gmra.mrb[112].mxu0 %v5214_v1  ;;  %2815 = vmatprep.mubr.bf16.mxu1 %v5216_v3  ;;  %v5291_v1 = vld [vmem:[%s7288_s0 + $0x6c8] ss:$36 sps:$4 sm:$0xff]   ;;  %v5292_v3 = vld [vmem:[%s7288_s0 + $0x258] ss:$36 sps:$4 sm:$0xff]  }
 0x163   :  { %3232 = vmatprep.mubr.bf16.mxu0 %v5218_v4  ;;  %v5293_v4 = vld [vmem:[%s7288_s0 + $0x714] ss:$36 sps:$4 sm:$0xff]  }
 0x169   :  { %2816 = vmatmul.mubr.bf16.gmra.mrb[52].mxu1 %v5220_v7  ;;  %v5295_v7 = vld [vmem:[%s7288_s0 + $0x2a4] ss:$36 sps:$4 sm:$0xff]  }
 0x16a   :  { %3233 = vmatmul.mubr.bf16.gmra.mrb[116].mxu0 %v5221_v8  ;;  %2823 = vmatprep.mubr.bf16.mxu1 %v5222_v9  ;;  %v5297_v8 = vld [vmem:[%s7288_s0 + $0x710] ss:$36 sps:$4 sm:$0xff]   ;;  %v5298_v9 = vld [vmem:[%s7288_s0 + $0x2a0] ss:$36 sps:$4 sm:$0xff]  }
 0x16b   :  { %3240 = vmatprep.mubr.bf16.mxu0 %v5224_v10  ;;  %v5299_v10 = vld [vmem:[%s7288_s0 + $0x75c] ss:$36 sps:$4 sm:$0xff]  }
 0x171   :  { %2824 = vmatmul.mubr.bf16.gmra.mrb[56].mxu1 %v5226_v13  ;;  %v5303_v13 = vld [vmem:[%s7288_s0 + $0x758] ss:$36 sps:$4 sm:$0xff]  }
 0x172   :  { %3241 = vmatmul.mubr.bf16.gmra.mrb[120].mxu0 %v5227_v15  ;;  %2831 = vmatprep.mubr.bf16.mxu1 %v5230_v16  ;;  %v5304_v15 = vld [vmem:[%s7288_s0 + $0x2e8] ss:$36 sps:$4 sm:$0xff]  }
 0x173   :  { %3248 = vmatprep.mubr.bf16.mxu0 %v5232_v17  ;;  %v5306_v16 = vld [vmem:[%s7288_s0 + $0x7a4] ss:$36 sps:$4 sm:$0xff]   ;;  %v5308_v17 = vld [vmem:[%s7288_s0 + $0x334] ss:$36 sps:$4 sm:$0xff]  }
 0x179   :  { %2832 = vmatmul.mubr.bf16.gmra.mrb[60].mxu1 %v5234_v18  ;;  %v5310_v18 = vld [vmem:[%s7288_s0 + $0x7a0] ss:$36 sps:$4 sm:$0xff]  }
 0x17a   :  { %3249 = vmatmul.mubr.bf16.gmra.mrb[124].mxu0 %v5235_v20  ;;  %2839 = vmatprep.mubr.bf16.mxu1 %v5236_v21  ;;  %v5311_v20 = vld [vmem:[%s7288_s0 + $0x330] ss:$36 sps:$4 sm:$0xff]  }
 0x17b   :  { %3289 = vmatprep.mubr.bf16.mxu0 %v5240_v23  ;;  %v5312_v21 = vld [vmem:[%s7288_s0 + $0x7ec] ss:$36 sps:$4 sm:$0xff]   ;;  %v5314_v23 = vld [vmem:[%s7288_s0 + $0x37c] ss:$36 sps:$4 sm:$0xff]  }
 0x181   :  { %2840 = vmatmul.mubr.bf16.gmra.mrb[64].mxu1 %v5241_v24  ;;  %v5316_v24 = vld [vmem:[%s7288_s0 + $0x7e8] ss:$36 sps:$4 sm:$0xff]  }
 0x182   :  { %3290 = vmatmul.mubr.bf16.vlgmr.msra.gmra.mrb[0].mxu0 %v5238_v25  ;;  %2847 = vmatprep.mubr.bf16.mxu1 %v5242_v26  ;;  %v5317_v25 = vld [vmem:[%s7288_s0 + $0x378] ss:$36 sps:$4 sm:$0xff]  }
 0x183   :  { %3297 = vmatprep.mubr.bf16.mxu0 %v5244_v28  ;;  %v5318_v26 = vld [vmem:[%s7288_s0 + $0x834] ss:$36 sps:$4 sm:$0xff]   ;;  %v5320_v28 = vld [vmem:[%s7288_s0 + $0x3c4] ss:$36 sps:$4 sm:$0xff]  }
 0x189   :  { %2848 = vmatmul.mubr.bf16.gmra.mrb[68].mxu1 %v5246_v0  ;;  %v5322_v0 = vld [vmem:[%s7288_s0 + $0x830] ss:$36 sps:$4 sm:$0xff]  }
 0x18a   :  { %3298 = vmatmul.mubr.bf16.gmra.mrb[4].mxu0 %v5247_v30  ;;  %2855 = vmatprep.mubr.bf16.mxu1 %v5249_v31  ;;  %v5323_v30 = vld [vmem:[%s7288_s0 + $0x3c0] ss:$36 sps:$4 sm:$0xff]  }
 0x18b   :  { %3305 = vmatprep.mubr.bf16.mxu0 %v5251_v32  ;;  %v5325_v31 = vld [vmem:[%s7288_s0 + $0x87c] ss:$36 sps:$4 sm:$0xff]   ;;  %v5327_v32 = vld [vmem:[%s7288_s0 + $0x40c] ss:$36 sps:$4 sm:$0xff]  }
 0x191   :  { %2856 = vmatmul.mubr.bf16.gmra.mrb[72].mxu1 %v5253_v33  ;;  %v5329_v33 = vld [vmem:[%s7288_s0 + $0x878] ss:$36 sps:$4 sm:$0xff]  }
 0x192   :  { %3306 = vmatmul.mubr.bf16.gmra.mrb[8].mxu0 %v5254_v34  ;;  %2863 = vmatprep.mubr.bf16.mxu1 %v5255_v35  ;;  %v5330_v34 = vld [vmem:[%s7288_s0 + $0x408] ss:$36 sps:$4 sm:$0xff]  }
 0x193   :  { %3313 = vmatprep.mubr.bf16.mxu0 %v5257_v37  ;;  %v5331_v35 = vld [vmem:[%s7288_s0 + $0x8c4] ss:$36 sps:$4 sm:$0xff]   ;;  %v5333_v37 = vld [vmem:[%s7288_s0 + $0x454] ss:$36 sps:$4 sm:$0xff]  }
 0x199   :  { %2864 = vmatmul.mubr.bf16.gmra.mrb[76].mxu1 %v5259_v38  ;;  %v5335_v38 = vld [vmem:[%s7288_s0 + $0x8c0] ss:$36 sps:$4 sm:$0xff]  }
 0x19a   :  { %3314 = vmatmul.mubr.bf16.gmra.mrb[12].mxu0 %v5260_v6  ;;  %2871 = vmatprep.mubr.bf16.mxu1 %v5261_v40  ;;  %v5336_v6 = vld [vmem:[%s7288_s0 + $0x450] ss:$36 sps:$4 sm:$0xff]   ;;  %v5339_v40 = vld [vmem:[%s7288_s0 + $0x20] ss:$36 sps:$4 sm:$0xff]  }
 0x19b   :  { %3321 = vmatprep.mubr.bf16.mxu0 %v5263_v41  ;;  %v5337_v41 = vld [vmem:[%s7288_s0 + $0x49c] ss:$36 sps:$4 sm:$0xff]  }
 0x1a1   :  { %2872 = vmatmul.mubr.bf16.gmra.mrb[80].mxu1 %v5265_v42  ;;  %v5341_v42 = vld [vmem:[%s7288_s0 + $0x68] ss:$36 sps:$4 sm:$0xff]  }
 0x1a2   :  { %3322 = vmatmul.mubr.bf16.gmra.mrb[16].mxu0 %v5266_v43  ;;  %2879 = vmatprep.mubr.bf16.mxu1 %v5268_v45  ;;  %v5340_v43 = vld [vmem:[%s7288_s0 + $0x498] ss:$36 sps:$4 sm:$0xff]   ;;  %v5344_v45 = vld [vmem:[%s7288_s0 + $0xb0] ss:$36 sps:$4 sm:$0xff]  }
 0x1a3   :  { %3329 = vmatprep.mubr.bf16.mxu0 %v5270_v46  ;;  %v5342_v46 = vld [vmem:[%s7288_s0 + $0x4e4] ss:$36 sps:$4 sm:$0xff]  }
 0x1a9   :  { %2880 = vmatmul.mubr.bf16.gmra.mrb[84].mxu1 %v5272_v47  ;;  %v5346_v47 = vld [vmem:[%s7288_s0 + $0xf8] ss:$36 sps:$4 sm:$0xff]  }
 0x1aa   :  { %3330 = vmatmul.mubr.bf16.gmra.mrb[20].mxu0 %v5273_v50  ;;  %2887 = vmatprep.mubr.bf16.mxu1 %v5274_v51  ;;  %v5345_v50 = vld [vmem:[%s7288_s0 + $0x4e0] ss:$36 sps:$4 sm:$0xff]  }
 0x1ab   :  { %3337 = vmatprep.mubr.bf16.mxu0 %v5276_v53  ;;  %v5349_v51 = vld [vmem:[%s7288_s0 + $0x140] ss:$36 sps:$4 sm:$0xff]   ;;  %v5347_v53 = vld [vmem:[%s7288_s0 + $0x52c] ss:$36 sps:$4 sm:$0xff]  }
 0x1b1   :  { %2888 = vmatmul.mubr.bf16.gmra.mrb[88].mxu1 %v5278_v54  ;;  %v5351_v54 = vld [vmem:[%s7288_s0 + $0x188] ss:$36 sps:$4 sm:$0xff]  }
 0x1b2   :  { %3338 = vmatmul.mubr.bf16.gmra.mrb[24].mxu0 %v5279_v55  ;;  %2895 = vmatprep.mubr.bf16.mxu1 %v5280_v56  ;;  %v5350_v55 = vld [vmem:[%s7288_s0 + $0x528] ss:$36 sps:$4 sm:$0xff]   ;;  %v5354_v56 = vld [vmem:[%s7288_s0 + $0x1d0] ss:$36 sps:$4 sm:$0xff]  }
 0x1b3   :  { %3345 = vmatprep.mubr.bf16.mxu0 %v5282_v58  ;;  %v5352_v58 = vld [vmem:[%s7288_s0 + $0x574] ss:$36 sps:$4 sm:$0xff]  }
 0x1b9   :  { %2896 = vmatmul.mubr.bf16.gmra.mrb[92].mxu1 %v5284_v59 }
 0x1ba   :  { %3346 = vmatmul.mubr.bf16.gmra.mrb[28].mxu0 %v5285_v61  ;;  %2903 = vmatprep.mubr.bf16.mxu1 %v5287_v62  ;;  %v5356_v62 = vld [vmem:[%s7288_s0 + $0x218] ss:$36 sps:$4 sm:$0xff]  }
 0x1bb   :  { %3353 = vmatprep.mubr.bf16.mxu0 %v5289_v63 }
 0x1c1   :  { %2904 = vmatmul.mubr.bf16.gmra.mrb[96].mxu1 %v5291_v1  ;;  %v5355_v1 = vld [vmem:[%s7288_s0 + $0x570] ss:$36 sps:$4 sm:$0xff]  }
 0x1c2   :  { %3354 = vmatmul.mubr.bf16.gmra.mrb[32].mxu0 %v5292_v3  ;;  %2911 = vmatprep.mubr.bf16.mxu1 %v5293_v4  ;;  %v5359_v3 = vld [vmem:[%s7288_s0 + $0x260] ss:$36 sps:$4 sm:$0xff]  }
 0x1c3   :  { %3361 = vmatprep.mubr.bf16.mxu0 %v5295_v7  ;;  %v5357_v7 = vld [vmem:[%s7288_s0 + $0x5bc] ss:$36 sps:$4 sm:$0xff]  }
 0x1c9   :  { %2912 = vmatmul.mubr.bf16.gmra.mrb[100].mxu1 %v5297_v8 }
 0x1ca   :  { %3362 = vmatmul.mubr.bf16.gmra.mrb[36].mxu0 %v5298_v9  ;;  %2919 = vmatprep.mubr.bf16.mxu1 %v5299_v10  ;;  %v5361_v10 = vld [vmem:[%s7288_s0 + $0x2a8] ss:$36 sps:$4 sm:$0xff]  }
 0x1cb   :  { %3369 = vmatprep.mubr.bf16.mxu0 %v5301_v12 }
 0x1d1   :  { %2920 = vmatmul.mubr.bf16.gmra.mrb[104].mxu1 %v5303_v13  ;;  %v5360_v13 = vld [vmem:[%s7288_s0 + $0x5b8] ss:$36 sps:$4 sm:$0xff]  }
 0x1d2   :  { %3370 = vmatmul.mubr.bf16.gmra.mrb[40].mxu0 %v5304_v15  ;;  %2927 = vmatprep.mubr.bf16.mxu1 %v5306_v16  ;;  %v5364_v15 = vld [vmem:[%s7288_s0 + $0x2f0] ss:$36 sps:$4 sm:$0xff]  }
 0x1d3   :  { %3377 = vmatprep.mubr.bf16.mxu0 %v5308_v17  ;;  %v5362_v17 = vld [vmem:[%s7288_s0 + $0x604] ss:$36 sps:$4 sm:$0xff]  }
 0x1d9   :  { %2928 = vmatmul.mubr.bf16.gmra.mrb[108].mxu1 %v5310_v18 }
 0x1da   :  { %3378 = vmatmul.mubr.bf16.gmra.mrb[44].mxu0 %v5311_v20  ;;  %2935 = vmatprep.mubr.bf16.mxu1 %v5312_v21  ;;  %v5366_v21 = vld [vmem:[%s7288_s0 + $0x338] ss:$36 sps:$4 sm:$0xff]  }
 0x1db   :  { %3385 = vmatprep.mubr.bf16.mxu0 %v5314_v23 }
 0x1e1   :  { %2936 = vmatmul.mubr.bf16.gmra.mrb[112].mxu1 %v5316_v24  ;;  %v5365_v24 = vld [vmem:[%s7288_s0 + $0x600] ss:$36 sps:$4 sm:$0xff]  }
 0x1e2   :  { %3386 = vmatmul.mubr.bf16.gmra.mrb[48].mxu0 %v5317_v25  ;;  %2943 = vmatprep.mubr.bf16.mxu1 %v5318_v26  ;;  %v5369_v25 = vld [vmem:[%s7288_s0 + $0x380] ss:$36 sps:$4 sm:$0xff]  }
 0x1e3   :  { %3393 = vmatprep.mubr.bf16.mxu0 %v5320_v28  ;;  %v5367_v28 = vld [vmem:[%s7288_s0 + $0x64c] ss:$36 sps:$4 sm:$0xff]  }
 0x1e9   :  { %2944 = vmatmul.mubr.bf16.gmra.mrb[116].mxu1 %v5322_v0 }
 0x1ea   :  { %3394 = vmatmul.mubr.bf16.gmra.mrb[52].mxu0 %v5323_v30  ;;  %2951 = vmatprep.mubr.bf16.mxu1 %v5325_v31  ;;  %v5371_v31 = vld [vmem:[%s7288_s0 + $0x3c8] ss:$36 sps:$4 sm:$0xff]  }
 0x1eb   :  { %3401 = vmatprep.mubr.bf16.mxu0 %v5327_v32 }
 0x1f1   :  { %2952 = vmatmul.mubr.bf16.gmra.mrb[120].mxu1 %v5329_v33  ;;  %v5370_v33 = vld [vmem:[%s7288_s0 + $0x648] ss:$36 sps:$4 sm:$0xff]  }
 0x1f2   :  { %3402 = vmatmul.mubr.bf16.gmra.mrb[56].mxu0 %v5330_v34  ;;  %2959 = vmatprep.mubr.bf16.mxu1 %v5331_v35  ;;  %v5374_v34 = vld [vmem:[%s7288_s0 + $0x410] ss:$36 sps:$4 sm:$0xff]  }
 0x1f3   :  { %3409 = vmatprep.mubr.bf16.mxu0 %v5333_v37  ;;  %v5372_v37 = vld [vmem:[%s7288_s0 + $0x694] ss:$36 sps:$4 sm:$0xff]  }
 0x1f9   :  { %2960 = vmatmul.mubr.bf16.gmra.mrb[124].mxu1 %v5335_v38 }
 0x1fa   :  { %3410 = vmatmul.mubr.bf16.gmra.mrb[60].mxu0 %v5336_v6  ;;  %4448 = vmatprep.mubr.bf16.mxu1 %v5339_v40  ;;  %v5376_v40 = vld [vmem:[%s7288_s0 + $0x458] ss:$36 sps:$4 sm:$0xff]  }
 0x1fb   :  { %3417 = vmatprep.mubr.bf16.mxu0 %v5337_v41 }
 0x201   :  { %4449 = vmatmul.mubr.bf16.vlgmr.msra.gmra.mrb[128].mxu1 %v5341_v42  ;;  %v5375_v42 = vld [vmem:[%s7288_s0 + $0x690] ss:$36 sps:$4 sm:$0xff]  }
 0x202   :  { %3418 = vmatmul.mubr.bf16.gmra.mrb[64].mxu0 %v5340_v43  ;;  %4452 = vmatprep.mubr.bf16.mxu1 %v5344_v45  ;;  %v5379_v43 = vld [vmem:[%s7288_s0 + $0x4a0] ss:$36 sps:$4 sm:$0xff]  }
 0x203   :  { %3425 = vmatprep.mubr.bf16.mxu0 %v5342_v46  ;;  %v5377_v46 = vld [vmem:[%s7288_s0 + $0x6dc] ss:$36 sps:$4 sm:$0xff]  }
 0x209   :  { %4453 = vmatmul.mubr.bf16.gmra.mrb[132].mxu1 %v5346_v47 }
 0x20a   :  { %3426 = vmatmul.mubr.bf16.gmra.mrb[68].mxu0 %v5345_v50  ;;  %4456 = vmatprep.mubr.bf16.mxu1 %v5349_v51  ;;  %v5381_v51 = vld [vmem:[%s7288_s0 + $0x4e8] ss:$36 sps:$4 sm:$0xff]  }
 0x20b   :  { %3433 = vmatprep.mubr.bf16.mxu0 %v5347_v53 }
 0x211   :  { %4457 = vmatmul.mubr.bf16.gmra.mrb[136].mxu1 %v5351_v54  ;;  %v5380_v54 = vld [vmem:[%s7288_s0 + $0x6d8] ss:$36 sps:$4 sm:$0xff]  }
 0x212   :  { %3434 = vmatmul.mubr.bf16.gmra.mrb[72].mxu0 %v5350_v55  ;;  %4460 = vmatprep.mubr.bf16.mxu1 %v5354_v56  ;;  %v5384_v55 = vld [vmem:[%s7288_s0 + $0x530] ss:$36 sps:$4 sm:$0xff]  }
 0x213   :  { %3441 = vmatprep.mubr.bf16.mxu0 %v5352_v58  ;;  %v5382_v58 = vld [vmem:[%s7288_s0 + $0x724] ss:$36 sps:$4 sm:$0xff]  }
 0x214   :  { %v6549_v59 = vpop.f32.mrb[32].mxu1 }
 0x215   :  { %v2779_v61 = vpop.f32.mrb[33].mxu1 }
 0x216   :  { %v6554_v63 = vpop.f32.mrb[34].mxu1 }
 0x217   :  { %v2782_v4 = vpop.f32.mrb[35].mxu1 }
 0x218   :  { %v5385_v4 = vld [vmem:[%s7288_s0 + $0x720] ss:$36 sps:$4 sm:$0xff]  }
 0x219   :  { %4461 = vmatmul.mubr.bf16.gmra.mrb[140].mxu1 %v5356_v62 }
 0x21a   :  { %3442 = vmatmul.mubr.bf16.gmra.mrb[76].mxu0 %v5355_v1  ;;  %4464 = vmatprep.mubr.bf16.mxu1 %v5359_v3  ;;  %v5386_v1 = vld [vmem:[%s7288_s0 + $0x578] ss:$36 sps:$4 sm:$0xff]  }
 0x21b   :  { %3449 = vmatprep.mubr.bf16.mxu0 %v5357_v7  ;;  %v5389_v7 = vld [vmem:[%s7288_s0 + $0x5c0] ss:$36 sps:$4 sm:$0xff]  }
 0x21c   :  { %v6565_v8 = vpop.f32.mrb[36].mxu1 }
 0x21d   :  { %v2787_v9 = vpop.f32.mrb[37].mxu1 }
 0x21e   :  { %v6570_v12 = vpop.f32.mrb[38].mxu1 }
 0x21f   :  { %v2790_v16 = vpop.f32.mrb[39].mxu1 }
 0x220   :  { %v5391_v16 = vld [vmem:[%s7288_s0 + $0x608] ss:$36 sps:$4 sm:$0xff]  }
 0x221   :  { %4465 = vmatmul.mubr.bf16.gmra.mrb[144].mxu1 %v5361_v10  ;;  %v5387_v10 = vld [vmem:[%s7288_s0 + $0x76c] ss:$36 sps:$4 sm:$0xff]  }
 0x222   :  { %3450 = vmatmul.mubr.bf16.gmra.mrb[80].mxu0 %v5360_v13  ;;  %4468 = vmatprep.mubr.bf16.mxu1 %v5364_v15 }
 0x223   :  { %3457 = vmatprep.mubr.bf16.mxu0 %v5362_v17 }
 0x224   :  { %v6581_v18 = vpop.f32.mrb[40].mxu1 }
 0x225   :  { %v2795_v20 = vpop.f32.mrb[41].mxu1 }
 0x226   :  { %v6586_v23 = vpop.f32.mrb[42].mxu1  ;;  %v5390_v20 = vld [vmem:[%s7288_s0 + $0x768] ss:$36 sps:$4 sm:$0xff]  }
 0x227   :  { %v2798_v26 = vpop.f32.mrb[43].mxu1 }
 0x228   :  { %v6680_v26 = vld [vmem:[%s7289_s2] ss:$0 sm:$0xff] }
 0x229   :  { %4469 = vmatmul.mubr.bf16.gmra.mrb[148].mxu1 %v5366_v21  ;;  %v5394_v21 = vld [vmem:[%s7288_s0 + $0x650] ss:$36 sps:$4 sm:$0xff]  }
 0x22a   :  { %3458 = vmatmul.mubr.bf16.gmra.mrb[84].mxu0 %v5365_v24  ;;  %4472 = vmatprep.mubr.bf16.mxu1 %v5369_v25  ;;  %v5392_v25 = vld [vmem:[%s7288_s0 + $0x7b4] ss:$36 sps:$4 sm:$0xff]  }
 0x22b   :  { %3465 = vmatprep.mubr.bf16.mxu0 %v5367_v28  ;;  %v2425_v28 = vadd.f32 %v6680_v26, %v6111_v49  ;;  %v5395_v49 = vld [vmem:[%s7288_s0 + $0x7b0] ss:$36 sps:$4 sm:$0xff]  }
 0x22c   :  { %v6597_v0 = vpop.f32.mrb[44].mxu1 }
 0x22d   :  { %v2803_v30 = vpop.f32.mrb[45].mxu1 }
 0x22e   :  { %v6602_v32 = vpop.f32.mrb[46].mxu1 }
 0x22f   :  { %v2806_v35 = vpop.f32.mrb[47].mxu1 }
 0x230   :  { %v2428_v35 = vadd.f32 %v6680_v26, %v6116_v52 }
 0x231   :  { %4473 = vmatmul.mubr.bf16.gmra.mrb[152].mxu1 %v5371_v31 }
 0x232   :  { %3466 = vmatmul.mubr.bf16.gmra.mrb[88].mxu0 %v5370_v33  ;;  %4476 = vmatprep.mubr.bf16.mxu1 %v5374_v34  ;;  %v5396_v34 = vld [vmem:[%s7288_s0 + $0x698] ss:$36 sps:$4 sm:$0xff]  }
 0x233   :  { %3473 = vmatprep.mubr.bf16.mxu0 %v5372_v37 }
 0x234   :  { %v6613_v38 = vpop.f32.mrb[48].mxu1 }
 0x235   :  { %v2811_v6 = vpop.f32.mrb[49].mxu1 }
 0x236   :  { %v6618_v41 = vpop.f32.mrb[50].mxu1 }
 0x237   :  { %v2814_v45 = vpop.f32.mrb[51].mxu1 }
 0x239   :  { %4477 = vmatmul.mubr.bf16.gmra.mrb[156].mxu1 %v5376_v40 }
 0x23a   :  { %3474 = vmatmul.mubr.bf16.gmra.mrb[92].mxu0 %v5375_v42  ;;  %4480 = vmatprep.mubr.bf16.mxu1 %v5379_v43  ;;  %v5399_v42 = vld [vmem:[%s7288_s0 + $0x6e0] ss:$36 sps:$4 sm:$0xff]  }
 0x23b   :  { %3481 = vmatprep.mubr.bf16.mxu0 %v5377_v46  ;;  %v5397_v46 = vld [vmem:[%s7288_s0 + $0x7fc] ss:$36 sps:$4 sm:$0xff]  }
 0x23c   :  { %v6629_v47 = vpop.f32.mrb[52].mxu1 }
 0x23d   :  { %v2819_v50 = vpop.f32.mrb[53].mxu1 }
 0x23e   :  { %v6634_v53 = vpop.f32.mrb[54].mxu1 }
 0x23f   :  { %v2822_v56 = vpop.f32.mrb[55].mxu1 }
 0x241   :  { %4481 = vmatmul.mubr.bf16.gmra.mrb[160].mxu1 %v5381_v51  ;;  %v2433_v51 = vadd.f32 %v6680_v26, %v6127_v57  ;;  %v5400_v57 = vld [vmem:[%s7288_s0 + $0x7f8] ss:$36 sps:$4 sm:$0xff]  }
 0x242   :  { %3482 = vmatmul.mubr.bf16.gmra.mrb[96].mxu0 %v5380_v54  ;;  %4484 = vmatprep.mubr.bf16.mxu1 %v5384_v55 }
 0x243   :  { %3489 = vmatprep.mubr.bf16.mxu0 %v5382_v58  ;;  %v5401_v58 = vld [vmem:[%s7288_s0 + $0x728] ss:$36 sps:$4 sm:$0xff]  }
 0x244   :  { %v6645_v61 = vpop.f32.mrb[56].mxu1 }
 0x245   :  { %v2827_v62 = vpop.f32.mrb[57].mxu1 }
 0x246   :  { %v6650_v3 = vpop.f32.mrb[58].mxu1  ;;  %v2436_v62 = vadd.f32 %v6680_v26, %v6132_v60 }
 0x247   :  { %v2830_v9 = vpop.f32.mrb[59].mxu1 }
 0x248   :  { %v5404_v9 = vld [vmem:[%s7288_s0 + $0x770] ss:$36 sps:$4 sm:$0xff]  }
 0x249   :  { %4485 = vmatmul.mubr.bf16.gmra.mrb[164].mxu1 %v5386_v1 }
 0x24a   :  { %3490 = vmatmul.mubr.bf16.gmra.mrb[100].mxu0 %v5385_v4  ;;  %4488 = vmatprep.mubr.bf16.mxu1 %v5389_v7 }
 0x24b   :  { %3497 = vmatprep.mubr.bf16.mxu0 %v5387_v10 }
 0x24c   :  { %v6661_v13 = vpop.f32.mrb[60].mxu1 }
 0x24d   :  { %v2835_v15 = vpop.f32.mrb[61].mxu1 }
 0x24e   :  { %v6666_v17 = vpop.f32.mrb[62].mxu1 }
 0x24f   :  { %v2838_v24 = vpop.f32.mrb[63].mxu1 }
 0x251   :  { %4489 = vmatmul.mubr.bf16.gmra.mrb[168].mxu1 %v5391_v16  ;;  %v5402_v16 = vld [vmem:[%s7288_s0 + $0x844] ss:$36 sps:$4 sm:$0xff]  }
 0x252   :  { %3498 = vmatmul.mubr.bf16.gmra.mrb[104].mxu0 %v5390_v20  ;;  %4492 = vmatprep.mubr.bf16.mxu1 %v5394_v21  ;;  %v2441_v21 = vadd.f32 %v6680_v26, %v6143_v2  ;;  %v5405_v2 = vld [vmem:[%s7288_s0 + $0x840] ss:$36 sps:$4 sm:$0xff]  }
 0x253   :  { %3505 = vmatprep.mubr.bf16.mxu0 %v5392_v25 }
 0x254   :  { %v6684_v30 = vpop.f32.mrb[64].mxu1 }
 0x255   :  { %v3291_v31 = vpop.f32.mrb[0].mxu0  ;;  %v2843_v33 = vpop.f32.mrb[65].mxu1 }
 0x256   :  { %v6691_v37 = vadd.f32 %v3291_v31, %v2425_v28  ;;  %v3293_v6 = vpop.f32.mrb[1].mxu0  ;;  %v6693_v40 = vpop.f32.mrb[66].mxu1  ;;  %v5406_v31 = vld [vmem:[%s7288_s0 + $0x7b8] ss:$36 sps:$4 sm:$0xff]   ;;  %v2444_v33 = vadd.f32 %v6680_v26, %v6148_v5 }
 0x257   :  { %v3294_v43 = vpop.f32.mrb[2].mxu0  ;;  %v2846_v45 = vpop.f32.mrb[67].mxu1 }
 0x258   :  { %v6704_v52 = vadd.f32 %v3294_v43, %v2428_v35  ;;  %v3296_v50 = vpop.f32.mrb[3].mxu0  ;;  %v5407_v45 = vld [vmem:[%s7288_s0 + $0x88c] ss:$36 sps:$4 sm:$0xff]  }
 0x259   :  { %4493 = vmatmul.mubr.bf16.gmra.mrb[172].mxu1 %v5396_v34  ;;  %v2449_v50 = vadd.f32 %v6680_v26, %v6159_v11  ;;  %v5410_v11 = vld [vmem:[%s7288_s0 + $0x888] ss:$36 sps:$4 sm:$0xff]  }
 0x25a   :  { %3506 = vmatmul.mubr.bf16.gmra.mrb[108].mxu0 %v5395_v49  ;;  %4496 = vmatprep.mubr.bf16.mxu1 %v5399_v42  ;;  %v5409_v49 = vld [vmem:[%s7288_s0 + $0x800] ss:$36 sps:$4 sm:$0xff]  }
 0x25b   :  { %3513 = vmatprep.mubr.bf16.mxu0 %v5397_v46 }
 0x25c   :  { %v6708_v54 = vpop.f32.mrb[68].mxu1 }
 0x25d   :  { %v3299_v55 = vpop.f32.mrb[4].mxu0  ;;  %v2851_v56 = vpop.f32.mrb[69].mxu1 }
 0x25e   :  { %v6715_v1 = vadd.f32 %v3299_v55, %v2433_v51  ;;  %v3301_v4 = vpop.f32.mrb[5].mxu0  ;;  %v6717_v7 = vpop.f32.mrb[70].mxu1 }
 0x25f   :  { %v3302_v10 = vpop.f32.mrb[6].mxu0  ;;  %v2854_v15 = vpop.f32.mrb[71].mxu1 }
 0x260   :  { %v6728_v60 = vadd.f32 %v3302_v10, %v2436_v62  ;;  %v3304_v20 = vpop.f32.mrb[7].mxu0  ;;  %v2452_v62 = vadd.f32 %v6680_v26, %v6164_v14  ;;  %v5414_v10 = vld [vmem:[%s7288_s0 + $0x890] ss:$36 sps:$4 sm:$0xff]  }
 0x261   :  { %4497 = vmatmul.mubr.bf16.gmra.mrb[176].mxu1 %v5401_v58  ;;  %v5411_v58 = vld [vmem:[%s7288_s0 + $0x848] ss:$36 sps:$4 sm:$0xff]   ;;  %v5412_v20 = vld [vmem:[%s7288_s0 + $0x8d4] ss:$36 sps:$4 sm:$0xff]  }
 0x262   :  { %3514 = vmatmul.mubr.bf16.gmra.mrb[112].mxu0 %v5400_v57  ;;  %4500 = vmatprep.mubr.bf16.mxu1 %v5404_v9 }
 0x263   :  { %3521 = vmatprep.mubr.bf16.mxu0 %v5402_v16 }
 0x264   :  { %v6732_v24 = vpop.f32.mrb[72].mxu1 }
 0x265   :  { %v3307_v25 = vpop.f32.mrb[8].mxu0  ;;  %v2859_v28 = vpop.f32.mrb[73].mxu1 }
 0x266   :  { %v6739_v34 = vadd.f32 %v3307_v25, %v2441_v21  ;;  %v3309_v35 = vpop.f32.mrb[9].mxu0  ;;  %v6741_v6 = vpop.f32.mrb[74].mxu1  ;;  %v2457_v25 = vadd.f32 %v6680_v26, %v6175_v19  ;;  %v5415_v19 = vld [vmem:[%s7288_s0 + $0x8d0] ss:$36 sps:$4 sm:$0xff]  }
 0x267   :  { %v3310_v42 = vpop.f32.mrb[10].mxu0  ;;  %v2862_v43 = vpop.f32.mrb[75].mxu1  ;;  %v5416_v35 = vld [vmem:[%s7288_s0 + $0x8d8] ss:$36 sps:$4 sm:$0xff]  }
 0x268   :  { %v6752_v5 = vadd.f32 %v3310_v42, %v2444_v33  ;;  %v3312_v46 = vpop.f32.mrb[11].mxu0 }
 0x269   :  { %4501 = vmatmul.mubr.bf16.gmra.mrb[180].mxu1 %v5406_v31 }
 0x26a   :  { %3522 = vmatmul.mubr.bf16.gmra.mrb[116].mxu0 %v5405_v2  ;;  %4504 = vmatprep.mubr.bf16.mxu1 %v5409_v49  ;;  %v2460_v2 = vadd.f32 %v6680_v26, %v6180_v22 }
 0x26b   :  { %3529 = vmatprep.mubr.bf16.mxu0 %v5407_v45 }
 0x26c   :  { %v6756_v51 = vpop.f32.mrb[76].mxu1 }
 0x26d   :  { %v3315_v55 = vpop.f32.mrb[12].mxu0  ;;  %v2867_v56 = vpop.f32.mrb[77].mxu1 }
 0x26e   :  { %v6763_v4 = vadd.f32 %v3315_v55, %v2449_v50  ;;  %v3317_v57 = vpop.f32.mrb[13].mxu0  ;;  %v6765_v9 = vpop.f32.mrb[78].mxu1  ;;  %v2465_v56 = vadd.f32 %v6680_v26, %v6191_v27  ;;  %v2473_v27 = vadd.f32 %v6680_v26, %v6214_v36  ;;  %v2481_v36 = vadd.f32 %v6680_v26, %v6233_v44 }
 0x26f   :  { %v3318_v15 = vpop.f32.mrb[14].mxu0  ;;  %v2870_v16 = vpop.f32.mrb[79].mxu1  ;;  %v2468_v57 = vadd.f32 %v6680_v26, %v6196_v29  ;;  %v2476_v29 = vadd.f32 %v6680_v26, %v6219_v39  ;;  %v2484_v39 = vadd.f32 %v6680_v26, %v6241_v48  ;;  %v4576_v44 = vadd.f32 %v6680_v26, %v6549_v59 }
 0x270   :  { %v6776_v14 = vadd.f32 %v3318_v15, %v2452_v62  ;;  %v3320_v21 = vpop.f32.mrb[15].mxu0  ;;  %v4578_v48 = vadd.f32 %v6680_v26, %v6554_v63  ;;  %v4580_v59 = vadd.f32 %v6680_v26, %v6565_v8  ;;  %v4582_v63 = vadd.f32 %v6680_v26, %v6570_v12 }
 0x271   :  { %4505 = vmatmul.mubr.bf16.gmra.mrb[184].mxu1 %v5411_v58  ;;  %v4584_v8 = vadd.f32 %v6680_v26, %v6581_v18  ;;  %v4586_v12 = vadd.f32 %v6680_v26, %v6586_v23  ;;  %v4588_v18 = vadd.f32 %v6680_v26, %v6597_v0  ;;  %v4590_v23 = vadd.f32 %v6680_v26, %v6602_v32 }
 0x272   :  { %3530 = vmatmul.mubr.bf16.gmra.mrb[120].mxu0 %v5410_v11  ;;  %4508 = vmatprep.mubr.bf16.mxu1 %v5414_v10  ;;  %v4592_v0 = vadd.f32 %v6680_v26, %v6613_v38  ;;  %v4594_v32 = vadd.f32 %v6680_v26, %v6618_v41  ;;  %v4596_v38 = vadd.f32 %v6680_v26, %v6629_v47 }
 0x273   :  { %3537 = vmatprep.mubr.bf16.mxu0 %v5412_v20  ;;  %v4598_v41 = vadd.f32 %v6680_v26, %v6634_v53  ;;  %v4600_v47 = vadd.f32 %v6680_v26, %v6645_v61  ;;  %v4602_v53 = vadd.f32 %v6680_v26, %v6650_v3  ;;  %v4604_v61 = vadd.f32 %v6680_v26, %v6661_v13 }
 0x274   :  { %v6780_v28 = vpop.f32.mrb[80].mxu1  ;;  %v4606_v3 = vadd.f32 %v6680_v26, %v6666_v17  ;;  %v4608_v13 = vadd.f32 %v6680_v26, %v6684_v30  ;;  %v4610_v17 = vadd.f32 %v6680_v26, %v6693_v40 }
 0x275   :  { %v3323_v31 = vpop.f32.mrb[16].mxu0  ;;  %v2875_v33 = vpop.f32.mrb[81].mxu1 }
 0x276   :  { %v6787_v49 = vadd.f32 %v3323_v31, %v2457_v25  ;;  %v3325_v42 = vpop.f32.mrb[17].mxu0  ;;  %v6789_v43 = vpop.f32.mrb[82].mxu1 }
 0x277   :  { %v3326_v45 = vpop.f32.mrb[18].mxu0  ;;  %v2878_v46 = vpop.f32.mrb[83].mxu1 }
 0x278   :  { %v6794_v50 = vadd.f32 %v3326_v45, %v2460_v2  ;;  %v3328_v55 = vpop.f32.mrb[19].mxu0 }
 0x279   :  { %4509 = vmatmul.mubr.bf16.gmra.mrb[188].mxu1 %v5416_v35 }
 0x27a   :  { %3538 = vmatmul.mubr.bf16.gmra.mrb[124].mxu0 %v5415_v19 }
 0x27c   :  { %v6798_v22 = vpop.f32.mrb[84].mxu1 }
 0x27d   :  { %v3331_v58 = vpop.f32.mrb[20].mxu0  ;;  %v2883_v62 = vpop.f32.mrb[85].mxu1 }
 0x27e   :  { %v6802_v11 = vadd.f32 %v3331_v58, %v2465_v56  ;;  %v3333_v10 = vpop.f32.mrb[21].mxu0  ;;  %v6804_v15 = vpop.f32.mrb[86].mxu1 }
 0x27f   :  { %v3334_v16 = vpop.f32.mrb[22].mxu0  ;;  %v2886_v20 = vpop.f32.mrb[87].mxu1 }
 0x280   :  { %v6806_v21 = vadd.f32 %v3334_v16, %v2468_v57  ;;  %v3336_v25 = vpop.f32.mrb[23].mxu0 }
 0x284   :  { %v6810_v31 = vpop.f32.mrb[88].mxu1 }
 0x285   :  { %v3339_v33 = vpop.f32.mrb[24].mxu0  ;;  %v2891_v35 = vpop.f32.mrb[89].mxu1 }
 0x286   :  { %v6814_v2 = vadd.f32 %v3339_v33, %v2473_v27  ;;  %v3341_v42 = vpop.f32.mrb[25].mxu0  ;;  %v6816_v19 = vpop.f32.mrb[90].mxu1 }
 0x287   :  { %v3342_v45 = vpop.f32.mrb[26].mxu0  ;;  %v2894_v46 = vpop.f32.mrb[91].mxu1 }
 0x288   :  { %v6818_v55 = vadd.f32 %v3342_v45, %v2476_v29  ;;  %v3344_v56 = vpop.f32.mrb[27].mxu0 }
 0x28c   :  { %v6822_v58 = vpop.f32.mrb[92].mxu1 }
 0x28d   :  { %v3347_v62 = vpop.f32.mrb[28].mxu0  ;;  %v2899_v57 = vpop.f32.mrb[93].mxu1 }
 0x28e   :  { %v6826_v10 = vadd.f32 %v3347_v62, %v2481_v36  ;;  %v3349_v16 = vpop.f32.mrb[29].mxu0  ;;  %v6828_v20 = vpop.f32.mrb[94].mxu1 }
 0x28f   :  { %v3350_v25 = vpop.f32.mrb[30].mxu0  ;;  %v2902_v27 = vpop.f32.mrb[95].mxu1 }
 0x290   :  { %v6830_v33 = vadd.f32 %v3350_v25, %v2484_v39  ;;  %v3352_v35 = vpop.f32.mrb[31].mxu0 }
 0x294   :  { %v6834_v29 = vpop.f32.mrb[96].mxu1 }
 0x295   :  { %7291 = vst [vmem:[#allocation2_spill] sm:$0xff] %v6834_v29  ;;  %v3355_v42 = vpop.f32.mrb[32].mxu0  ;;  %v2907_v45 = vpop.f32.mrb[97].mxu1 }
 0x296   :  { %v6838_v46 = vadd.f32 %v4576_v44, %v3355_v42  ;;  %v3357_v56 = vpop.f32.mrb[33].mxu0  ;;  %v6840_v36 = vpop.f32.mrb[98].mxu1 }
 0x297   :  { %7292 = vst [vmem:[#allocation3_spill] sm:$0xff] %v6840_v36  ;;  %v3358_v62 = vpop.f32.mrb[34].mxu0  ;;  %v2910_v57 = vpop.f32.mrb[99].mxu1 }
 0x298   :  { %v6842_v39 = vadd.f32 %v4578_v48, %v3358_v62  ;;  %v3360_v16 = vpop.f32.mrb[35].mxu0 }
 0x29c   :  { %v6846_v25 = vpop.f32.mrb[100].mxu1 }
 0x29d   :  { %7293 = vst [vmem:[#allocation4_spill] sm:$0xff] %v6846_v25  ;;  %v3363_v27 = vpop.f32.mrb[36].mxu0  ;;  %v2915_v35 = vpop.f32.mrb[101].mxu1 }
 0x29e   :  { %v6850_v44 = vadd.f32 %v4580_v59, %v3363_v27  ;;  %v3365_v42 = vpop.f32.mrb[37].mxu0  ;;  %v6852_v45 = vpop.f32.mrb[102].mxu1 }
 0x29f   :  { %7294 = vst [vmem:[#allocation5_spill] sm:$0xff] %v6852_v45  ;;  %v3366_v56 = vpop.f32.mrb[38].mxu0  ;;  %v2918_v57 = vpop.f32.mrb[103].mxu1 }
 0x2a0   :  { %v6854_v48 = vadd.f32 %v4582_v63, %v3366_v56  ;;  %v3368_v62 = vpop.f32.mrb[39].mxu0 }
 0x2a4   :  { %v6858_v16 = vpop.f32.mrb[104].mxu1 }
 0x2a5   :  { %7295 = vst [vmem:[#allocation6_spill] sm:$0xff] %v6858_v16  ;;  %v3371_v25 = vpop.f32.mrb[40].mxu0  ;;  %v2923_v35 = vpop.f32.mrb[105].mxu1 }
 0x2a6   :  { %v6862_v59 = vadd.f32 %v4584_v8, %v3371_v25  ;;  %v3373_v27 = vpop.f32.mrb[41].mxu0  ;;  %v6864_v42 = vpop.f32.mrb[106].mxu1 }
 0x2a7   :  { %7296 = vst [vmem:[#allocation7_spill] sm:$0xff] %v6864_v42  ;;  %v3374_v45 = vpop.f32.mrb[42].mxu0  ;;  %v2926_v57 = vpop.f32.mrb[107].mxu1 }
 0x2a8   :  { %v6866_v63 = vadd.f32 %v4586_v12, %v3374_v45  ;;  %v3376_v56 = vpop.f32.mrb[43].mxu0 }
 0x2ac   :  { %v6870_v62 = vpop.f32.mrb[108].mxu1 }
 0x2ad   :  { %7297 = vst [vmem:[#allocation8_spill] sm:$0xff] %v6870_v62  ;;  %v3379_v16 = vpop.f32.mrb[44].mxu0  ;;  %v2931_v35 = vpop.f32.mrb[109].mxu1 }
 0x2ae   :  { %v6874_v25 = vadd.f32 %v4588_v18, %v3379_v16  ;;  %v3381_v8 = vpop.f32.mrb[45].mxu0  ;;  %v6876_v27 = vpop.f32.mrb[110].mxu1 }
 0x2af   :  { %7298 = vst [vmem:[#allocation9_spill] sm:$0xff] %v6876_v27  ;;  %v3382_v42 = vpop.f32.mrb[46].mxu0  ;;  %v2934_v57 = vpop.f32.mrb[111].mxu1 }
 0x2b0   :  { %v6878_v45 = vadd.f32 %v4590_v23, %v3382_v42  ;;  %v3384_v12 = vpop.f32.mrb[47].mxu0 }
 0x2b4   :  { %v6882_v56 = vpop.f32.mrb[112].mxu1 }
 0x2b5   :  { %7299 = vst [vmem:[#allocation10_spill] sm:$0xff] %v6882_v56  ;;  %v3387_v62 = vpop.f32.mrb[48].mxu0  ;;  %v2939_v35 = vpop.f32.mrb[113].mxu1 }
 0x2b6   :  { %v6886_v16 = vadd.f32 %v4592_v0, %v3387_v62  ;;  %v3389_v18 = vpop.f32.mrb[49].mxu0  ;;  %v6888_v8 = vpop.f32.mrb[114].mxu1 }
 0x2b7   :  { %7300 = vst [vmem:[#allocation11_spill] sm:$0xff] %v6888_v8  ;;  %v3390_v27 = vpop.f32.mrb[50].mxu0  ;;  %v2942_v57 = vpop.f32.mrb[115].mxu1 }
 0x2b8   :  { %v6890_v42 = vadd.f32 %v4594_v32, %v3390_v27  ;;  %v3392_v23 = vpop.f32.mrb[51].mxu0 }
 0x2bc   :  { %v6894_v12 = vpop.f32.mrb[116].mxu1 }
 0x2bd   :  { %7301 = vst [vmem:[#allocation12_spill] sm:$0xff] %v6894_v12  ;;  %v3395_v56 = vpop.f32.mrb[52].mxu0  ;;  %v2947_v35 = vpop.f32.mrb[117].mxu1 }
 0x2be   :  { %v6898_v62 = vadd.f32 %v4596_v38, %v3395_v56  ;;  %v3397_v0 = vpop.f32.mrb[53].mxu0  ;;  %v6900_v18 = vpop.f32.mrb[118].mxu1 }
 0x2bf   :  { %7302 = vst [vmem:[#allocation13_spill] sm:$0xff] %v6900_v18  ;;  %v3398_v8 = vpop.f32.mrb[54].mxu0  ;;  %v2950_v57 = vpop.f32.mrb[119].mxu1 }
 0x2c0   :  { %v6902_v27 = vadd.f32 %v4598_v41, %v3398_v8  ;;  %v3400_v32 = vpop.f32.mrb[55].mxu0 }
 0x2c4   :  { %v6906_v23 = vpop.f32.mrb[120].mxu1 }
 0x2c5   :  { %7303 = vst [vmem:[#allocation14_spill] sm:$0xff] %v6906_v23  ;;  %v3403_v12 = vpop.f32.mrb[56].mxu0  ;;  %v2955_v35 = vpop.f32.mrb[121].mxu1 }
 0x2c6   :  { %v6910_v56 = vadd.f32 %v4600_v47, %v3403_v12  ;;  %v3405_v38 = vpop.f32.mrb[57].mxu0  ;;  %v6912_v0 = vpop.f32.mrb[122].mxu1 }
 0x2c7   :  { %7304 = vst [vmem:[#allocation15_spill] sm:$0xff] %v6912_v0  ;;  %v3406_v18 = vpop.f32.mrb[58].mxu0  ;;  %v2958_v57 = vpop.f32.mrb[123].mxu1 }
 0x2c8   :  { %v6914_v8 = vadd.f32 %v4602_v53, %v3406_v18  ;;  %v3408_v41 = vpop.f32.mrb[59].mxu0 }
 0x2ca   :  { %7305 = vst [vmem:[#allocation16_spill] sm:$0xff] %v6914_v8 }
 0x2cc   :  { %v6918_v32 = vpop.f32.mrb[124].mxu1 }
 0x2cd   :  { %7306 = vst [vmem:[#allocation17_spill] sm:$0xff] %v6918_v32  ;;  %v3411_v23 = vpop.f32.mrb[60].mxu0  ;;  %v2963_v35 = vpop.f32.mrb[125].mxu1 }
 0x2ce   :  { %v6922_v12 = vadd.f32 %v4604_v61, %v3411_v23  ;;  %v3413_v47 = vpop.f32.mrb[61].mxu0  ;;  %v6924_v38 = vpop.f32.mrb[126].mxu1 }
 0x2cf   :  { %7307 = vst [vmem:[#allocation18_spill] sm:$0xff] %v6924_v38  ;;  %v3414_v0 = vpop.f32.mrb[62].mxu0  ;;  %v2966_v57 = vpop.f32.mrb[127].mxu1 }
 0x2d0   :  { %v6926_v18 = vadd.f32 %v4606_v3, %v3414_v0  ;;  %v3416_v53 = vpop.f32.mrb[63].mxu0 }
 0x2d2   :  { %7308 = vst [vmem:[#allocation19_spill] sm:$0xff] %v6926_v18 }
 0x2d4   :  { %v4450_v41 = vpop.f32.mrb[128].mxu1 }
 0x2d5   :  { %v3419_v32 = vpop.f32.mrb[64].mxu0  ;;  %v3589_v35 = vadd.f32 %v6715_v1, %v4450_v41  ;;  %v3580_v36 = vpop.f32.mrb[129].mxu1 }
 0x2d6   :  { %v6933_v23 = vadd.f32 %v4608_v13, %v3419_v32  ;;  %v3421_v61 = vpop.f32.mrb[65].mxu0  ;;  %v3581_v47 = vadd.f32 %v6691_v37, %v3580_v36  ;;  %v4451_v57 = vpop.f32.mrb[130].mxu1  ;;  %v4612_v36 = vadd.f32 %v6680_v26, %v6708_v54 }
 0x2d7   :  { %v3837_v0 = vmax.f32 %v3589_v35, 0.0  ;;  %v3422_v3 = vpop.f32.mrb[66].mxu0  ;;  %v3592_v53 = vadd.f32 %v6728_v60, %v4451_v57  ;;  %v3583_v38 = vpop.f32.mrb[131].mxu1 }
 0x2d8   :  { %v3835_v30 = vmax.f32 %v3581_v47, 0.0  ;;  %v6937_v29 = vadd.f32 %v4610_v17, %v3422_v3  ;;  %v3424_v8 = vpop.f32.mrb[67].mxu0  ;;  %v3584_v1 = vadd.f32 %v6704_v52, %v3583_v38 }
 0x2d9   :  { %v3901_v41 = vmin.f32 %v3837_v0, 1.0  ;;  %v3838_v18 = vmax.f32 %v3592_v53, 0.0 }
 0x2da   :  { %v3899_v40 = vmin.f32 %v3835_v30, 1.0  ;;  %v3836_v32 = vmax.f32 %v3584_v1, 0.0 }
 0x2db   :  { %3965 = vst [vmem:[%s7290_s3 + $0x10] sm:$0xff] %v3901_v41  ;;  %v3902_v37 = vmin.f32 %v3838_v18, 1.0  ;;  %v4614_v18 = vadd.f32 %v6680_v26, %v6717_v7 }
 0x2dc   :  { %3963 = vst [vmem:[%s7290_s3] sm:$0xff] %v3899_v40  ;;  %v3900_v60 = vmin.f32 %v3836_v32, 1.0  ;;  %v4454_v8 = vpop.f32.mrb[132].mxu1 }
 0x2dd   :  { %3966 = vst [vmem:[%s7290_s3 + $0x18] sm:$0xff] %v3902_v37  ;;  %v3427_v52 = vpop.f32.mrb[68].mxu0  ;;  %v3605_v38 = vadd.f32 %v6763_v4, %v4454_v8  ;;  %v3596_v13 = vpop.f32.mrb[133].mxu1  ;;  %v4616_v37 = vadd.f32 %v6680_v26, %v6732_v24 }
 0x2de   :  { %3964 = vst [vmem:[%s7290_s3 + $0x8] sm:$0xff] %v3900_v60  ;;  %v6957_v54 = vadd.f32 %v4612_v36, %v3427_v52  ;;  %v3429_v35 = vpop.f32.mrb[69].mxu0  ;;  %v3597_v17 = vadd.f32 %v6739_v34, %v3596_v13  ;;  %v4455_v61 = vpop.f32.mrb[134].mxu1  ;;  %v4618_v52 = vadd.f32 %v6680_v26, %v6741_v6 }
 0x2df   :  { %v3841_v47 = vmax.f32 %v3605_v38, 0.0  ;;  %v3430_v57 = vpop.f32.mrb[70].mxu0  ;;  %v3608_v0 = vadd.f32 %v6776_v14, %v4455_v61  ;;  %v3599_v3 = vpop.f32.mrb[135].mxu1 }
 0x2e0   :  { %v3839_v4 = vmax.f32 %v3597_v17, 0.0  ;;  %v6961_v53 = vadd.f32 %v4614_v18, %v3430_v57  ;;  %v3432_v30 = vpop.f32.mrb[71].mxu0  ;;  %v3600_v7 = vadd.f32 %v6752_v5, %v3599_v3 }
 0x2e1   :  { %v3905_v1 = vmin.f32 %v3841_v47, 1.0  ;;  %v3842_v41 = vmax.f32 %v3608_v0, 0.0 }
 0x2e2   :  { %v3903_v40 = vmin.f32 %v3839_v4, 1.0  ;;  %v3840_v32 = vmax.f32 %v3600_v7, 0.0 }
 0x2e3   :  { %3969 = vst [vmem:[%s7290_s3 + $0x30] sm:$0xff] %v3905_v1  ;;  %v3906_v34 = vmin.f32 %v3842_v41, 1.0  ;;  %v4620_v1 = vadd.f32 %v6680_v26, %v6756_v51 }
 0x2e4   :  { %3967 = vst [vmem:[%s7290_s3 + $0x20] sm:$0xff] %v3903_v40  ;;  %v3904_v14 = vmin.f32 %v3840_v32, 1.0  ;;  %v4458_v36 = vpop.f32.mrb[136].mxu1 }
 0x2e5   :  { %3970 = vst [vmem:[%s7290_s3 + $0x38] sm:$0xff] %v3906_v34  ;;  %v3435_v5 = vpop.f32.mrb[72].mxu0  ;;  %v3621_v60 = vadd.f32 %v6802_v11, %v4458_v36  ;;  %v3612_v8 = vpop.f32.mrb[137].mxu1  ;;  %v4622_v34 = vadd.f32 %v6680_v26, %v6765_v9 }
 0x2e6   :  { %3968 = vst [vmem:[%s7290_s3 + $0x28] sm:$0xff] %v3904_v14  ;;  %v6981_v24 = vadd.f32 %v4616_v37, %v3435_v5  ;;  %v3437_v38 = vpop.f32.mrb[73].mxu0  ;;  %v3613_v13 = vadd.f32 %v6787_v49, %v3612_v8  ;;  %v4459_v18 = vpop.f32.mrb[138].mxu1 }
 0x2e7   :  { %v3845_v35 = vmax.f32 %v3621_v60, 0.0  ;;  %v3438_v17 = vpop.f32.mrb[74].mxu0  ;;  %v3624_v61 = vadd.f32 %v6806_v21, %v4459_v18  ;;  %v3615_v47 = vpop.f32.mrb[139].mxu1 }
 0x2e8   :  { %v3843_v11 = vmax.f32 %v3613_v13, 0.0  ;;  %v6985_v57 = vadd.f32 %v4618_v52, %v3438_v17  ;;  %v3440_v0 = vpop.f32.mrb[75].mxu0  ;;  %v3616_v6 = vadd.f32 %v6794_v50, %v3615_v47  ;;  %v4624_v47 = vadd.f32 %v6680_v26, %v6780_v28 }
 0x2e9   :  { %v3909_v3 = vmin.f32 %v3845_v35, 1.0  ;;  %v3846_v4 = vmax.f32 %v3624_v61, 0.0 }
 0x2ea   :  { %v3907_v30 = vmin.f32 %v3843_v11, 1.0  ;;  %v3844_v7 = vmax.f32 %v3616_v6, 0.0 }
 0x2eb   :  { %3973 = vst [vmem:[%s7290_s3 + $0x50] sm:$0xff] %v3909_v3  ;;  %v3910_v49 = vmin.f32 %v3846_v4, 1.0  ;;  %v4626_v3 = vadd.f32 %v6680_v26, %v6789_v43 }
 0x2ec   :  { %3971 = vst [vmem:[%s7290_s3 + $0x40] sm:$0xff] %v3907_v30  ;;  %v3908_v21 = vmin.f32 %v3844_v7, 1.0  ;;  %v4462_v41 = vpop.f32.mrb[140].mxu1 }
 0x2ed   :  { %3974 = vst [vmem:[%s7290_s3 + $0x58] sm:$0xff] %v3910_v49  ;;  %v3443_v50 = vpop.f32.mrb[76].mxu0  ;;  %v3637_v40 = vadd.f32 %v6826_v10, %v4462_v41  ;;  %v3628_v32 = vpop.f32.mrb[141].mxu1 }
 0x2ee   :  { %3972 = vst [vmem:[%s7290_s3 + $0x48] sm:$0xff] %v3908_v21  ;;  %v7005_v51 = vadd.f32 %v4620_v1, %v3443_v50  ;;  %v3445_v37 = vpop.f32.mrb[77].mxu0  ;;  %v3629_v14 = vadd.f32 %v6814_v2, %v3628_v32  ;;  %v4463_v36 = vpop.f32.mrb[142].mxu1 }
 0x2ef   :  { %v3849_v5 = vmax.f32 %v3637_v40, 0.0  ;;  %v3446_v60 = vpop.f32.mrb[78].mxu0  ;;  %v3640_v8 = vadd.f32 %v6830_v33, %v4463_v36  ;;  %v3631_v52 = vpop.f32.mrb[143].mxu1  ;;  %v4628_v36 = vadd.f32 %v6680_v26, %v6798_v22 }
 0x2f0   :  { %v3847_v10 = vmax.f32 %v3629_v14, 0.0  ;;  %v7009_v38 = vadd.f32 %v4622_v34, %v3446_v60  ;;  %v3448_v13 = vpop.f32.mrb[79].mxu0  ;;  %v3632_v9 = vadd.f32 %v6818_v55, %v3631_v52  ;;  %v4630_v52 = vadd.f32 %v6680_v26, %v6804_v15 }
 0x2f1   :  { %v3913_v18 = vmin.f32 %v3849_v5, 1.0  ;;  %v3850_v35 = vmax.f32 %v3640_v8, 0.0 }
 0x2f2   :  { %v3911_v17 = vmin.f32 %v3847_v10, 1.0  ;;  %v3848_v61 = vmax.f32 %v3632_v9, 0.0 }
 0x2f3   :  { %3977 = vst [vmem:[%s7290_s3 + $0x70] sm:$0xff] %v3913_v18  ;;  %v3914_v2 = vmin.f32 %v3850_v35, 1.0 }
 0x2f4   :  { %3975 = vst [vmem:[%s7290_s3 + $0x60] sm:$0xff] %v3911_v17  ;;  %v3912_v33 = vmin.f32 %v3848_v61, 1.0  ;;  %v4466_v11 = vpop.f32.mrb[144].mxu1 }
 0x2f5   :  { %3978 = vst [vmem:[%s7290_s3 + $0x78] sm:$0xff] %v3914_v2  ;;  %v3451_v55 = vpop.f32.mrb[80].mxu0  ;;  %v3653_v0 = vadd.f32 %v6850_v44, %v4466_v11  ;;  %v3644_v6 = vpop.f32.mrb[145].mxu1 }
 0x2f6   :  { %3976 = vst [vmem:[%s7290_s3 + $0x68] sm:$0xff] %v3912_v33  ;;  %v7029_v28 = vadd.f32 %v4624_v47, %v3451_v55  ;;  %v3453_v4 = vpop.f32.mrb[81].mxu0  ;;  %v3645_v30 = vadd.f32 %v6838_v46, %v3644_v6  ;;  %v4467_v7 = vpop.f32.mrb[146].mxu1  ;;  %v4632_v6 = vadd.f32 %v6680_v26, %v6810_v31 }
 0x2f7   :  { %v3853_v49 = vmax.f32 %v3653_v0, 0.0  ;;  %v3454_v1 = vpop.f32.mrb[82].mxu0  ;;  %v3656_v21 = vadd.f32 %v6854_v48, %v4467_v7  ;;  %v3647_v41 = vpop.f32.mrb[147].mxu1  ;;  %v4634_v7 = vadd.f32 %v6680_v26, %v6816_v19 }
 0x2f8   :  { %v3851_v44 = vmax.f32 %v3645_v30, 0.0  ;;  %v7033_v50 = vadd.f32 %v4626_v3, %v3454_v1  ;;  %v3456_v40 = vpop.f32.mrb[83].mxu0  ;;  %v3648_v43 = vadd.f32 %v6842_v39, %v3647_v41 }
 0x2f9   :  { %v3917_v32 = vmin.f32 %v3853_v49, 1.0  ;;  %v3854_v34 = vmax.f32 %v3656_v21, 0.0 }
 0x2fa   :  { %v3915_v37 = vmin.f32 %v3851_v44, 1.0  ;;  %v3852_v14 = vmax.f32 %v3648_v43, 0.0 }
 0x2fb   :  { %3981 = vst [vmem:[%s7290_s3 + $0x90] sm:$0xff] %v3917_v32  ;;  %v3918_v46 = vmin.f32 %v3854_v34, 1.0 }
 0x2fc   :  { %3979 = vst [vmem:[%s7290_s3 + $0x80] sm:$0xff] %v3915_v37  ;;  %v3916_v48 = vmin.f32 %v3852_v14, 1.0  ;;  %v4470_v5 = vpop.f32.mrb[148].mxu1 }
 0x2fd   :  { %3982 = vst [vmem:[%s7290_s3 + $0x98] sm:$0xff] %v3918_v46  ;;  %v3459_v39 = vpop.f32.mrb[84].mxu0  ;;  %v3669_v60 = vadd.f32 %v6874_v25, %v4470_v5  ;;  %v3660_v8 = vpop.f32.mrb[149].mxu1 }
 0x2fe   :  { %3980 = vst [vmem:[%s7290_s3 + $0x88] sm:$0xff] %v3916_v48  ;;  %v7053_v22 = vadd.f32 %v4628_v36, %v3459_v39  ;;  %v3461_v10 = vpop.f32.mrb[85].mxu0  ;;  %v3661_v13 = vadd.f32 %v6862_v59, %v3660_v8  ;;  %v4471_v9 = vpop.f32.mrb[150].mxu1  ;;  %v4636_v48 = vadd.f32 %v6680_v26, %v6822_v58  ;;  %v4638_v8 = vadd.f32 %v6680_v26, %v6828_v20  ;;  %v7310_v20 = vld [vmem:[#allocation16_spill] sm:$0xff] }
 0x2ff   :  { %v3857_v18 = vmax.f32 %v3669_v60, 0.0  ;;  %v3462_v35 = vpop.f32.mrb[86].mxu0  ;;  %v3672_v17 = vadd.f32 %v6878_v45, %v4471_v9  ;;  %v3663_v61 = vpop.f32.mrb[151].mxu1 }
 0x300   :  { %v3855_v25 = vmax.f32 %v3661_v13, 0.0  ;;  %v7057_v2 = vadd.f32 %v4630_v52, %v3462_v35  ;;  %v3464_v47 = vpop.f32.mrb[87].mxu0  ;;  %v3664_v15 = vadd.f32 %v6866_v63, %v3663_v61  ;;  %v7309_v35 = vld [vmem:[#allocation19_spill] sm:$0xff] }
 0x301   :  { %v3921_v33 = vmin.f32 %v3857_v18, 1.0  ;;  %v3858_v11 = vmax.f32 %v3672_v17, 0.0 }
 0x302   :  { %v3919_v55 = vmin.f32 %v3855_v25, 1.0  ;;  %v3856_v0 = vmax.f32 %v3664_v15, 0.0 }
 0x303   :  { %3985 = vst [vmem:[%s7290_s3 + $0xb0] sm:$0xff] %v3921_v33  ;;  %v3922_v59 = vmin.f32 %v3858_v11, 1.0 }
 0x304   :  { %3983 = vst [vmem:[%s7290_s3 + $0xa0] sm:$0xff] %v3919_v55  ;;  %v3920_v45 = vmin.f32 %v3856_v0, 1.0  ;;  %v4474_v3 = vpop.f32.mrb[152].mxu1 }
 0x305   :  { %3986 = vst [vmem:[%s7290_s3 + $0xb8] sm:$0xff] %v3922_v59  ;;  %v3467_v63 = vpop.f32.mrb[88].mxu0  ;;  %v3685_v4 = vadd.f32 %v6898_v62, %v4474_v3  ;;  %v3676_v30 = vpop.f32.mrb[153].mxu1  ;;  %v7311_v59 = vld [vmem:[#allocation2_spill] sm:$0xff] }
 0x306   :  { %3984 = vst [vmem:[%s7290_s3 + $0xa8] sm:$0xff] %v3920_v45  ;;  %v7077_v31 = vadd.f32 %v4632_v6, %v3467_v63  ;;  %v3469_v49 = vpop.f32.mrb[89].mxu0  ;;  %v3677_v1 = vadd.f32 %v6886_v16, %v3676_v30  ;;  %v4475_v21 = vpop.f32.mrb[154].mxu1  ;;  %v4640_v6 = vadd.f32 %v6680_v26, %v7311_v59 }
 0x307   :  { %v3861_v41 = vmax.f32 %v3685_v4, 0.0  ;;  %v3470_v44 = vpop.f32.mrb[90].mxu0  ;;  %v3688_v40 = vadd.f32 %v6902_v27, %v4475_v21  ;;  %v3679_v43 = vpop.f32.mrb[155].mxu1 }
 0x308   :  { %v3859_v62 = vmax.f32 %v3677_v1, 0.0  ;;  %v7081_v32 = vadd.f32 %v4634_v7, %v3470_v44  ;;  %v3472_v34 = vpop.f32.mrb[91].mxu0  ;;  %v3680_v19 = vadd.f32 %v6890_v42, %v3679_v43  ;;  %v7312_v7 = vld [vmem:[#allocation3_spill] sm:$0xff] }
 0x309   :  { %v3925_v37 = vmin.f32 %v3861_v41, 1.0  ;;  %v3862_v14 = vmax.f32 %v3688_v40, 0.0  ;;  %v4642_v49 = vadd.f32 %v6680_v26, %v7312_v7 }
 0x30a   :  { %v3923_v46 = vmin.f32 %v3859_v62, 1.0  ;;  %v3860_v36 = vmax.f32 %v3680_v19, 0.0 }
 0x30b   :  { %3989 = vst [vmem:[%s7290_s3 + $0xd0] sm:$0xff] %v3925_v37  ;;  %v3926_v16 = vmin.f32 %v3862_v14, 1.0 }
 0x30c   :  { %3987 = vst [vmem:[%s7290_s3 + $0xc0] sm:$0xff] %v3923_v46  ;;  %v3924_v27 = vmin.f32 %v3860_v36, 1.0  ;;  %v4478_v5 = vpop.f32.mrb[156].mxu1 }
 0x30d   :  { %3990 = vst [vmem:[%s7290_s3 + $0xd8] sm:$0xff] %v3926_v16  ;;  %v3475_v42 = vpop.f32.mrb[92].mxu0  ;;  %v3701_v39 = vadd.f32 %v6922_v12, %v4478_v5  ;;  %v3692_v60 = vpop.f32.mrb[157].mxu1 }
 0x30e   :  { %3988 = vst [vmem:[%s7290_s3 + $0xc8] sm:$0xff] %v3924_v27  ;;  %v7101_v58 = vadd.f32 %v4636_v48, %v3475_v42  ;;  %v3477_v52 = vpop.f32.mrb[93].mxu0  ;;  %v3693_v10 = vadd.f32 %v6910_v56, %v3692_v60  ;;  %v4479_v13 = vpop.f32.mrb[158].mxu1  ;;  %v7313_v27 = vld [vmem:[#allocation4_spill] sm:$0xff] }
 0x30f   :  { %v3865_v9 = vmax.f32 %v3701_v39, 0.0  ;;  %v3478_v18 = vpop.f32.mrb[94].mxu0  ;;  %v3704_v17 = vadd.f32 %v7309_v35, %v4479_v13  ;;  %v3695_v61 = vpop.f32.mrb[159].mxu1  ;;  %v4644_v5 = vadd.f32 %v6680_v26, %v7313_v27 }
 0x310   :  { %v3863_v12 = vmax.f32 %v3693_v10, 0.0  ;;  %v7105_v25 = vadd.f32 %v4638_v8, %v3478_v18  ;;  %v3480_v47 = vpop.f32.mrb[95].mxu0  ;;  %v3696_v15 = vadd.f32 %v7310_v20, %v3695_v61  ;;  %v7314_v8 = vld [vmem:[#allocation5_spill] sm:$0xff] }
 0x311   :  { %v3929_v33 = vmin.f32 %v3865_v9, 1.0  ;;  %v3866_v11 = vmax.f32 %v3704_v17, 0.0  ;;  %v4646_v52 = vadd.f32 %v6680_v26, %v7314_v8 }
 0x312   :  { %v3927_v55 = vmin.f32 %v3863_v12, 1.0  ;;  %v3864_v0 = vmax.f32 %v3696_v15, 0.0 }
 0x313   :  { %3993 = vst [vmem:[%s7290_s3 + $0xf0] sm:$0xff] %v3929_v33  ;;  %v3930_v56 = vmin.f32 %v3866_v11, 1.0 }
 0x314   :  { %3991 = vst [vmem:[%s7290_s3 + $0xe0] sm:$0xff] %v3927_v55  ;;  %v3928_v45 = vmin.f32 %v3864_v0, 1.0  ;;  %v4482_v3 = vpop.f32.mrb[160].mxu1 }
 0x315   :  { %3994 = vst [vmem:[%s7290_s3 + $0xf8] sm:$0xff] %v3930_v56  ;;  %v3483_v63 = vpop.f32.mrb[96].mxu0  ;;  %v3717_v4 = vadd.f32 %v6957_v54, %v4482_v3  ;;  %v3708_v30 = vpop.f32.mrb[161].mxu1  ;;  %v7315_v56 = vld [vmem:[#allocation6_spill] sm:$0xff] }
 0x316   :  { %3992 = vst [vmem:[%s7290_s3 + $0xe8] sm:$0xff] %v3928_v45  ;;  %v7125_v1 = vadd.f32 %v4640_v6, %v3483_v63  ;;  %v3485_v21 = vpop.f32.mrb[97].mxu0  ;;  %v3709_v41 = vadd.f32 %v6933_v23, %v3708_v30  ;;  %v4483_v44 = vpop.f32.mrb[162].mxu1  ;;  %v4648_v59 = vadd.f32 %v6680_v26, %v7315_v56  ;;  %v7171_v63 = vld [vmem:[%s7289_s2] ss:$0 sm:$0xff]  ;;  %v7316_v26 = vld [vmem:[#allocation7_spill] sm:$0xff] }
 0x317   :  { %v3869_v40 = vmax.f32 %v3717_v4, 0.0  ;;  %v3486_v43 = vpop.f32.mrb[98].mxu0  ;;  %v3720_v62 = vadd.f32 %v6961_v53, %v4483_v44  ;;  %v3711_v34 = vpop.f32.mrb[163].mxu1  ;;  %v4650_v4 = vadd.f32 %v7171_v63, %v7316_v26  ;;  %v7320_v56 = vld [vmem:[#allocation11_spill] sm:$0xff] }
 0x318   :  { %v3867_v54 = vmax.f32 %v3709_v41, 0.0  ;;  %v7129_v19 = vadd.f32 %v4642_v49, %v3486_v43  ;;  %v3488_v37 = vpop.f32.mrb[99].mxu0  ;;  %v3712_v14 = vadd.f32 %v6937_v29, %v3711_v34 }
 0x319   :  { %v3933_v46 = vmin.f32 %v3869_v40, 1.0  ;;  %v3870_v36 = vmax.f32 %v3720_v62, 0.0 }
 0x31a   :  { %v3931_v16 = vmin.f32 %v3867_v54, 1.0  ;;  %v3868_v48 = vmax.f32 %v3712_v14, 0.0 }
 0x31b   :  { %3997 = vst [vmem:[%s7290_s3 + $0x110] sm:$0xff] %v3933_v46  ;;  %v3934_v23 = vmin.f32 %v3870_v36, 1.0 }
 0x31c   :  { %3995 = vst [vmem:[%s7290_s3 + $0x100] sm:$0xff] %v3931_v16  ;;  %v3932_v53 = vmin.f32 %v3868_v48, 1.0  ;;  %v4486_v42 = vpop.f32.mrb[164].mxu1  ;;  %v7317_v16 = vld [vmem:[#allocation8_spill] sm:$0xff] }
 0x31d   :  { %3998 = vst [vmem:[%s7290_s3 + $0x118] sm:$0xff] %v3934_v23  ;;  %v3491_v29 = vpop.f32.mrb[100].mxu0  ;;  %v3733_v39 = vadd.f32 %v7005_v51, %v4486_v42  ;;  %v3724_v60 = vpop.f32.mrb[165].mxu1  ;;  %v4652_v48 = vadd.f32 %v7171_v63, %v7317_v16 }
 0x31e   :  { %3996 = vst [vmem:[%s7290_s3 + $0x108] sm:$0xff] %v3932_v53  ;;  %v7149_v10 = vadd.f32 %v4644_v5, %v3491_v29  ;;  %v3493_v13 = vpop.f32.mrb[101].mxu0  ;;  %v3725_v9 = vadd.f32 %v6981_v24, %v3724_v60  ;;  %v4487_v18 = vpop.f32.mrb[166].mxu1  ;;  %v7318_v53 = vld [vmem:[#allocation9_spill] sm:$0xff] }
 0x31f   :  { %v3873_v35 = vmax.f32 %v3733_v39, 0.0  ;;  %v3494_v17 = vpop.f32.mrb[102].mxu0  ;;  %v3736_v61 = vadd.f32 %v7009_v38, %v4487_v18  ;;  %v3727_v12 = vpop.f32.mrb[167].mxu1  ;;  %v4654_v42 = vadd.f32 %v7171_v63, %v7318_v53 }
 0x320   :  { %v3871_v51 = vmax.f32 %v3725_v9, 0.0  ;;  %v7153_v47 = vadd.f32 %v4646_v52, %v3494_v17  ;;  %v3496_v20 = vpop.f32.mrb[103].mxu0  ;;  %v3728_v15 = vadd.f32 %v6985_v57, %v3727_v12 }
 0x321   :  { %v3937_v33 = vmin.f32 %v3873_v35, 1.0  ;;  %v3874_v11 = vmax.f32 %v3736_v61, 0.0 }
 0x322   :  { %v3935_v55 = vmin.f32 %v3871_v51, 1.0  ;;  %v3872_v0 = vmax.f32 %v3728_v15, 0.0 }
 0x323   :  { %4001 = vst [vmem:[%s7290_s3 + $0x130] sm:$0xff] %v3937_v33  ;;  %v3938_v24 = vmin.f32 %v3874_v11, 1.0  ;;  %v7319_v33 = vld [vmem:[#allocation10_spill] sm:$0xff] }
 0x324   :  { %3999 = vst [vmem:[%s7290_s3 + $0x120] sm:$0xff] %v3935_v55  ;;  %v3936_v38 = vmin.f32 %v3872_v0, 1.0  ;;  %v4490_v6 = vpop.f32.mrb[168].mxu1  ;;  %v4656_v11 = vadd.f32 %v7171_v63, %v7319_v33 }
 0x325   :  { %4002 = vst [vmem:[%s7290_s3 + $0x138] sm:$0xff] %v3938_v24  ;;  %v3499_v57 = vpop.f32.mrb[104].mxu0  ;;  %v3749_v45 = vadd.f32 %v7053_v22, %v4490_v6  ;;  %v3740_v3 = vpop.f32.mrb[169].mxu1 }
 0x326   :  { %4000 = vst [vmem:[%s7290_s3 + $0x128] sm:$0xff] %v3936_v38  ;;  %v7178_v30 = vadd.f32 %v4648_v59, %v3499_v57  ;;  %v3501_v7 = vpop.f32.mrb[105].mxu0  ;;  %v3741_v49 = vadd.f32 %v7029_v28, %v3740_v3  ;;  %v4491_v21 = vpop.f32.mrb[170].mxu1  ;;  %v4658_v59 = vadd.f32 %v7171_v63, %v7320_v56 }
 0x327   :  { %v3877_v22 = vmax.f32 %v3749_v45, 0.0  ;;  %v3502_v41 = vpop.f32.mrb[106].mxu0  ;;  %v3752_v44 = vadd.f32 %v7057_v2, %v4491_v21  ;;  %v3743_v40 = vpop.f32.mrb[171].mxu1 }
 0x328   :  { %v3875_v43 = vmax.f32 %v3741_v49, 0.0  ;;  %v7182_v62 = vadd.f32 %v4650_v4, %v3502_v41  ;;  %v3504_v34 = vpop.f32.mrb[107].mxu0  ;;  %v3744_v54 = vadd.f32 %v7033_v50, %v3743_v40 }
 0x329   :  { %v3941_v37 = vmin.f32 %v3877_v22, 1.0  ;;  %v3878_v14 = vmax.f32 %v3752_v44, 0.0  ;;  %v7321_v34 = vld [vmem:[#allocation12_spill] sm:$0xff] }
 0x32a   :  { %v3939_v46 = vmin.f32 %v3875_v43, 1.0  ;;  %v3876_v36 = vmax.f32 %v3744_v54, 0.0  ;;  %v4660_v54 = vadd.f32 %v7171_v63, %v7321_v34 }
 0x32b   :  { %4005 = vst [vmem:[%s7290_s3 + $0x150] sm:$0xff] %v3941_v37  ;;  %v3942_v28 = vmin.f32 %v3878_v14, 1.0 }
 0x32c   :  { %4003 = vst [vmem:[%s7290_s3 + $0x140] sm:$0xff] %v3939_v46  ;;  %v3940_v2 = vmin.f32 %v3876_v36, 1.0  ;;  %v4494_v23 = vpop.f32.mrb[172].mxu1  ;;  %v7322_v36 = vld [vmem:[#allocation13_spill] sm:$0xff] }
 0x32d   :  { %4006 = vst [vmem:[%s7290_s3 + $0x158] sm:$0xff] %v3942_v28  ;;  %v3507_v50 = vpop.f32.mrb[108].mxu0  ;;  %v3765_v27 = vadd.f32 %v7101_v58, %v4494_v23  ;;  %v3756_v5 = vpop.f32.mrb[173].mxu1  ;;  %v4662_v28 = vadd.f32 %v7171_v63, %v7322_v36 }
 0x32e   :  { %4004 = vst [vmem:[%s7290_s3 + $0x148] sm:$0xff] %v3940_v2  ;;  %v4653_v29 = vadd.f32 %v4652_v48, %v3507_v50  ;;  %v3509_v39 = vpop.f32.mrb[109].mxu0  ;;  %v3757_v60 = vadd.f32 %v7077_v31, %v3756_v5  ;;  %v4495_v8 = vpop.f32.mrb[174].mxu1 }
 0x32f   :  { %v3881_v52 = vmax.f32 %v3765_v27, 0.0  ;;  %v3510_v13 = vpop.f32.mrb[110].mxu0  ;;  %v3768_v9 = vadd.f32 %v7105_v25, %v4495_v8  ;;  %v3759_v18 = vpop.f32.mrb[175].mxu1 }
 0x330   :  { %v3879_v35 = vmax.f32 %v3757_v60, 0.0  ;;  %v4655_v58 = vadd.f32 %v4654_v42, %v3510_v13  ;;  %v3512_v17 = vpop.f32.mrb[111].mxu0  ;;  %v3760_v61 = vadd.f32 %v7081_v32, %v3759_v18 }
 0x331   :  { %v3945_v12 = vmin.f32 %v3881_v52, 1.0  ;;  %v3882_v51 = vmax.f32 %v3768_v9, 0.0 }
 0x332   :  { %v3943_v20 = vmin.f32 %v3879_v35, 1.0  ;;  %v3880_v15 = vmax.f32 %v3760_v61, 0.0 }
 0x333   :  { %4009 = vst [vmem:[%s7290_s3 + $0x170] sm:$0xff] %v3945_v12  ;;  %v3946_v31 = vmin.f32 %v3882_v51, 1.0  ;;  %v7324_v51 = vld [vmem:[#allocation15_spill] sm:$0xff] }
 0x334   :  { %4007 = vst [vmem:[%s7290_s3 + $0x160] sm:$0xff] %v3943_v20  ;;  %v3944_v25 = vmin.f32 %v3880_v15, 1.0  ;;  %v4498_v55 = vpop.f32.mrb[176].mxu1  ;;  %v4666_v20 = vadd.f32 %v7171_v63, %v7324_v51 }
 0x335   :  { %4010 = vst [vmem:[%s7290_s3 + $0x178] sm:$0xff] %v3946_v31  ;;  %v3515_v32 = vpop.f32.mrb[112].mxu0  ;;  %v3781_v0 = vadd.f32 %v7149_v10, %v4498_v55  ;;  %v3772_v24 = vpop.f32.mrb[177].mxu1 }
 0x336   :  { %4008 = vst [vmem:[%s7290_s3 + $0x168] sm:$0xff] %v3944_v25  ;;  %v4657_v38 = vadd.f32 %v4656_v11, %v3515_v32  ;;  %v3517_v6 = vpop.f32.mrb[113].mxu0  ;;  %v3773_v57 = vadd.f32 %v7125_v1, %v3772_v24  ;;  %v4499_v45 = vpop.f32.mrb[178].mxu1 }
 0x337   :  { %v3885_v3 = vmax.f32 %v3781_v0, 0.0  ;;  %v3518_v26 = vpop.f32.mrb[114].mxu0  ;;  %v3784_v4 = vadd.f32 %v7153_v47, %v4499_v45  ;;  %v3775_v7 = vpop.f32.mrb[179].mxu1 }
 0x338   :  { %v3883_v49 = vmax.f32 %v3773_v57, 0.0  ;;  %v4659_v10 = vadd.f32 %v4658_v59, %v3518_v26  ;;  %v3520_v21 = vpop.f32.mrb[115].mxu0  ;;  %v3776_v22 = vadd.f32 %v7129_v19, %v3775_v7  ;;  %v7325_v7 = vld [vmem:[#allocation17_spill] sm:$0xff] }
 0x339   :  { %v3949_v41 = vmin.f32 %v3885_v3, 1.0  ;;  %v3886_v44 = vmax.f32 %v3784_v4, 0.0 }
 0x33a   :  { %v3947_v40 = vmin.f32 %v3883_v49, 1.0  ;;  %v3884_v43 = vmax.f32 %v3776_v22, 0.0 }
 0x33b   :  { %4013 = vst [vmem:[%s7290_s3 + $0x190] sm:$0xff] %v3949_v41  ;;  %v3950_v1 = vmin.f32 %v3886_v44, 1.0  ;;  %v7326_v41 = vld [vmem:[#allocation18_spill] sm:$0xff] }
 0x33c   :  { %4011 = vst [vmem:[%s7290_s3 + $0x180] sm:$0xff] %v3947_v40  ;;  %v3948_v47 = vmin.f32 %v3884_v43, 1.0  ;;  %v4502_v37 = vpop.f32.mrb[180].mxu1  ;;  %v4670_v44 = vadd.f32 %v7171_v63, %v7326_v41 }
 0x33d   :  { %4014 = vst [vmem:[%s7290_s3 + $0x198] sm:$0xff] %v3950_v1  ;;  %v3523_v19 = vpop.f32.mrb[116].mxu0  ;;  %v3797_v14 = vadd.f32 %v4653_v29, %v4502_v37  ;;  %v3788_v46 = vpop.f32.mrb[181].mxu1 }
 0x33e   :  { %4012 = vst [vmem:[%s7290_s3 + $0x188] sm:$0xff] %v3948_v47  ;;  %v4661_v16 = vadd.f32 %v4660_v54, %v3523_v19  ;;  %v3525_v48 = vpop.f32.mrb[117].mxu0  ;;  %v3789_v2 = vadd.f32 %v7178_v30, %v3788_v46  ;;  %v4503_v23 = vpop.f32.mrb[182].mxu1  ;;  %v7323_v30 = vld [vmem:[#allocation14_spill] sm:$0xff] }
 0x33f   :  { %v3889_v50 = vmax.f32 %v3797_v14, 0.0  ;;  %v3526_v27 = vpop.f32.mrb[118].mxu0  ;;  %v3800_v5 = vadd.f32 %v4655_v58, %v4503_v23  ;;  %v3791_v53 = vpop.f32.mrb[183].mxu1  ;;  %v4664_v35 = vadd.f32 %v7171_v63, %v7323_v30 }
 0x340   :  { %v3887_v42 = vmax.f32 %v3789_v2, 0.0  ;;  %v4663_v39 = vadd.f32 %v4662_v28, %v3526_v27  ;;  %v3528_v29 = vpop.f32.mrb[119].mxu0  ;;  %v3792_v60 = vadd.f32 %v7182_v62, %v3791_v53 }
 0x341   :  { %v3953_v8 = vmin.f32 %v3889_v50, 1.0  ;;  %v3890_v52 = vmax.f32 %v3800_v5, 0.0 }
 0x342   :  { %v3951_v13 = vmin.f32 %v3887_v42, 1.0  ;;  %v3888_v9 = vmax.f32 %v3792_v60, 0.0 }
 0x343   :  { %4017 = vst [vmem:[%s7290_s3 + $0x1b0] sm:$0xff] %v3953_v8  ;;  %v3954_v18 = vmin.f32 %v3890_v52, 1.0 }
 0x344   :  { %4015 = vst [vmem:[%s7290_s3 + $0x1a0] sm:$0xff] %v3951_v13  ;;  %v3952_v58 = vmin.f32 %v3888_v9, 1.0  ;;  %v4506_v17 = vpop.f32.mrb[184].mxu1 }
 0x345   :  { %4018 = vst [vmem:[%s7290_s3 + $0x1b8] sm:$0xff] %v3954_v18  ;;  %v3531_v62 = vpop.f32.mrb[120].mxu0  ;;  %v3813_v61 = vadd.f32 %v4661_v16, %v4506_v17  ;;  %v3804_v12 = vpop.f32.mrb[185].mxu1 }
 0x346   :  { %4016 = vst [vmem:[%s7290_s3 + $0x1a8] sm:$0xff] %v3952_v58  ;;  %v4665_v15 = vadd.f32 %v4664_v35, %v3531_v62  ;;  %v3533_v31 = vpop.f32.mrb[121].mxu0  ;;  %v3805_v33 = vadd.f32 %v4657_v38, %v3804_v12  ;;  %v4507_v11 = vpop.f32.mrb[186].mxu1  ;;  %v4668_v38 = vadd.f32 %v7171_v63, %v7325_v7 }
 0x347   :  { %v3893_v25 = vmax.f32 %v3813_v61, 0.0  ;;  %v3534_v55 = vpop.f32.mrb[122].mxu0  ;;  %v3816_v32 = vadd.f32 %v4663_v39, %v4507_v11  ;;  %v3807_v0 = vpop.f32.mrb[187].mxu1 }
 0x348   :  { %v3891_v24 = vmax.f32 %v3805_v33, 0.0  ;;  %v4667_v56 = vadd.f32 %v4666_v20, %v3534_v55  ;;  %v3536_v59 = vpop.f32.mrb[123].mxu0  ;;  %v3808_v6 = vadd.f32 %v4659_v10, %v3807_v0 }
 0x349   :  { %v3957_v57 = vmin.f32 %v3893_v25, 1.0  ;;  %v3894_v45 = vmax.f32 %v3816_v32, 0.0 }
 0x34a   :  { %v3955_v3 = vmin.f32 %v3891_v24, 1.0  ;;  %v3892_v26 = vmax.f32 %v3808_v6, 0.0 }
 0x34b   :  { %4021 = vst [vmem:[%s7290_s3 + $0x1d0] sm:$0xff] %v3957_v57  ;;  %v3958_v4 = vmin.f32 %v3894_v45, 1.0 }
 0x34c   :  { %4019 = vst [vmem:[%s7290_s3 + $0x1c0] sm:$0xff] %v3955_v3  ;;  %v3956_v49 = vmin.f32 %v3892_v26, 1.0  ;;  %v4510_v21 = vpop.f32.mrb[188].mxu1 }
 0x34d   :  { %4022 = vst [vmem:[%s7290_s3 + $0x1d8] sm:$0xff] %v3958_v4  ;;  %v3539_v10 = vpop.f32.mrb[124].mxu0  ;;  %v3820_v22 = vpop.f32.mrb[189].mxu1 }
 0x34e   :  { %4020 = vst [vmem:[%s7290_s3 + $0x1c8] sm:$0xff] %v3956_v49  ;;  %v4669_v40 = vadd.f32 %v4668_v38, %v3539_v10  ;;  %v3541_v43 = vpop.f32.mrb[125].mxu0  ;;  %v3821_v1 = vadd.f32 %v4665_v15, %v3820_v22  ;;  %v4511_v34 = vpop.f32.mrb[190].mxu1 }
 0x34f   :  { %v3542_v54 = vpop.f32.mrb[126].mxu0  ;;  %v3823_v47 = vpop.f32.mrb[191].mxu1 }
 0x350   :  { %v3829_v37 = vadd.f32 %v4669_v40, %v4510_v21  ;;  %v3895_v19 = vmax.f32 %v3821_v1, 0.0  ;;  %v4671_v14 = vadd.f32 %v4670_v44, %v3542_v54  ;;  %v3544_v46 = vpop.f32.mrb[127].mxu0  ;;  %v3824_v36 = vadd.f32 %v4667_v56, %v3823_v47 }
 0x352   :  { %v3897_v28 = vmax.f32 %v3829_v37, 0.0  ;;  %v3959_v16 = vmin.f32 %v3895_v19, 1.0  ;;  %v3832_v48 = vadd.f32 %v4671_v14, %v4511_v34  ;;  %v3896_v2 = vmax.f32 %v3824_v36, 0.0 }
 0x354   :  { %v3961_v63 = vmin.f32 %v3897_v28, 1.0  ;;  %4023 = vst [vmem:[%s7290_s3 + $0x1e0] sm:$0xff] %v3959_v16  ;;  %v3898_v23 = vmax.f32 %v3832_v48, 0.0  ;;  %v3960_v50 = vmin.f32 %v3896_v2, 1.0 }
 0x356   :  { %4025 = vst [vmem:[%s7290_s3 + $0x1f0] sm:$0xff] %v3961_v63  ;;  %v3962_v27 = vmin.f32 %v3898_v23, 1.0  ;;  %4024 = vst [vmem:[%s7290_s3 + $0x1e8] sm:$0xff] %v3960_v50 }
 0x358   :  { %4026 = vst [vmem:[%s7290_s3 + $0x1f8] sm:$0xff] %v3962_v27 }

// kernel: a_call__.8
= control target key start
LH: loop header
LB: loop body
LE: loop exit
PB: predicated region body
PF: predicated region fallthrough
CT: control target
= control target key end

     0   :  { %s2826_s1 = inlined_call_operand.vmem [shape: bf16[1152,128], index: 1, kind: input, shape index: {}]   ;;  %s2827_s0 = inlined_call_operand.vmem [shape: bf16[128,1152], index: 0, kind: input, shape index: {}]   ;;  %s2828_s2 = inlined_call_operand.vmem [shape: f32[1,128], index: 2, kind: input, shape index: {}]   ;;  %s2829_s3 = inlined_call_operand.vmem [shape: f32[128,128], index: 3, kind: output, shape index: {}]  }
   0x1   :  { %v2048_v0 = vld [vmem:[%s2826_s1 + $0x40] sm:$0xff]   ;;  %v2052_v4 = vld [vmem:[%s2826_s1 + $0x48] sm:$0xff]   ;;  %v2056_v8 = vld [vmem:[%s2826_s1 + $0x50] sm:$0xff]  }
   0x2   :  { %v2049_v1 = vld [vmem:[%s2826_s1 + $0xc0] sm:$0xff]   ;;  %1728 = vmatprep.subr.bf16.mxu0 %v2048_v0  ;;  %v2053_v5 = vld [vmem:[%s2826_s1 + $0xc8] sm:$0xff]   ;;  %v2057_v9 = vld [vmem:[%s2826_s1 + $0xd0] sm:$0xff]  }
   0x3   :  { %v2050_v2 = vld [vmem:[%s2826_s1] sm:$0xff]   ;;  %1792 = vmatprep.subr.bf16.mxu1 %v2049_v1  ;;  %v2054_v6 = vld [vmem:[%s2826_s1 + $0x8] sm:$0xff]   ;;  %v2058_v10 = vld [vmem:[%s2826_s1 + $0x10] sm:$0xff]  }
   0x4   :  { %v2051_v3 = vld [vmem:[%s2826_s1 + $0x80] sm:$0xff]   ;;  %1729 = vmatpush3.bf16.msra.mxu0 %v2050_v2  ;;  %v2055_v7 = vld [vmem:[%s2826_s1 + $0x88] sm:$0xff]   ;;  %v2059_v11 = vld [vmem:[%s2826_s1 + $0x90] sm:$0xff]  }
   0x5   :  { %1793 = vmatpush3.bf16.msra.mxu1 %v2051_v3  ;;  %1730 = vmatprep.subr.bf16.mxu0 %v2052_v4  ;;  %v2060_v12 = vld [vmem:[%s2826_s1 + $0x58] sm:$0xff]   ;;  %v2064_v16 = vld [vmem:[%s2826_s1 + $0x60] sm:$0xff]   ;;  %v2068_v20 = vld [vmem:[%s2826_s1 + $0x68] sm:$0xff]  }
   0x6   :  { %1794 = vmatprep.subr.bf16.mxu1 %v2053_v5  ;;  %v2061_v13 = vld [vmem:[%s2826_s1 + $0xd8] sm:$0xff]   ;;  %v2065_v17 = vld [vmem:[%s2826_s1 + $0xe0] sm:$0xff]   ;;  %v2069_v21 = vld [vmem:[%s2826_s1 + $0xe8] sm:$0xff]  }
   0x7   :  { %v2062_v14 = vld [vmem:[%s2826_s1 + $0x18] sm:$0xff]   ;;  %v2066_v18 = vld [vmem:[%s2826_s1 + $0x20] sm:$0xff]   ;;  %v2070_v22 = vld [vmem:[%s2826_s1 + $0x28] sm:$0xff]  }
   0x8   :  { %1731 = vmatpush3.bf16.msra.mxu0 %v2054_v6  ;;  %v2063_v15 = vld [vmem:[%s2826_s1 + $0x98] sm:$0xff]   ;;  %v2067_v19 = vld [vmem:[%s2826_s1 + $0xa0] sm:$0xff]   ;;  %v2071_v23 = vld [vmem:[%s2826_s1 + $0xa8] sm:$0xff]  }
   0x9   :  { %1795 = vmatpush3.bf16.msra.mxu1 %v2055_v7  ;;  %1732 = vmatprep.subr.bf16.mxu0 %v2056_v8  ;;  %v2072_v24 = vld [vmem:[%s2826_s1 + $0x70] sm:$0xff]   ;;  %v2076_v28 = vld [vmem:[%s2826_s1 + $0x78] sm:$0xff]   ;;  %v2080_v32 = vld [vmem:[%s2827_s0] ss:$36 sps:$4 sm:$0xff]  }
   0xa   :  { %1796 = vmatprep.subr.bf16.mxu1 %v2057_v9  ;;  %v2073_v25 = vld [vmem:[%s2826_s1 + $0xf0] sm:$0xff]   ;;  %v2077_v29 = vld [vmem:[%s2826_s1 + $0xf8] sm:$0xff]   ;;  %v2082_v33 = vld [vmem:[%s2827_s0 + $0x4] ss:$36 sps:$4 sm:$0xff]  }
   0xb   :  { %v2074_v26 = vld [vmem:[%s2826_s1 + $0x30] sm:$0xff]   ;;  %v2078_v30 = vld [vmem:[%s2826_s1 + $0x38] sm:$0xff]   ;;  %v2083_v34 = vld [vmem:[%s2827_s0 + $0x8] ss:$36 sps:$4 sm:$0xff]   ;;  %1078 = vmatprep.mubr.bf16.mxu0 %v2082_v33 }
   0xc   :  { %1733 = vmatpush3.bf16.msra.mxu0 %v2058_v10  ;;  %v2075_v27 = vld [vmem:[%s2826_s1 + $0xb0] sm:$0xff]   ;;  %v2079_v31 = vld [vmem:[%s2826_s1 + $0xb8] sm:$0xff]   ;;  %v2086_v36 = vld [vmem:[%s2826_s1 + $0x140] sm:$0xff]  }
   0xd   :  { %1797 = vmatpush3.bf16.msra.mxu1 %v2059_v11  ;;  %1734 = vmatprep.subr.bf16.mxu0 %v2060_v12  ;;  %v2085_v35 = vld [vmem:[%s2827_s0 + $0xc] ss:$36 sps:$4 sm:$0xff]   ;;  %v2087_v37 = vld [vmem:[%s2826_s1 + $0x1c0] sm:$0xff]   ;;  %v2092_v41 = vld [vmem:[%s2827_s0 + $0x54] ss:$36 sps:$4 sm:$0xff]  }
   0xe   :  { %1798 = vmatprep.subr.bf16.mxu1 %v2061_v13  ;;  %1175 = vmatprep.mubr.bf16.mxu1 %v2085_v35  ;;  %v2088_v38 = vld [vmem:[%s2826_s1 + $0x100] sm:$0xff]   ;;  %v2090_v40 = vld [vmem:[%s2827_s0 + $0x4c] ss:$36 sps:$4 sm:$0xff]   ;;  %v2100_v48 = vld [vmem:[%s2827_s0 + $0x94] ss:$36 sps:$4 sm:$0xff]  }
   0xf   :  { %v2089_v39 = vld [vmem:[%s2826_s1 + $0x180] sm:$0xff]   ;;  %v2094_v42 = vld [vmem:[%s2827_s0 + $0x48] ss:$36 sps:$4 sm:$0xff]   ;;  %v2095_v43 = vld [vmem:[%s2827_s0 + $0x50] ss:$36 sps:$4 sm:$0xff]  }
  0x10   :  { %1735 = vmatpush3.bf16.msra.mxu0 %v2062_v14  ;;  %v2096_v44 = vld [vmem:[%s2826_s1 + $0x148] sm:$0xff]   ;;  %v2102_v49 = vld [vmem:[%s2827_s0 + $0x9c] ss:$36 sps:$4 sm:$0xff]   ;;  %v2104_v50 = vld [vmem:[%s2827_s0 + $0x90] ss:$36 sps:$4 sm:$0xff]  }
  0x11   :  { %1799 = vmatpush3.bf16.msra.mxu1 %v2063_v15  ;;  %1736 = vmatprep.subr.bf16.mxu0 %v2064_v16  ;;  %v2097_v45 = vld [vmem:[%s2826_s1 + $0x1c8] sm:$0xff]   ;;  %v2105_v51 = vld [vmem:[%s2827_s0 + $0x98] ss:$36 sps:$4 sm:$0xff]   ;;  %v2106_v52 = vld [vmem:[%s2826_s1 + $0x150] sm:$0xff]  }
  0x12   :  { %1800 = vmatprep.subr.bf16.mxu1 %v2065_v17  ;;  %v2098_v46 = vld [vmem:[%s2826_s1 + $0x108] sm:$0xff]   ;;  %v2107_v53 = vld [vmem:[%s2826_s1 + $0x1d0] sm:$0xff]   ;;  %v2110_v56 = vld [vmem:[%s2827_s0 + $0xdc] ss:$36 sps:$4 sm:$0xff]  }
  0x13   :  { %v2099_v47 = vld [vmem:[%s2826_s1 + $0x188] sm:$0xff]   ;;  %v2108_v54 = vld [vmem:[%s2826_s1 + $0x110] sm:$0xff]   ;;  %v2114_v58 = vld [vmem:[%s2827_s0 + $0xd8] ss:$36 sps:$4 sm:$0xff]  }
  0x14   :  { %1737 = vmatpush3.bf16.msra.mxu0 %v2066_v18  ;;  %v2109_v55 = vld [vmem:[%s2826_s1 + $0x190] sm:$0xff]   ;;  %v2112_v57 = vld [vmem:[%s2827_s0 + $0xe4] ss:$36 sps:$4 sm:$0xff]   ;;  %v2116_v60 = vld [vmem:[%s2826_s1 + $0x158] sm:$0xff]  }
  0x15   :  { %1801 = vmatpush3.bf16.msra.mxu1 %v2067_v19  ;;  %1738 = vmatprep.subr.bf16.mxu0 %v2068_v20  ;;  %v2115_v59 = vld [vmem:[%s2827_s0 + $0xe0] ss:$36 sps:$4 sm:$0xff]   ;;  %v2117_v61 = vld [vmem:[%s2826_s1 + $0x1d8] sm:$0xff]   ;;  %v2122_v1 = vld [vmem:[%s2827_s0 + $0x12c] ss:$36 sps:$4 sm:$0xff]  }
  0x16   :  { %1802 = vmatprep.subr.bf16.mxu1 %v2069_v21  ;;  %v2118_v62 = vld [vmem:[%s2826_s1 + $0x118] sm:$0xff]   ;;  %v2120_v0 = vld [vmem:[%s2827_s0 + $0x124] ss:$36 sps:$4 sm:$0xff]   ;;  %v2130_v8 = vld [vmem:[%s2827_s0 + $0x16c] ss:$36 sps:$4 sm:$0xff]  }
  0x17   :  { %v2119_v63 = vld [vmem:[%s2826_s1 + $0x198] sm:$0xff]   ;;  %v2124_v2 = vld [vmem:[%s2827_s0 + $0x120] ss:$36 sps:$4 sm:$0xff]   ;;  %v2125_v4 = vld [vmem:[%s2827_s0 + $0x128] ss:$36 sps:$4 sm:$0xff]  }
  0x18   :  { %1739 = vmatpush3.bf16.msra.mxu0 %v2070_v22  ;;  %v2126_v3 = vld [vmem:[%s2826_s1 + $0x160] sm:$0xff]   ;;  %v2132_v9 = vld [vmem:[%s2827_s0 + $0x174] ss:$36 sps:$4 sm:$0xff]   ;;  %v2136_v10 = vld [vmem:[%s2826_s1 + $0x168] sm:$0xff]  }
  0x19   :  { %1803 = vmatpush3.bf16.msra.mxu1 %v2071_v23  ;;  %1740 = vmatprep.subr.bf16.mxu0 %v2072_v24  ;;  %v2127_v5 = vld [vmem:[%s2826_s1 + $0x1e0] sm:$0xff]   ;;  %v2137_v11 = vld [vmem:[%s2826_s1 + $0x1e8] sm:$0xff]   ;;  %v2135_v15 = vld [vmem:[%s2827_s0 + $0x170] ss:$36 sps:$4 sm:$0xff]  }
  0x1a   :  { %1804 = vmatprep.subr.bf16.mxu1 %v2073_v25  ;;  %v2128_v6 = vld [vmem:[%s2826_s1 + $0x120] sm:$0xff]   ;;  %v2134_v12 = vld [vmem:[%s2827_s0 + $0x168] ss:$36 sps:$4 sm:$0xff]   ;;  %v2140_v16 = vld [vmem:[%s2827_s0 + $0x1b4] ss:$36 sps:$4 sm:$0xff]  }
  0x1b   :  { %v2129_v7 = vld [vmem:[%s2826_s1 + $0x1a0] sm:$0xff]   ;;  %v2138_v13 = vld [vmem:[%s2826_s1 + $0x128] sm:$0xff]   ;;  %v2146_v18 = vld [vmem:[%s2826_s1 + $0x170] sm:$0xff]  }
  0x1c   :  { %1741 = vmatpush3.bf16.msra.mxu0 %v2074_v26  ;;  %v2139_v14 = vld [vmem:[%s2826_s1 + $0x1a8] sm:$0xff]   ;;  %v2142_v17 = vld [vmem:[%s2827_s0 + $0x1bc] ss:$36 sps:$4 sm:$0xff]   ;;  %v2147_v19 = vld [vmem:[%s2826_s1 + $0x1f0] sm:$0xff]  }
  0x1d   :  { %1805 = vmatpush3.bf16.msra.mxu1 %v2075_v27  ;;  %1742 = vmatprep.subr.bf16.mxu0 %v2076_v28  ;;  %v2148_v20 = vld [vmem:[%s2826_s1 + $0x130] sm:$0xff]   ;;  %v2145_v23 = vld [vmem:[%s2827_s0 + $0x1b8] ss:$36 sps:$4 sm:$0xff]   ;;  %v2152_v25 = vld [vmem:[%s2827_s0 + $0x204] ss:$36 sps:$4 sm:$0xff]  }
  0x1e   :  { %1806 = vmatprep.subr.bf16.mxu1 %v2077_v29  ;;  %v2149_v21 = vld [vmem:[%s2826_s1 + $0x1b0] sm:$0xff]   ;;  %v2150_v24 = vld [vmem:[%s2827_s0 + $0x1fc] ss:$36 sps:$4 sm:$0xff]  }
  0x1f   :  { %v2144_v22 = vld [vmem:[%s2827_s0 + $0x1b0] ss:$36 sps:$4 sm:$0xff]   ;;  %v2156_v26 = vld [vmem:[%s2826_s1 + $0x178] sm:$0xff]  }
  0x20   :  { %1743 = vmatpush3.bf16.msra.mxu0 %v2078_v30  ;;  %v2157_v27 = vld [vmem:[%s2826_s1 + $0x1f8] sm:$0xff]   ;;  %v2160_v35 = vld [vmem:[%s2827_s0 + $0x10] ss:$36 sps:$4 sm:$0xff]  }
  0x21   :  { %1807 = vmatpush3.bf16.msra.mxu1 %v2079_v31  ;;  %1856 = vmatprep.subr.bf16.mxu0 %v2086_v36  ;;  %v2158_v28 = vld [vmem:[%s2826_s1 + $0x138] sm:$0xff]   ;;  %v2155_v31 = vld [vmem:[%s2827_s0 + $0x200] ss:$36 sps:$4 sm:$0xff]  }
  0x22   :  { %1920 = vmatprep.subr.bf16.mxu1 %v2087_v37  ;;  %v2159_v29 = vld [vmem:[%s2826_s1 + $0x1b8] sm:$0xff]  }
  0x23   :  { %1079 = vmatmul.mubr.bf16.vlgmr.msra.gmra.mrb[0].mxu0 %v2080_v32  ;;  %v2154_v30 = vld [vmem:[%s2827_s0 + $0x1f8] ss:$36 sps:$4 sm:$0xff]   ;;  %v2166_v32 = vld [vmem:[%s2826_s1 + $0x200] sm:$0xff]  }
  0x24   :  { %1176 = vmatmul.mubr.bf16.vlgmr.msra.gmra.mrb[0].mxu1 %v2083_v34  ;;  %1857 = vmatpush3.bf16.msra.mxu0 %v2088_v38  ;;  %v2162_v33 = vld [vmem:[%s2827_s0 + $0x14] ss:$36 sps:$4 sm:$0xff]   ;;  %v2165_v34 = vld [vmem:[%s2827_s0 + $0x1c] ss:$36 sps:$4 sm:$0xff]   ;;  %v2169_v38 = vld [vmem:[%s2827_s0 + $0x64] ss:$36 sps:$4 sm:$0xff]  }
  0x25   :  { %1921 = vmatpush3.bf16.msra.mxu1 %v2089_v39  ;;  %1086 = vmatprep.mubr.bf16.mxu0 %v2090_v40  ;;  %v2163_v36 = vld [vmem:[%s2827_s0 + $0x18] ss:$36 sps:$4 sm:$0xff]   ;;  %v2173_v39 = vld [vmem:[%s2826_s1 + $0x208] sm:$0xff]   ;;  %v2180_v40 = vld [vmem:[%s2826_s1 + $0x210] sm:$0xff]  }
  0x26   :  { %1183 = vmatprep.mubr.bf16.mxu1 %v2092_v41  ;;  %1858 = vmatprep.subr.bf16.mxu0 %v2096_v44  ;;  %v2167_v37 = vld [vmem:[%s2827_s0 + $0x5c] ss:$36 sps:$4 sm:$0xff]   ;;  %v2176_v44 = vld [vmem:[%s2827_s0 + $0xac] ss:$36 sps:$4 sm:$0xff]  }
  0x27   :  { %1922 = vmatprep.subr.bf16.mxu1 %v2097_v45  ;;  %v2171_v41 = vld [vmem:[%s2827_s0 + $0x58] ss:$36 sps:$4 sm:$0xff]  }
  0x28   :  { %1859 = vmatpush3.bf16.msra.mxu0 %v2098_v46  ;;  %v2187_v45 = vld [vmem:[%s2826_s1 + $0x218] sm:$0xff]   ;;  %v2194_v46 = vld [vmem:[%s2826_s1 + $0x220] sm:$0xff]  }
  0x29   :  { %1923 = vmatpush3.bf16.msra.mxu1 %v2099_v47  ;;  %1860 = vmatprep.subr.bf16.mxu0 %v2106_v52  ;;  %v2178_v47 = vld [vmem:[%s2827_s0 + $0xa0] ss:$36 sps:$4 sm:$0xff]   ;;  %v2185_v52 = vld [vmem:[%s2827_s0 + $0xe8] ss:$36 sps:$4 sm:$0xff]  }
  0x2a   :  { %1924 = vmatprep.subr.bf16.mxu1 %v2107_v53  ;;  %v2208_v53 = vld [vmem:[%s2826_s1 + $0x230] sm:$0xff]  }
  0x2b   :  { %1087 = vmatmul.mubr.bf16.gmra.mrb[4].mxu0 %v2094_v42  ;;  %v2172_v42 = vld [vmem:[%s2827_s0 + $0x60] ss:$36 sps:$4 sm:$0xff]  }
  0x2c   :  { %1184 = vmatmul.mubr.bf16.gmra.mrb[4].mxu1 %v2095_v43  ;;  %1094 = vmatprep.mubr.bf16.mxu0 %v2100_v48  ;;  %v2174_v43 = vld [vmem:[%s2827_s0 + $0xa4] ss:$36 sps:$4 sm:$0xff]  }
  0x2d   :  { %1191 = vmatprep.mubr.bf16.mxu1 %v2102_v49  ;;  %1861 = vmatpush3.bf16.msra.mxu0 %v2108_v54  ;;  %v2179_v48 = vld [vmem:[%s2827_s0 + $0xa8] ss:$36 sps:$4 sm:$0xff]   ;;  %v2186_v54 = vld [vmem:[%s2827_s0 + $0xf0] ss:$36 sps:$4 sm:$0xff]  }
  0x2e   :  { %1925 = vmatpush3.bf16.msra.mxu1 %v2109_v55  ;;  %1862 = vmatprep.subr.bf16.mxu0 %v2116_v60  ;;  %v2181_v49 = vld [vmem:[%s2827_s0 + $0xec] ss:$36 sps:$4 sm:$0xff]   ;;  %v2188_v55 = vld [vmem:[%s2827_s0 + $0x134] ss:$36 sps:$4 sm:$0xff]   ;;  %v2195_v60 = vld [vmem:[%s2827_s0 + $0x17c] ss:$36 sps:$4 sm:$0xff]  }
  0x2f   :  { %1926 = vmatprep.subr.bf16.mxu1 %v2117_v61  ;;  %v2197_v61 = vld [vmem:[%s2827_s0 + $0x184] ss:$36 sps:$4 sm:$0xff]  }
  0x31   :  { %1863 = vmatpush3.bf16.msra.mxu0 %v2118_v62  ;;  %v2199_v62 = vld [vmem:[%s2827_s0 + $0x178] ss:$36 sps:$4 sm:$0xff]  }
  0x32   :  { %1927 = vmatpush3.bf16.msra.mxu1 %v2119_v63  ;;  %1864 = vmatprep.subr.bf16.mxu0 %v2126_v3  ;;  %v2200_v63 = vld [vmem:[%s2827_s0 + $0x180] ss:$36 sps:$4 sm:$0xff]   ;;  %v2207_v3 = vld [vmem:[%s2827_s0 + $0x1c8] ss:$36 sps:$4 sm:$0xff]  }
  0x33   :  { %1095 = vmatmul.mubr.bf16.gmra.mrb[8].mxu0 %v2104_v50  ;;  %1928 = vmatprep.subr.bf16.mxu1 %v2127_v5  ;;  %v2183_v50 = vld [vmem:[%s2827_s0 + $0xf4] ss:$36 sps:$4 sm:$0xff]  }
  0x34   :  { %1192 = vmatmul.mubr.bf16.gmra.mrb[8].mxu1 %v2105_v51  ;;  %1102 = vmatprep.mubr.bf16.mxu0 %v2110_v56  ;;  %v2201_v51 = vld [vmem:[%s2826_s1 + $0x228] sm:$0xff]   ;;  %v2190_v56 = vld [vmem:[%s2827_s0 + $0x13c] ss:$36 sps:$4 sm:$0xff]   ;;  %v2211_v5 = vld [vmem:[%s2827_s0 + $0x214] ss:$36 sps:$4 sm:$0xff]  }
  0x35   :  { %1199 = vmatprep.mubr.bf16.mxu1 %v2112_v57  ;;  %1865 = vmatpush3.bf16.msra.mxu0 %v2128_v6  ;;  %v2215_v57 = vld [vmem:[%s2826_s1 + $0x238] sm:$0xff]   ;;  %v2213_v6 = vld [vmem:[%s2827_s0 + $0x208] ss:$36 sps:$4 sm:$0xff]  }
  0x36   :  { %1929 = vmatpush3.bf16.msra.mxu1 %v2129_v7  ;;  %1866 = vmatprep.subr.bf16.mxu0 %v2136_v10  ;;  %v2214_v7 = vld [vmem:[%s2827_s0 + $0x210] ss:$36 sps:$4 sm:$0xff]   ;;  %v2218_v10 = vld [vmem:[%s2827_s0 + $0x68] ss:$36 sps:$4 sm:$0xff]  }
  0x37   :  { %1930 = vmatprep.subr.bf16.mxu1 %v2137_v11  ;;  %v2219_v11 = vld [vmem:[%s2827_s0 + $0x188] ss:$36 sps:$4 sm:$0xff]  }
  0x39   :  { %1867 = vmatpush3.bf16.msra.mxu0 %v2138_v13  ;;  %v2221_v13 = vld [vmem:[%s2827_s0 + $0x1d0] ss:$36 sps:$4 sm:$0xff]  }
  0x3a   :  { %1931 = vmatpush3.bf16.msra.mxu1 %v2139_v14  ;;  %1868 = vmatprep.subr.bf16.mxu0 %v2146_v18  ;;  %v2222_v14 = vld [vmem:[%s2827_s0 + $0xf8] ss:$36 sps:$4 sm:$0xff]   ;;  %v2679_v18 = vld [vmem:[%s2828_s2] ss:$0 sm:$0xff] }
  0x3b   :  { %1103 = vmatmul.mubr.bf16.gmra.mrb[12].mxu0 %v2114_v58  ;;  %1932 = vmatprep.subr.bf16.mxu1 %v2147_v19  ;;  %v2192_v58 = vld [vmem:[%s2827_s0 + $0x130] ss:$36 sps:$4 sm:$0xff]  }
  0x3c   :  { %1200 = vmatmul.mubr.bf16.gmra.mrb[12].mxu1 %v2115_v59  ;;  %1110 = vmatprep.mubr.bf16.mxu0 %v2120_v0  ;;  %v2193_v59 = vld [vmem:[%s2827_s0 + $0x138] ss:$36 sps:$4 sm:$0xff]   ;;  %v2202_v0 = vld [vmem:[%s2827_s0 + $0x1c4] ss:$36 sps:$4 sm:$0xff]  }
  0x3d   :  { %1207 = vmatprep.mubr.bf16.mxu1 %v2122_v1  ;;  %1869 = vmatpush3.bf16.msra.mxu0 %v2148_v20  ;;  %v2204_v1 = vld [vmem:[%s2827_s0 + $0x1cc] ss:$36 sps:$4 sm:$0xff]  }
  0x3e   :  { %1933 = vmatpush3.bf16.msra.mxu1 %v2149_v21  ;;  %1870 = vmatprep.subr.bf16.mxu0 %v2156_v26 }
  0x3f   :  { %1934 = vmatprep.subr.bf16.mxu1 %v2157_v27 }
  0x41   :  { %1871 = vmatpush3.bf16.msra.mxu0 %v2158_v28 }
  0x42   :  { %1935 = vmatpush3.bf16.msra.mxu1 %v2159_v29  ;;  %2000 = vmatprep.subr.bf16.mxu0 %v2166_v32 }
  0x43   :  { %1111 = vmatmul.mubr.bf16.gmra.mrb[16].mxu0 %v2124_v2  ;;  %2032 = vmatprep.subr.bf16.mxu1 %v2166_v32  ;;  %v2206_v2 = vld [vmem:[%s2827_s0 + $0x1c0] ss:$36 sps:$4 sm:$0xff]  }
  0x44   :  { %1208 = vmatmul.mubr.bf16.gmra.mrb[16].mxu1 %v2125_v4  ;;  %1118 = vmatprep.mubr.bf16.mxu0 %v2130_v8  ;;  %v2209_v4 = vld [vmem:[%s2827_s0 + $0x20c] ss:$36 sps:$4 sm:$0xff]   ;;  %v2216_v8 = vld [vmem:[%s2827_s0 + $0x20] ss:$36 sps:$4 sm:$0xff]  }
  0x45   :  { %1215 = vmatprep.mubr.bf16.mxu1 %v2132_v9  ;;  %v2217_v9 = vld [vmem:[%s2827_s0 + $0x140] ss:$36 sps:$4 sm:$0xff]  }
  0x4b   :  { %1119 = vmatmul.mubr.bf16.gmra.mrb[20].mxu0 %v2134_v12  ;;  %v2220_v12 = vld [vmem:[%s2827_s0 + $0xb0] ss:$36 sps:$4 sm:$0xff]  }
  0x4c   :  { %1216 = vmatmul.mubr.bf16.gmra.mrb[20].mxu1 %v2135_v15  ;;  %1126 = vmatprep.mubr.bf16.mxu0 %v2140_v16  ;;  %v2223_v15 = vld [vmem:[%s2827_s0 + $0x218] ss:$36 sps:$4 sm:$0xff]  }
  0x4d   :  { %1223 = vmatprep.mubr.bf16.mxu1 %v2142_v17 }
  0x53   :  { %1127 = vmatmul.mubr.bf16.gmra.mrb[24].mxu0 %v2144_v22 }
  0x54   :  { %1224 = vmatmul.mubr.bf16.gmra.mrb[24].mxu1 %v2145_v23  ;;  %1134 = vmatprep.mubr.bf16.mxu0 %v2150_v24 }
  0x55   :  { %1231 = vmatprep.mubr.bf16.mxu1 %v2152_v25 }
  0x5b   :  { %1135 = vmatmul.mubr.bf16.gmra.mrb[28].mxu0 %v2154_v30 }
  0x5c   :  { %1232 = vmatmul.mubr.bf16.gmra.mrb[28].mxu1 %v2155_v31  ;;  %1272 = vmatprep.mubr.bf16.mxu0 %v2162_v33 }
  0x5d   :  { %1369 = vmatprep.mubr.bf16.mxu1 %v2165_v34 }
  0x63   :  { %1273 = vmatmul.mubr.bf16.vlgmr.msra.gmra.mrb[32].mxu0 %v2160_v35 }
  0x64   :  { %1370 = vmatmul.mubr.bf16.vlgmr.msra.gmra.mrb[32].mxu1 %v2163_v36  ;;  %2001 = vmatpush3.bf16.msra.mxu0 %v2166_v32 }
  0x65   :  { %2040 = vmatpush3.bf16.msra.mxu1 %v2166_v32  ;;  %1280 = vmatprep.mubr.bf16.mxu0 %v2167_v37 }
  0x66   :  { %1377 = vmatprep.mubr.bf16.mxu1 %v2169_v38  ;;  %2002 = vmatprep.subr.bf16.mxu0 %v2173_v39 }
  0x67   :  { %2033 = vmatprep.subr.bf16.mxu1 %v2173_v39 }
  0x68   :  { %2003 = vmatpush3.bf16.msra.mxu0 %v2173_v39 }
  0x69   :  { %2041 = vmatpush3.bf16.msra.mxu1 %v2173_v39  ;;  %2004 = vmatprep.subr.bf16.mxu0 %v2180_v40 }
  0x6a   :  { %2034 = vmatprep.subr.bf16.mxu1 %v2180_v40 }
  0x6b   :  { %1281 = vmatmul.mubr.bf16.gmra.mrb[36].mxu0 %v2171_v41 }
  0x6c   :  { %1378 = vmatmul.mubr.bf16.gmra.mrb[36].mxu1 %v2172_v42  ;;  %1288 = vmatprep.mubr.bf16.mxu0 %v2174_v43 }
  0x6d   :  { %1385 = vmatprep.mubr.bf16.mxu1 %v2176_v44  ;;  %2005 = vmatpush3.bf16.msra.mxu0 %v2180_v40 }
  0x6e   :  { %2042 = vmatpush3.bf16.msra.mxu1 %v2180_v40  ;;  %2006 = vmatprep.subr.bf16.mxu0 %v2187_v45 }
  0x6f   :  { %2035 = vmatprep.subr.bf16.mxu1 %v2187_v45 }
  0x71   :  { %2007 = vmatpush3.bf16.msra.mxu0 %v2187_v45 }
  0x72   :  { %2043 = vmatpush3.bf16.msra.mxu1 %v2187_v45  ;;  %2008 = vmatprep.subr.bf16.mxu0 %v2194_v46 }
  0x73   :  { %1289 = vmatmul.mubr.bf16.gmra.mrb[40].mxu0 %v2178_v47  ;;  %2036 = vmatprep.subr.bf16.mxu1 %v2194_v46 }
  0x74   :  { %1386 = vmatmul.mubr.bf16.gmra.mrb[40].mxu1 %v2179_v48  ;;  %1296 = vmatprep.mubr.bf16.mxu0 %v2181_v49 }
  0x75   :  { %1393 = vmatprep.mubr.bf16.mxu1 %v2183_v50  ;;  %2009 = vmatpush3.bf16.msra.mxu0 %v2194_v46 }
  0x76   :  { %2044 = vmatpush3.bf16.msra.mxu1 %v2194_v46  ;;  %2010 = vmatprep.subr.bf16.mxu0 %v2201_v51 }
  0x77   :  { %2037 = vmatprep.subr.bf16.mxu1 %v2201_v51 }
  0x79   :  { %2011 = vmatpush3.bf16.msra.mxu0 %v2201_v51 }
  0x7a   :  { %2045 = vmatpush3.bf16.msra.mxu1 %v2201_v51  ;;  %2012 = vmatprep.subr.bf16.mxu0 %v2208_v53 }
  0x7b   :  { %1297 = vmatmul.mubr.bf16.gmra.mrb[44].mxu0 %v2185_v52  ;;  %2038 = vmatprep.subr.bf16.mxu1 %v2208_v53 }
  0x7c   :  { %1394 = vmatmul.mubr.bf16.gmra.mrb[44].mxu1 %v2186_v54  ;;  %1304 = vmatprep.mubr.bf16.mxu0 %v2188_v55 }
  0x7d   :  { %1401 = vmatprep.mubr.bf16.mxu1 %v2190_v56  ;;  %2013 = vmatpush3.bf16.msra.mxu0 %v2208_v53 }
  0x7e   :  { %2046 = vmatpush3.bf16.msra.mxu1 %v2208_v53  ;;  %2014 = vmatprep.subr.bf16.mxu0 %v2215_v57 }
  0x7f   :  { %2039 = vmatprep.subr.bf16.mxu1 %v2215_v57 }
  0x81   :  { %2015 = vmatpush3.bf16.msra.mxu0 %v2215_v57 }
  0x82   :  { %2047 = vmatpush3.bf16.msra.mxu1 %v2215_v57 }
  0x83   :  { %1305 = vmatmul.mubr.bf16.gmra.mrb[48].mxu0 %v2192_v58 }
  0x84   :  { %1402 = vmatmul.mubr.bf16.gmra.mrb[48].mxu1 %v2193_v59  ;;  %1312 = vmatprep.mubr.bf16.mxu0 %v2195_v60 }
  0x85   :  { %1409 = vmatprep.mubr.bf16.mxu1 %v2197_v61 }
  0x8b   :  { %1313 = vmatmul.mubr.bf16.gmra.mrb[52].mxu0 %v2199_v62 }
  0x8c   :  { %1410 = vmatmul.mubr.bf16.gmra.mrb[52].mxu1 %v2200_v63  ;;  %1320 = vmatprep.mubr.bf16.mxu0 %v2202_v0 }
  0x8d   :  { %1417 = vmatprep.mubr.bf16.mxu1 %v2204_v1 }
  0x93   :  { %1321 = vmatmul.mubr.bf16.gmra.mrb[56].mxu0 %v2206_v2 }
  0x94   :  { %1418 = vmatmul.mubr.bf16.gmra.mrb[56].mxu1 %v2207_v3  ;;  %1328 = vmatprep.mubr.bf16.mxu0 %v2209_v4 }
  0x95   :  { %1425 = vmatprep.mubr.bf16.mxu1 %v2211_v5 }
  0x9b   :  { %1329 = vmatmul.mubr.bf16.gmra.mrb[60].mxu0 %v2213_v6 }
  0x9c   :  { %1426 = vmatmul.mubr.bf16.gmra.mrb[60].mxu1 %v2214_v7  ;;  %2016 = vmatprep.mubr.bf16.mxu0 %v2216_v8 }
  0x9d   :  { %2024 = vmatprep.mubr.bf16.mxu1 %v2217_v9 }
  0xa3   :  { %2017 = vmatmul.mubr.bf16.vlgmr.msra.gmra.mrb[64].mxu0 %v2218_v10 }
  0xa4   :  { %2025 = vmatmul.mubr.bf16.vlgmr.msra.gmra.mrb[64].mxu1 %v2219_v11  ;;  %2020 = vmatprep.mubr.bf16.mxu0 %v2220_v12 }
  0xa5   :  { %2028 = vmatprep.mubr.bf16.mxu1 %v2221_v13 }
  0xab   :  { %2021 = vmatmul.mubr.bf16.gmra.mrb[68].mxu0 %v2222_v14 }
  0xac   :  { %2029 = vmatmul.mubr.bf16.gmra.mrb[68].mxu1 %v2223_v15 }
  0xf6   :  { %v1744_v16 = vpop.f32.mrb[0].mxu0 }
  0xf7   :  { %v1808_v17 = vpop.f32.mrb[0].mxu1  ;;  %v1745_v19 = vpop.f32.mrb[1].mxu0 }
  0xf8   :  { %v1746_v20 = vadd.f32 %v1745_v19, %v1744_v16  ;;  %v1809_v21 = vpop.f32.mrb[1].mxu1  ;;  %v1747_v22 = vpop.f32.mrb[2].mxu0 }
  0xf9   :  { %v1810_v23 = vadd.f32 %v1809_v21, %v1808_v17  ;;  %v1811_v24 = vpop.f32.mrb[2].mxu1  ;;  %v1748_v25 = vpop.f32.mrb[3].mxu0 }
  0xfa   :  { %v1081_v26 = vadd.f32 %v1746_v20, %v2679_v18  ;;  %v1749_v27 = vadd.f32 %v1748_v25, %v1747_v22  ;;  %v1812_v28 = vpop.f32.mrb[3].mxu1 }
  0xfb   :  { %v1813_v29 = vadd.f32 %v1812_v28, %v1811_v24 }
  0xfc   :  { %v2682_v30 = vadd.f32 %v1810_v23, %v1081_v26  ;;  %v1084_v31 = vadd.f32 %v1749_v27, %v2679_v18 }
  0xfe   :  { %v2685_v32 = vadd.f32 %v1813_v29, %v1084_v31  ;;  %v1750_v33 = vpop.f32.mrb[4].mxu0 }
  0xff   :  { %v1814_v34 = vpop.f32.mrb[4].mxu1  ;;  %v1751_v35 = vpop.f32.mrb[5].mxu0 }
 0x100   :  { %v1752_v36 = vadd.f32 %v1751_v35, %v1750_v33  ;;  %v1815_v37 = vpop.f32.mrb[5].mxu1  ;;  %v1753_v38 = vpop.f32.mrb[6].mxu0 }
 0x101   :  { %v1816_v39 = vadd.f32 %v1815_v37, %v1814_v34  ;;  %v1817_v40 = vpop.f32.mrb[6].mxu1  ;;  %v1754_v41 = vpop.f32.mrb[7].mxu0 }
 0x102   :  { %v1089_v42 = vadd.f32 %v1752_v36, %v2679_v18  ;;  %v1755_v43 = vadd.f32 %v1754_v41, %v1753_v38  ;;  %v1818_v44 = vpop.f32.mrb[7].mxu1 }
 0x103   :  { %v1819_v45 = vadd.f32 %v1818_v44, %v1817_v40 }
 0x104   :  { %v2688_v46 = vadd.f32 %v1816_v39, %v1089_v42  ;;  %v1092_v47 = vadd.f32 %v1755_v43, %v2679_v18 }
 0x106   :  { %v2691_v48 = vadd.f32 %v1819_v45, %v1092_v47  ;;  %v1756_v49 = vpop.f32.mrb[8].mxu0 }
 0x107   :  { %v1820_v50 = vpop.f32.mrb[8].mxu1  ;;  %v1757_v51 = vpop.f32.mrb[9].mxu0 }
 0x108   :  { %v1758_v52 = vadd.f32 %v1757_v51, %v1756_v49  ;;  %v1821_v53 = vpop.f32.mrb[9].mxu1  ;;  %v1759_v54 = vpop.f32.mrb[10].mxu0 }
 0x109   :  { %v1822_v55 = vadd.f32 %v1821_v53, %v1820_v50  ;;  %v1823_v56 = vpop.f32.mrb[10].mxu1  ;;  %v1760_v57 = vpop.f32.mrb[11].mxu0 }
 0x10a   :  { %v1097_v58 = vadd.f32 %v1758_v52, %v2679_v18  ;;  %v1761_v59 = vadd.f32 %v1760_v57, %v1759_v54  ;;  %v1824_v60 = vpop.f32.mrb[11].mxu1 }
 0x10b   :  { %v1825_v61 = vadd.f32 %v1824_v60, %v1823_v56 }
 0x10c   :  { %v2694_v62 = vadd.f32 %v1822_v55, %v1097_v58  ;;  %v1100_v63 = vadd.f32 %v1761_v59, %v2679_v18 }
 0x10e   :  { %v2697_v0 = vadd.f32 %v1825_v61, %v1100_v63  ;;  %v1762_v1 = vpop.f32.mrb[12].mxu0 }
 0x10f   :  { %v1826_v2 = vpop.f32.mrb[12].mxu1  ;;  %v1763_v3 = vpop.f32.mrb[13].mxu0 }
 0x110   :  { %v1764_v4 = vadd.f32 %v1763_v3, %v1762_v1  ;;  %v1827_v5 = vpop.f32.mrb[13].mxu1  ;;  %v1765_v6 = vpop.f32.mrb[14].mxu0 }
 0x111   :  { %v1828_v7 = vadd.f32 %v1827_v5, %v1826_v2  ;;  %v1829_v8 = vpop.f32.mrb[14].mxu1  ;;  %v1766_v9 = vpop.f32.mrb[15].mxu0 }
 0x112   :  { %v1105_v10 = vadd.f32 %v1764_v4, %v2679_v18  ;;  %v1767_v11 = vadd.f32 %v1766_v9, %v1765_v6  ;;  %v1830_v12 = vpop.f32.mrb[15].mxu1 }
 0x113   :  { %v1831_v13 = vadd.f32 %v1830_v12, %v1829_v8 }
 0x114   :  { %v2700_v14 = vadd.f32 %v1828_v7, %v1105_v10  ;;  %v1108_v15 = vadd.f32 %v1767_v11, %v2679_v18 }
 0x116   :  { %v2703_v16 = vadd.f32 %v1831_v13, %v1108_v15  ;;  %v1768_v17 = vpop.f32.mrb[16].mxu0 }
 0x117   :  { %v1832_v19 = vpop.f32.mrb[16].mxu1  ;;  %v1769_v20 = vpop.f32.mrb[17].mxu0 }
 0x118   :  { %v1770_v21 = vadd.f32 %v1769_v20, %v1768_v17  ;;  %v1833_v22 = vpop.f32.mrb[17].mxu1  ;;  %v1771_v23 = vpop.f32.mrb[18].mxu0 }
 0x119   :  { %v1834_v24 = vadd.f32 %v1833_v22, %v1832_v19  ;;  %v1835_v25 = vpop.f32.mrb[18].mxu1  ;;  %v1772_v26 = vpop.f32.mrb[19].mxu0 }
 0x11a   :  { %v1113_v27 = vadd.f32 %v1770_v21, %v2679_v18  ;;  %v1773_v28 = vadd.f32 %v1772_v26, %v1771_v23  ;;  %v1836_v29 = vpop.f32.mrb[19].mxu1 }
 0x11b   :  { %v1837_v31 = vadd.f32 %v1836_v29, %v1835_v25 }
 0x11c   :  { %v2706_v33 = vadd.f32 %v1834_v24, %v1113_v27  ;;  %v1116_v34 = vadd.f32 %v1773_v28, %v2679_v18 }
 0x11e   :  { %v2709_v35 = vadd.f32 %v1837_v31, %v1116_v34  ;;  %v1774_v36 = vpop.f32.mrb[20].mxu0 }
 0x11f   :  { %v1838_v37 = vpop.f32.mrb[20].mxu1  ;;  %v1775_v38 = vpop.f32.mrb[21].mxu0 }
 0x120   :  { %v1776_v39 = vadd.f32 %v1775_v38, %v1774_v36  ;;  %v1839_v40 = vpop.f32.mrb[21].mxu1  ;;  %v1777_v41 = vpop.f32.mrb[22].mxu0 }
 0x121   :  { %v1840_v42 = vadd.f32 %v1839_v40, %v1838_v37  ;;  %v1841_v43 = vpop.f32.mrb[22].mxu1  ;;  %v1778_v44 = vpop.f32.mrb[23].mxu0 }
 0x122   :  { %v1121_v45 = vadd.f32 %v1776_v39, %v2679_v18  ;;  %v1779_v47 = vadd.f32 %v1778_v44, %v1777_v41  ;;  %v1842_v49 = vpop.f32.mrb[23].mxu1 }
 0x123   :  { %v1843_v50 = vadd.f32 %v1842_v49, %v1841_v43 }
 0x124   :  { %v2712_v51 = vadd.f32 %v1840_v42, %v1121_v45  ;;  %v1124_v52 = vadd.f32 %v1779_v47, %v2679_v18 }
 0x126   :  { %v2715_v53 = vadd.f32 %v1843_v50, %v1124_v52  ;;  %v1780_v54 = vpop.f32.mrb[24].mxu0 }
 0x127   :  { %v1844_v55 = vpop.f32.mrb[24].mxu1  ;;  %v1781_v56 = vpop.f32.mrb[25].mxu0 }
 0x128   :  { %v1782_v57 = vadd.f32 %v1781_v56, %v1780_v54  ;;  %v1845_v58 = vpop.f32.mrb[25].mxu1  ;;  %v1783_v59 = vpop.f32.mrb[26].mxu0 }
 0x129   :  { %v1846_v60 = vadd.f32 %v1845_v58, %v1844_v55  ;;  %v1847_v61 = vpop.f32.mrb[26].mxu1  ;;  %v1784_v63 = vpop.f32.mrb[27].mxu0 }
 0x12a   :  { %v1129_v1 = vadd.f32 %v1782_v57, %v2679_v18  ;;  %v1785_v2 = vadd.f32 %v1784_v63, %v1783_v59  ;;  %v1848_v3 = vpop.f32.mrb[27].mxu1 }
 0x12b   :  { %v1849_v4 = vadd.f32 %v1848_v3, %v1847_v61 }
 0x12c   :  { %v2718_v5 = vadd.f32 %v1846_v60, %v1129_v1  ;;  %v1132_v6 = vadd.f32 %v1785_v2, %v2679_v18 }
 0x12e   :  { %v2721_v7 = vadd.f32 %v1849_v4, %v1132_v6  ;;  %v1786_v8 = vpop.f32.mrb[28].mxu0 }
 0x12f   :  { %v1850_v9 = vpop.f32.mrb[28].mxu1  ;;  %v1787_v10 = vpop.f32.mrb[29].mxu0 }
 0x130   :  { %v1788_v11 = vadd.f32 %v1787_v10, %v1786_v8  ;;  %v1851_v12 = vpop.f32.mrb[29].mxu1  ;;  %v1789_v13 = vpop.f32.mrb[30].mxu0 }
 0x131   :  { %v1852_v15 = vadd.f32 %v1851_v12, %v1850_v9  ;;  %v1853_v17 = vpop.f32.mrb[30].mxu1  ;;  %v1790_v19 = vpop.f32.mrb[31].mxu0 }
 0x132   :  { %v1137_v20 = vadd.f32 %v1788_v11, %v2679_v18  ;;  %v1791_v21 = vadd.f32 %v1790_v19, %v1789_v13  ;;  %v1854_v22 = vpop.f32.mrb[31].mxu1 }
 0x133   :  { %v1855_v23 = vadd.f32 %v1854_v22, %v1853_v17 }
 0x134   :  { %v2724_v24 = vadd.f32 %v1852_v15, %v1137_v20  ;;  %v1140_v25 = vadd.f32 %v1791_v21, %v2679_v18 }
 0x136   :  { %v2727_v26 = vadd.f32 %v1855_v23, %v1140_v25  ;;  %v1872_v27 = vpop.f32.mrb[32].mxu0 }
 0x137   :  { %v1936_v28 = vpop.f32.mrb[32].mxu1  ;;  %v1873_v29 = vpop.f32.mrb[33].mxu0 }
 0x138   :  { %v1874_v31 = vadd.f32 %v1873_v29, %v1872_v27  ;;  %v1937_v34 = vpop.f32.mrb[33].mxu1  ;;  %v1875_v36 = vpop.f32.mrb[34].mxu0 }
 0x139   :  { %v1938_v37 = vadd.f32 %v1937_v34, %v1936_v28  ;;  %v1939_v38 = vpop.f32.mrb[34].mxu1  ;;  %v1876_v39 = vpop.f32.mrb[35].mxu0 }
 0x13a   :  { %v1275_v40 = vadd.f32 %v1874_v31, %v2682_v30  ;;  %v1877_v41 = vadd.f32 %v1876_v39, %v1875_v36  ;;  %v1940_v42 = vpop.f32.mrb[35].mxu1 }
 0x13b   :  { %v1941_v43 = vadd.f32 %v1940_v42, %v1939_v38 }
 0x13c   :  { %v1278_v44 = vadd.f32 %v1877_v41, %v2685_v32  ;;  %v2731_v45 = vadd.f32 %v1938_v37, %v1275_v40 }
 0x13e   :  { %v1878_v18 = vpop.f32.mrb[36].mxu0  ;;  %v2733_v47 = vadd.f32 %v1941_v43, %v1278_v44 }
 0x13f   :  { %v1942_v49 = vpop.f32.mrb[36].mxu1  ;;  %v1879_v50 = vpop.f32.mrb[37].mxu0 }
 0x140   :  { %v1880_v52 = vadd.f32 %v1879_v50, %v1878_v18  ;;  %v1943_v54 = vpop.f32.mrb[37].mxu1  ;;  %v1881_v55 = vpop.f32.mrb[38].mxu0 }
 0x141   :  { %v1944_v56 = vadd.f32 %v1943_v54, %v1942_v49  ;;  %v1945_v57 = vpop.f32.mrb[38].mxu1  ;;  %v1882_v58 = vpop.f32.mrb[39].mxu0 }
 0x142   :  { %v1283_v30 = vadd.f32 %v1880_v52, %v2688_v46  ;;  %v1883_v59 = vadd.f32 %v1882_v58, %v1881_v55  ;;  %v1946_v60 = vpop.f32.mrb[39].mxu1 }
 0x143   :  { %v1947_v61 = vadd.f32 %v1946_v60, %v1945_v57 }
 0x144   :  { %v1286_v32 = vadd.f32 %v1883_v59, %v2691_v48  ;;  %v2737_v63 = vadd.f32 %v1944_v56, %v1283_v30 }
 0x146   :  { %v1884_v1 = vpop.f32.mrb[40].mxu0  ;;  %v2739_v2 = vadd.f32 %v1947_v61, %v1286_v32 }
 0x147   :  { %v1948_v3 = vpop.f32.mrb[40].mxu1  ;;  %v1885_v4 = vpop.f32.mrb[41].mxu0 }
 0x148   :  { %v1886_v6 = vadd.f32 %v1885_v4, %v1884_v1  ;;  %v1949_v8 = vpop.f32.mrb[41].mxu1  ;;  %v1887_v9 = vpop.f32.mrb[42].mxu0 }
 0x149   :  { %v1950_v10 = vadd.f32 %v1949_v8, %v1948_v3  ;;  %v1951_v11 = vpop.f32.mrb[42].mxu1  ;;  %v1888_v12 = vpop.f32.mrb[43].mxu0 }
 0x14a   :  { %v1291_v46 = vadd.f32 %v1886_v6, %v2694_v62  ;;  %v1889_v13 = vadd.f32 %v1888_v12, %v1887_v9  ;;  %v1952_v15 = vpop.f32.mrb[43].mxu1 }
 0x14b   :  { %v1953_v17 = vadd.f32 %v1952_v15, %v1951_v11 }
 0x14c   :  { %v1294_v48 = vadd.f32 %v1889_v13, %v2697_v0  ;;  %v2743_v19 = vadd.f32 %v1950_v10, %v1291_v46 }
 0x14e   :  { %v1890_v20 = vpop.f32.mrb[44].mxu0  ;;  %v2745_v21 = vadd.f32 %v1953_v17, %v1294_v48 }
 0x14f   :  { %v1954_v22 = vpop.f32.mrb[44].mxu1  ;;  %v1891_v23 = vpop.f32.mrb[45].mxu0 }
 0x150   :  { %v1892_v25 = vadd.f32 %v1891_v23, %v1890_v20  ;;  %v1955_v27 = vpop.f32.mrb[45].mxu1  ;;  %v1893_v28 = vpop.f32.mrb[46].mxu0 }
 0x151   :  { %v1956_v29 = vadd.f32 %v1955_v27, %v1954_v22  ;;  %v1957_v31 = vpop.f32.mrb[46].mxu1  ;;  %v1894_v34 = vpop.f32.mrb[47].mxu0 }
 0x152   :  { %v1299_v62 = vadd.f32 %v1892_v25, %v2700_v14  ;;  %v1895_v36 = vadd.f32 %v1894_v34, %v1893_v28  ;;  %v1958_v37 = vpop.f32.mrb[47].mxu1 }
 0x153   :  { %v1959_v38 = vadd.f32 %v1958_v37, %v1957_v31 }
 0x154   :  { %v1302_v0 = vadd.f32 %v1895_v36, %v2703_v16  ;;  %v2749_v39 = vadd.f32 %v1956_v29, %v1299_v62 }
 0x156   :  { %v1896_v40 = vpop.f32.mrb[48].mxu0  ;;  %v2751_v41 = vadd.f32 %v1959_v38, %v1302_v0 }
 0x157   :  { %v1960_v42 = vpop.f32.mrb[48].mxu1  ;;  %v1897_v43 = vpop.f32.mrb[49].mxu0 }
 0x158   :  { %v1898_v44 = vadd.f32 %v1897_v43, %v1896_v40  ;;  %v1961_v18 = vpop.f32.mrb[49].mxu1  ;;  %v1899_v49 = vpop.f32.mrb[50].mxu0 }
 0x159   :  { %v1962_v50 = vadd.f32 %v1961_v18, %v1960_v42  ;;  %v1963_v52 = vpop.f32.mrb[50].mxu1  ;;  %v1900_v54 = vpop.f32.mrb[51].mxu0 }
 0x15a   :  { %v1307_v14 = vadd.f32 %v1898_v44, %v2706_v33  ;;  %v1901_v55 = vadd.f32 %v1900_v54, %v1899_v49  ;;  %v1964_v56 = vpop.f32.mrb[51].mxu1 }
 0x15b   :  { %v1965_v57 = vadd.f32 %v1964_v56, %v1963_v52 }
 0x15c   :  { %v1310_v16 = vadd.f32 %v1901_v55, %v2709_v35  ;;  %v1404_v58 = vadd.f32 %v1962_v50, %v1307_v14 }
 0x15e   :  { %v1902_v30 = vpop.f32.mrb[52].mxu0  ;;  %v2755_v59 = vadd.f32 %v1965_v57, %v1310_v16 }
 0x15f   :  { %v1966_v60 = vpop.f32.mrb[52].mxu1  ;;  %v1903_v61 = vpop.f32.mrb[53].mxu0 }
 0x160   :  { %v1904_v32 = vadd.f32 %v1903_v61, %v1902_v30  ;;  %v1967_v1 = vpop.f32.mrb[53].mxu1  ;;  %v1905_v3 = vpop.f32.mrb[54].mxu0 }
 0x161   :  { %v1968_v4 = vadd.f32 %v1967_v1, %v1966_v60  ;;  %v1969_v6 = vpop.f32.mrb[54].mxu1  ;;  %v1906_v8 = vpop.f32.mrb[55].mxu0 }
 0x162   :  { %v1315_v9 = vadd.f32 %v1904_v32, %v2712_v51  ;;  %v1907_v33 = vadd.f32 %v1906_v8, %v1905_v3  ;;  %v1970_v10 = vpop.f32.mrb[55].mxu1 }
 0x163   :  { %v1971_v11 = vadd.f32 %v1970_v10, %v1969_v6 }
 0x164   :  { %v1318_v12 = vadd.f32 %v1907_v33, %v2715_v53  ;;  %v1412_v35 = vadd.f32 %v1968_v4, %v1315_v9 }
 0x166   :  { %v1908_v46 = vpop.f32.mrb[56].mxu0  ;;  %v1415_v13 = vadd.f32 %v1971_v11, %v1318_v12 }
 0x167   :  { %v1972_v15 = vpop.f32.mrb[56].mxu1  ;;  %v1909_v17 = vpop.f32.mrb[57].mxu0 }
 0x168   :  { %v1910_v48 = vadd.f32 %v1909_v17, %v1908_v46  ;;  %v1973_v20 = vpop.f32.mrb[57].mxu1  ;;  %v1911_v22 = vpop.f32.mrb[58].mxu0 }
 0x169   :  { %v1974_v23 = vadd.f32 %v1973_v20, %v1972_v15  ;;  %v1975_v25 = vpop.f32.mrb[58].mxu1  ;;  %v1912_v27 = vpop.f32.mrb[59].mxu0 }
 0x16a   :  { %v1323_v28 = vadd.f32 %v1910_v48, %v2718_v5  ;;  %v1913_v29 = vadd.f32 %v1912_v27, %v1911_v22  ;;  %v1976_v51 = vpop.f32.mrb[59].mxu1 }
 0x16b   :  { %v1977_v31 = vadd.f32 %v1976_v51, %v1975_v25 }
 0x16c   :  { %v1326_v34 = vadd.f32 %v1913_v29, %v2721_v7  ;;  %v2761_v62 = vadd.f32 %v1974_v23, %v1323_v28 }
 0x16e   :  { %v1914_v53 = vpop.f32.mrb[60].mxu0  ;;  %v2763_v36 = vadd.f32 %v1977_v31, %v1326_v34 }
 0x16f   :  { %v1978_v37 = vpop.f32.mrb[60].mxu1  ;;  %v1915_v38 = vpop.f32.mrb[61].mxu0 }
 0x170   :  { %v1916_v0 = vadd.f32 %v1915_v38, %v1914_v53  ;;  %v1979_v40 = vpop.f32.mrb[61].mxu1  ;;  %v1917_v42 = vpop.f32.mrb[62].mxu0 }
 0x171   :  { %v1980_v43 = vadd.f32 %v1979_v40, %v1978_v37  ;;  %v1981_v44 = vpop.f32.mrb[62].mxu1  ;;  %v1918_v18 = vpop.f32.mrb[63].mxu0 }
 0x172   :  { %v1331_v5 = vadd.f32 %v1916_v0, %v2724_v24  ;;  %v1919_v49 = vadd.f32 %v1918_v18, %v1917_v42  ;;  %v1982_v50 = vpop.f32.mrb[63].mxu1 }
 0x173   :  { %v1983_v52 = vadd.f32 %v1982_v50, %v1981_v44 }
 0x174   :  { %v1334_v7 = vadd.f32 %v1919_v49, %v2727_v26  ;;  %v1428_v54 = vadd.f32 %v1980_v43, %v1331_v5 }
 0x176   :  { %v2018_v14 = vpop.f32.mrb[64].mxu0  ;;  %v1431_v55 = vadd.f32 %v1983_v52, %v1334_v7 }
 0x177   :  { %v1477_v56 = vadd.f32 %v2018_v14, %v2737_v63  ;;  %v2026_v57 = vpop.f32.mrb[64].mxu1  ;;  %v1468_v16 = vpop.f32.mrb[65].mxu0 }
 0x178   :  { %v1509_v30 = vadd.f32 %v2026_v57, %v1412_v35  ;;  %v1469_v60 = vadd.f32 %v1468_v16, %v2731_v45  ;;  %v1500_v61 = vpop.f32.mrb[65].mxu1  ;;  %v2019_v32 = vpop.f32.mrb[66].mxu0 }
 0x179   :  { %v1533_v1 = vmax.f32 %v1477_v56, 0.0  ;;  %v1501_v3 = vadd.f32 %v1500_v61, %v1404_v58  ;;  %v1480_v24 = vadd.f32 %v2019_v32, %v2739_v2  ;;  %v2027_v4 = vpop.f32.mrb[66].mxu1  ;;  %v1471_v6 = vpop.f32.mrb[67].mxu0 }
 0x17a   :  { %v1541_v8 = vmax.f32 %v1509_v30, 0.0  ;;  %v1531_v26 = vmax.f32 %v1469_v60, 0.0  ;;  %v1512_v9 = vadd.f32 %v2027_v4, %v1415_v13  ;;  %v1472_v33 = vadd.f32 %v1471_v6, %v2733_v47  ;;  %v1503_v10 = vpop.f32.mrb[67].mxu1 }
 0x17b   :  { %v1549_v63 = vmin.f32 %v1533_v1, 1.0  ;;  %v1539_v11 = vmax.f32 %v1501_v3, 0.0  ;;  %v1534_v12 = vmax.f32 %v1480_v24, 0.0  ;;  %v1504_v35 = vadd.f32 %v1503_v10, %v2755_v59 }
 0x17c   :  { %v1557_v45 = vmin.f32 %v1541_v8, 1.0  ;;  %v1547_v46 = vmin.f32 %v1531_v26, 1.0  ;;  %v1542_v15 = vmax.f32 %v1512_v9, 0.0  ;;  %v1532_v17 = vmax.f32 %v1472_v33, 0.0 }
 0x17d   :  { %1565 = vst [vmem:[%s2829_s3 + $0x10] sm:$0xff] %v1549_v63  ;;  %v1555_v2 = vmin.f32 %v1539_v11, 1.0  ;;  %v1550_v58 = vmin.f32 %v1534_v12, 1.0  ;;  %v1540_v48 = vmax.f32 %v1504_v35, 0.0 }
 0x17e   :  { %1573 = vst [vmem:[%s2829_s3 + $0x50] sm:$0xff] %v1557_v45  ;;  %1563 = vst [vmem:[%s2829_s3] sm:$0xff] %v1547_v46  ;;  %v1558_v47 = vmin.f32 %v1542_v15, 1.0  ;;  %v1548_v59 = vmin.f32 %v1532_v17, 1.0  ;;  %v2022_v13 = vpop.f32.mrb[68].mxu0 }
 0x17f   :  { %1571 = vst [vmem:[%s2829_s3 + $0x40] sm:$0xff] %v1555_v2  ;;  %1566 = vst [vmem:[%s2829_s3 + $0x18] sm:$0xff] %v1550_v58  ;;  %v1556_v20 = vmin.f32 %v1540_v48, 1.0  ;;  %v1493_v22 = vadd.f32 %v2022_v13, %v2749_v39  ;;  %v2030_v23 = vpop.f32.mrb[68].mxu1  ;;  %v1484_v25 = vpop.f32.mrb[69].mxu0 }
 0x180   :  { %1574 = vst [vmem:[%s2829_s3 + $0x58] sm:$0xff] %v1558_v47  ;;  %1564 = vst [vmem:[%s2829_s3 + $0x8] sm:$0xff] %v1548_v59  ;;  %v1525_v27 = vadd.f32 %v2030_v23, %v1428_v54  ;;  %v1485_v28 = vadd.f32 %v1484_v25, %v2743_v19  ;;  %v1516_v29 = vpop.f32.mrb[69].mxu1  ;;  %v2023_v51 = vpop.f32.mrb[70].mxu0 }
 0x181   :  { %1572 = vst [vmem:[%s2829_s3 + $0x48] sm:$0xff] %v1556_v20  ;;  %v1537_v39 = vmax.f32 %v1493_v22, 0.0  ;;  %v1517_v31 = vadd.f32 %v1516_v29, %v2761_v62  ;;  %v1496_v34 = vadd.f32 %v2023_v51, %v2751_v41  ;;  %v2031_v53 = vpop.f32.mrb[70].mxu1  ;;  %v1487_v37 = vpop.f32.mrb[71].mxu0 }
 0x182   :  { %v1545_v38 = vmax.f32 %v1525_v27, 0.0  ;;  %v1535_v0 = vmax.f32 %v1485_v28, 0.0  ;;  %v1528_v40 = vadd.f32 %v2031_v53, %v1431_v55  ;;  %v1488_v42 = vadd.f32 %v1487_v37, %v2745_v21  ;;  %v1519_v43 = vpop.f32.mrb[71].mxu1 }
 0x183   :  { %v1553_v19 = vmin.f32 %v1537_v39, 1.0  ;;  %v1543_v44 = vmax.f32 %v1517_v31, 0.0  ;;  %v1538_v18 = vmax.f32 %v1496_v34, 0.0  ;;  %v1520_v5 = vadd.f32 %v1519_v43, %v2763_v36 }
 0x184   :  { %v1561_v49 = vmin.f32 %v1545_v38, 1.0  ;;  %v1551_v50 = vmin.f32 %v1535_v0, 1.0  ;;  %v1546_v52 = vmax.f32 %v1528_v40, 0.0  ;;  %v1536_v7 = vmax.f32 %v1488_v42, 0.0 }
 0x185   :  { %1569 = vst [vmem:[%s2829_s3 + $0x30] sm:$0xff] %v1553_v19  ;;  %v1559_v41 = vmin.f32 %v1543_v44, 1.0  ;;  %v1554_v62 = vmin.f32 %v1538_v18, 1.0  ;;  %v1544_v54 = vmax.f32 %v1520_v5, 0.0 }
 0x186   :  { %1577 = vst [vmem:[%s2829_s3 + $0x70] sm:$0xff] %v1561_v49  ;;  %1567 = vst [vmem:[%s2829_s3 + $0x20] sm:$0xff] %v1551_v50  ;;  %v1562_v21 = vmin.f32 %v1546_v52, 1.0  ;;  %v1552_v36 = vmin.f32 %v1536_v7, 1.0 }
 0x187   :  { %1575 = vst [vmem:[%s2829_s3 + $0x60] sm:$0xff] %v1559_v41  ;;  %1570 = vst [vmem:[%s2829_s3 + $0x38] sm:$0xff] %v1554_v62  ;;  %v1560_v14 = vmin.f32 %v1544_v54, 1.0 }
 0x188   :  { %1578 = vst [vmem:[%s2829_s3 + $0x78] sm:$0xff] %v1562_v21  ;;  %1568 = vst [vmem:[%s2829_s3 + $0x28] sm:$0xff] %v1552_v36 }
 0x189   :  { %1576 = vst [vmem:[%s2829_s3 + $0x68] sm:$0xff] %v1560_v14 }

// kernel: a_call__.10
= control target key start
LH: loop header
LB: loop body
LE: loop exit
PB: predicated region body
PF: predicated region fallthrough
CT: control target
= control target key end

     0   :  { %s1607_s1 = inlined_call_operand.vmem [shape: bf16[1152,128], index: 1, kind: input, shape index: {}]   ;;  %s1608_s0 = inlined_call_operand.vmem [shape: bf16[32,1152], index: 0, kind: input, shape index: {}]   ;;  %s1609_s2 = inlined_call_operand.vmem [shape: f32[1,128], index: 2, kind: input, shape index: {}]   ;;  %s1610_s3 = inlined_call_operand.vmem [shape: f32[32,128], index: 3, kind: output, shape index: {}]  }
   0x1   :  { %v1204_v0 = vld [vmem:[%s1607_s1 + $0x40] sm:$0xff]   ;;  %v1208_v4 = vld [vmem:[%s1607_s1 + $0x48] sm:$0xff]   ;;  %v1212_v8 = vld [vmem:[%s1607_s1 + $0x50] sm:$0xff]  }
   0x2   :  { %v1205_v1 = vld [vmem:[%s1607_s1] sm:$0xff]   ;;  %1062 = vmatprep.subr.bf16.mxu0 %v1204_v0  ;;  %v1209_v5 = vld [vmem:[%s1607_s1 + $0x8] sm:$0xff]   ;;  %v1213_v9 = vld [vmem:[%s1607_s1 + $0x10] sm:$0xff]  }
   0x3   :  { %v1206_v2 = vld [vmem:[%s1607_s1 + $0xc0] sm:$0xff]   ;;  %1063 = vmatpush3.bf16.msra.mxu0 %v1205_v1  ;;  %v1210_v6 = vld [vmem:[%s1607_s1 + $0xc8] sm:$0xff]   ;;  %v1214_v10 = vld [vmem:[%s1607_s1 + $0xd0] sm:$0xff]  }
   0x4   :  { %v1207_v3 = vld [vmem:[%s1607_s1 + $0x80] sm:$0xff]   ;;  %1090 = vmatprep.subr.bf16.mxu1 %v1206_v2  ;;  %1064 = vmatprep.subr.bf16.mxu0 %v1208_v4  ;;  %v1211_v7 = vld [vmem:[%s1607_s1 + $0x88] sm:$0xff]   ;;  %v1215_v11 = vld [vmem:[%s1607_s1 + $0x90] sm:$0xff]  }
   0x5   :  { %1091 = vmatpush3.bf16.msra.mxu1 %v1207_v3  ;;  %v1216_v12 = vld [vmem:[%s1607_s1 + $0x58] sm:$0xff]   ;;  %v1220_v16 = vld [vmem:[%s1607_s1 + $0x60] sm:$0xff]   ;;  %v1224_v20 = vld [vmem:[%s1607_s1 + $0x68] sm:$0xff]  }
   0x6   :  { %1092 = vmatprep.subr.bf16.mxu1 %v1210_v6  ;;  %v1217_v13 = vld [vmem:[%s1607_s1 + $0x18] sm:$0xff]   ;;  %v1221_v17 = vld [vmem:[%s1607_s1 + $0x20] sm:$0xff]   ;;  %v1225_v21 = vld [vmem:[%s1607_s1 + $0x28] sm:$0xff]  }
   0x7   :  { %1065 = vmatpush3.bf16.msra.mxu0 %v1209_v5  ;;  %v1218_v14 = vld [vmem:[%s1607_s1 + $0xd8] sm:$0xff]   ;;  %v1222_v18 = vld [vmem:[%s1607_s1 + $0xe0] sm:$0xff]   ;;  %v1226_v22 = vld [vmem:[%s1607_s1 + $0xe8] sm:$0xff]  }
   0x8   :  { %1066 = vmatprep.subr.bf16.mxu0 %v1212_v8  ;;  %v1219_v15 = vld [vmem:[%s1607_s1 + $0x98] sm:$0xff]   ;;  %v1223_v19 = vld [vmem:[%s1607_s1 + $0xa0] sm:$0xff]   ;;  %v1227_v23 = vld [vmem:[%s1607_s1 + $0xa8] sm:$0xff]  }
   0x9   :  { %1093 = vmatpush3.bf16.msra.mxu1 %v1211_v7  ;;  %v1228_v24 = vld [vmem:[%s1607_s1 + $0x70] sm:$0xff]   ;;  %v1232_v28 = vld [vmem:[%s1607_s1 + $0x78] sm:$0xff]   ;;  %v1235_v31 = vld [vmem:[%s1608_s0] ss:$36 sps:$4 sm:$0xff]  }
   0xa   :  { %1094 = vmatprep.subr.bf16.mxu1 %v1214_v10  ;;  %v1229_v25 = vld [vmem:[%s1607_s1 + $0x30] sm:$0xff]   ;;  %v1233_v29 = vld [vmem:[%s1607_s1 + $0x38] sm:$0xff]   ;;  %v1237_v32 = vld [vmem:[%s1608_s0 + $0x4] ss:$36 sps:$4 sm:$0xff]  }
   0xb   :  { %1067 = vmatpush3.bf16.msra.mxu0 %v1213_v9  ;;  %v1230_v26 = vld [vmem:[%s1607_s1 + $0xf0] sm:$0xff]   ;;  %v1234_v30 = vld [vmem:[%s1607_s1 + $0xf8] sm:$0xff]   ;;  %742 = vmatprep.mubr.bf16.mxu0 %v1237_v32  ;;  %v1239_v34 = vld [vmem:[%s1607_s1 + $0x140] sm:$0xff]  }
   0xc   :  { %1068 = vmatprep.subr.bf16.mxu0 %v1216_v12  ;;  %v1231_v27 = vld [vmem:[%s1607_s1 + $0xb0] sm:$0xff]   ;;  %v1238_v33 = vld [vmem:[%s1607_s1 + $0xb8] sm:$0xff]   ;;  %v1240_v35 = vld [vmem:[%s1608_s0 + $0x8] ss:$36 sps:$4 sm:$0xff]  }
   0xd   :  { %1095 = vmatpush3.bf16.msra.mxu1 %v1215_v11  ;;  %v1242_v36 = vld [vmem:[%s1608_s0 + $0xc] ss:$36 sps:$4 sm:$0xff]   ;;  %v1243_v37 = vld [vmem:[%s1607_s1 + $0x100] sm:$0xff]   ;;  %v1254_v48 = vld [vmem:[%s1607_s1 + $0x158] sm:$0xff]  }
   0xe   :  { %1096 = vmatprep.subr.bf16.mxu1 %v1218_v14  ;;  %791 = vmatprep.mubr.bf16.mxu1 %v1242_v36  ;;  %v1244_v38 = vld [vmem:[%s1607_s1 + $0x1c0] sm:$0xff]   ;;  %v1246_v40 = vld [vmem:[%s1607_s1 + $0x148] sm:$0xff]   ;;  %v1250_v44 = vld [vmem:[%s1607_s1 + $0x150] sm:$0xff]  }
   0xf   :  { %1069 = vmatpush3.bf16.msra.mxu0 %v1217_v13  ;;  %v1245_v39 = vld [vmem:[%s1607_s1 + $0x180] sm:$0xff]   ;;  %v1247_v41 = vld [vmem:[%s1607_s1 + $0x108] sm:$0xff]   ;;  %v1251_v45 = vld [vmem:[%s1607_s1 + $0x110] sm:$0xff]  }
  0x10   :  { %1070 = vmatprep.subr.bf16.mxu0 %v1220_v16  ;;  %v1248_v42 = vld [vmem:[%s1607_s1 + $0x1c8] sm:$0xff]   ;;  %v1252_v46 = vld [vmem:[%s1607_s1 + $0x1d0] sm:$0xff]   ;;  %v1255_v49 = vld [vmem:[%s1607_s1 + $0x118] sm:$0xff]  }
  0x11   :  { %1097 = vmatpush3.bf16.msra.mxu1 %v1219_v15  ;;  %v1249_v43 = vld [vmem:[%s1607_s1 + $0x188] sm:$0xff]   ;;  %v1253_v47 = vld [vmem:[%s1607_s1 + $0x190] sm:$0xff]   ;;  %v1256_v50 = vld [vmem:[%s1607_s1 + $0x1d8] sm:$0xff]  }
  0x12   :  { %1098 = vmatprep.subr.bf16.mxu1 %v1222_v18  ;;  %v1257_v51 = vld [vmem:[%s1607_s1 + $0x198] sm:$0xff]   ;;  %v1258_v52 = vld [vmem:[%s1607_s1 + $0x160] sm:$0xff]   ;;  %v1262_v56 = vld [vmem:[%s1607_s1 + $0x168] sm:$0xff]  }
  0x13   :  { %1071 = vmatpush3.bf16.msra.mxu0 %v1221_v17  ;;  %v1259_v53 = vld [vmem:[%s1607_s1 + $0x120] sm:$0xff]   ;;  %v1263_v57 = vld [vmem:[%s1608_s0 + $0x4c] ss:$36 sps:$4 sm:$0xff]   ;;  %v1268_v61 = vld [vmem:[%s1608_s0 + $0x54] ss:$36 sps:$4 sm:$0xff]  }
  0x14   :  { %1072 = vmatprep.subr.bf16.mxu0 %v1224_v20  ;;  %v1260_v54 = vld [vmem:[%s1607_s1 + $0x1e0] sm:$0xff]   ;;  %v1265_v58 = vld [vmem:[%s1607_s1 + $0x128] sm:$0xff]   ;;  %v1271_v63 = vld [vmem:[%s1608_s0 + $0x50] ss:$36 sps:$4 sm:$0xff]  }
  0x15   :  { %1099 = vmatpush3.bf16.msra.mxu1 %v1223_v19  ;;  %v1261_v55 = vld [vmem:[%s1607_s1 + $0x1a0] sm:$0xff]   ;;  %v1266_v59 = vld [vmem:[%s1608_s0 + $0x48] ss:$36 sps:$4 sm:$0xff]   ;;  %v1272_v0 = vld [vmem:[%s1607_s1 + $0x170] sm:$0xff]  }
  0x16   :  { %1100 = vmatprep.subr.bf16.mxu1 %v1226_v22  ;;  %v1267_v60 = vld [vmem:[%s1607_s1 + $0x1e8] sm:$0xff]   ;;  %v1273_v1 = vld [vmem:[%s1607_s1 + $0x130] sm:$0xff]   ;;  %v1276_v4 = vld [vmem:[%s1607_s1 + $0x178] sm:$0xff]  }
  0x17   :  { %1073 = vmatpush3.bf16.msra.mxu0 %v1225_v21  ;;  %v1270_v62 = vld [vmem:[%s1607_s1 + $0x1a8] sm:$0xff]   ;;  %v1274_v2 = vld [vmem:[%s1607_s1 + $0x1f0] sm:$0xff]   ;;  %v1277_v5 = vld [vmem:[%s1607_s1 + $0x138] sm:$0xff]  }
  0x18   :  { %1074 = vmatprep.subr.bf16.mxu0 %v1228_v24  ;;  %v1275_v3 = vld [vmem:[%s1607_s1 + $0x1b0] sm:$0xff]   ;;  %v1278_v6 = vld [vmem:[%s1607_s1 + $0x1f8] sm:$0xff]   ;;  %v1283_v10 = vld [vmem:[%s1607_s1 + $0x200] sm:$0xff]  }
  0x19   :  { %1101 = vmatpush3.bf16.msra.mxu1 %v1227_v23  ;;  %v1279_v7 = vld [vmem:[%s1608_s0 + $0x10] ss:$36 sps:$4 sm:$0xff]   ;;  %v1282_v9 = vld [vmem:[%s1607_s1 + $0x1b8] sm:$0xff]   ;;  %v1287_v13 = vld [vmem:[%s1607_s1 + $0x208] sm:$0xff]  }
  0x1a   :  { %1102 = vmatprep.subr.bf16.mxu1 %v1230_v26  ;;  %v1281_v8 = vld [vmem:[%s1608_s0 + $0x14] ss:$36 sps:$4 sm:$0xff]   ;;  %v1286_v12 = vld [vmem:[%s1608_s0 + $0x1c] ss:$36 sps:$4 sm:$0xff]   ;;  %v1292_v17 = vld [vmem:[%s1608_s0 + $0x64] ss:$36 sps:$4 sm:$0xff]  }
  0x1b   :  { %1075 = vmatpush3.bf16.msra.mxu0 %v1229_v25  ;;  %v1284_v11 = vld [vmem:[%s1608_s0 + $0x18] ss:$36 sps:$4 sm:$0xff]   ;;  %v1291_v16 = vld [vmem:[%s1607_s1 + $0x210] sm:$0xff]   ;;  %v1294_v18 = vld [vmem:[%s1608_s0 + $0x60] ss:$36 sps:$4 sm:$0xff]  }
  0x1c   :  { %1076 = vmatprep.subr.bf16.mxu0 %v1232_v28  ;;  %v1288_v14 = vld [vmem:[%s1608_s0 + $0x5c] ss:$36 sps:$4 sm:$0xff]   ;;  %v1297_v22 = vld [vmem:[%s1607_s1 + $0x228] sm:$0xff]   ;;  %v1298_v23 = vld [vmem:[%s1607_s1 + $0x230] sm:$0xff]  }
  0x1d   :  { %1103 = vmatpush3.bf16.msra.mxu1 %v1231_v27  ;;  %v1290_v15 = vld [vmem:[%s1608_s0 + $0x58] ss:$36 sps:$4 sm:$0xff]   ;;  %v1296_v20 = vld [vmem:[%s1607_s1 + $0x220] sm:$0xff]   ;;  %v1301_v25 = vld [vmem:[%s1608_s0 + $0x68] ss:$36 sps:$4 sm:$0xff]  }
  0x1e   :  { %1104 = vmatprep.subr.bf16.mxu1 %v1234_v30  ;;  %v1295_v19 = vld [vmem:[%s1607_s1 + $0x218] sm:$0xff]   ;;  %v1300_v21 = vld [vmem:[%s1608_s0 + $0x20] ss:$36 sps:$4 sm:$0xff]  }
  0x1f   :  { %1077 = vmatpush3.bf16.msra.mxu0 %v1233_v29  ;;  %v1299_v24 = vld [vmem:[%s1607_s1 + $0x238] sm:$0xff]   ;;  %v971_v27 = vld [vmem:[%s1609_s2] ss:$0 sm:$0xff] }
  0x20   :  { %1118 = vmatprep.subr.bf16.mxu0 %v1239_v34 }
  0x21   :  { %1105 = vmatpush3.bf16.msra.mxu1 %v1238_v33 }
  0x22   :  { %743 = vmatmul.mubr.bf16.vlgmr.msra.gmra.mrb[0].mxu0 %v1235_v31  ;;  %1146 = vmatprep.subr.bf16.mxu1 %v1244_v38 }
  0x23   :  { %1119 = vmatpush3.bf16.msra.mxu0 %v1243_v37  ;;  %750 = vmatprep.mubr.bf16.mxu0 %v1263_v57 }
  0x24   :  { %792 = vmatmul.mubr.bf16.vlgmr.msra.gmra.mrb[0].mxu1 %v1240_v35  ;;  %1120 = vmatprep.subr.bf16.mxu0 %v1246_v40 }
  0x25   :  { %1147 = vmatpush3.bf16.msra.mxu1 %v1245_v39  ;;  %799 = vmatprep.mubr.bf16.mxu1 %v1268_v61 }
  0x26   :  { %1148 = vmatprep.subr.bf16.mxu1 %v1248_v42 }
  0x27   :  { %1121 = vmatpush3.bf16.msra.mxu0 %v1247_v41 }
  0x28   :  { %1122 = vmatprep.subr.bf16.mxu0 %v1250_v44 }
  0x29   :  { %1149 = vmatpush3.bf16.msra.mxu1 %v1249_v43 }
  0x2a   :  { %1150 = vmatprep.subr.bf16.mxu1 %v1252_v46  ;;  %751 = vmatmul.mubr.bf16.gmra.mrb[4].mxu0 %v1266_v59 }
  0x2b   :  { %1123 = vmatpush3.bf16.msra.mxu0 %v1251_v45  ;;  %840 = vmatprep.mubr.bf16.mxu0 %v1281_v8 }
  0x2c   :  { %1124 = vmatprep.subr.bf16.mxu0 %v1254_v48  ;;  %800 = vmatmul.mubr.bf16.gmra.mrb[4].mxu1 %v1271_v63 }
  0x2d   :  { %1151 = vmatpush3.bf16.msra.mxu1 %v1253_v47  ;;  %889 = vmatprep.mubr.bf16.mxu1 %v1286_v12 }
  0x2e   :  { %1152 = vmatprep.subr.bf16.mxu1 %v1256_v50 }
  0x2f   :  { %1125 = vmatpush3.bf16.msra.mxu0 %v1255_v49 }
  0x30   :  { %1126 = vmatprep.subr.bf16.mxu0 %v1258_v52 }
  0x31   :  { %1153 = vmatpush3.bf16.msra.mxu1 %v1257_v51 }
  0x32   :  { %1154 = vmatprep.subr.bf16.mxu1 %v1260_v54 }
  0x33   :  { %1127 = vmatpush3.bf16.msra.mxu0 %v1259_v53 }
  0x34   :  { %1128 = vmatprep.subr.bf16.mxu0 %v1262_v56 }
  0x35   :  { %1155 = vmatpush3.bf16.msra.mxu1 %v1261_v55 }
  0x36   :  { %1156 = vmatprep.subr.bf16.mxu1 %v1267_v60 }
  0x37   :  { %1129 = vmatpush3.bf16.msra.mxu0 %v1265_v58 }
  0x38   :  { %1130 = vmatprep.subr.bf16.mxu0 %v1272_v0 }
  0x39   :  { %1157 = vmatpush3.bf16.msra.mxu1 %v1270_v62 }
  0x3a   :  { %1158 = vmatprep.subr.bf16.mxu1 %v1274_v2 }
  0x3b   :  { %1131 = vmatpush3.bf16.msra.mxu0 %v1273_v1 }
  0x3c   :  { %1132 = vmatprep.subr.bf16.mxu0 %v1276_v4 }
  0x3d   :  { %1159 = vmatpush3.bf16.msra.mxu1 %v1275_v3 }
  0x3e   :  { %1160 = vmatprep.subr.bf16.mxu1 %v1278_v6 }
  0x3f   :  { %1133 = vmatpush3.bf16.msra.mxu0 %v1277_v5 }
  0x40   :  { %1184 = vmatprep.subr.bf16.mxu0 %v1283_v10 }
  0x41   :  { %1161 = vmatpush3.bf16.msra.mxu1 %v1282_v9 }
  0x42   :  { %841 = vmatmul.mubr.bf16.vlgmr.msra.gmra.mrb[8].mxu0 %v1279_v7 }
  0x43   :  { %1185 = vmatpush3.bf16.msra.mxu0 %v1283_v10  ;;  %848 = vmatprep.mubr.bf16.mxu0 %v1288_v14 }
  0x44   :  { %890 = vmatmul.mubr.bf16.vlgmr.msra.gmra.mrb[8].mxu1 %v1284_v11  ;;  %1186 = vmatprep.subr.bf16.mxu0 %v1287_v13 }
  0x45   :  { %897 = vmatprep.mubr.bf16.mxu1 %v1292_v17 }
  0x47   :  { %1187 = vmatpush3.bf16.msra.mxu0 %v1287_v13 }
  0x48   :  { %1188 = vmatprep.subr.bf16.mxu0 %v1291_v16 }
  0x4a   :  { %849 = vmatmul.mubr.bf16.gmra.mrb[12].mxu0 %v1290_v15 }
  0x4b   :  { %1189 = vmatpush3.bf16.msra.mxu0 %v1291_v16  ;;  %1200 = vmatprep.mubr.bf16.mxu0 %v1300_v21 }
  0x4c   :  { %898 = vmatmul.mubr.bf16.gmra.mrb[12].mxu1 %v1294_v18  ;;  %1190 = vmatprep.subr.bf16.mxu0 %v1295_v19 }
  0x4f   :  { %1191 = vmatpush3.bf16.msra.mxu0 %v1295_v19 }
  0x50   :  { %1192 = vmatprep.subr.bf16.mxu0 %v1296_v20 }
  0x53   :  { %1193 = vmatpush3.bf16.msra.mxu0 %v1296_v20 }
  0x54   :  { %1194 = vmatprep.subr.bf16.mxu0 %v1297_v22 }
  0x57   :  { %1195 = vmatpush3.bf16.msra.mxu0 %v1297_v22 }
  0x58   :  { %1196 = vmatprep.subr.bf16.mxu0 %v1298_v23 }
  0x5b   :  { %1197 = vmatpush3.bf16.msra.mxu0 %v1298_v23 }
  0x5c   :  { %1198 = vmatprep.subr.bf16.mxu0 %v1299_v24 }
  0x5f   :  { %1199 = vmatpush3.bf16.msra.mxu0 %v1299_v24 }
  0x62   :  { %1201 = vmatmul.mubr.bf16.vlgmr.msra.gmra.mrb[16].mxu0 %v1301_v25 }
  0xf5   :  { %v1078_v26 = vpop.f32.mrb[0].mxu0 }
  0xf6   :  { %v1079_v28 = vpop.f32.mrb[1].mxu0 }
  0xf7   :  { %v1080_v29 = vadd.f32 %v1079_v28, %v1078_v26  ;;  %v1081_v30 = vpop.f32.mrb[2].mxu0  ;;  %v1106_v31 = vpop.f32.mrb[0].mxu1 }
  0xf8   :  { %v1082_v32 = vpop.f32.mrb[3].mxu0  ;;  %v1107_v35 = vpop.f32.mrb[1].mxu1 }
  0xf9   :  { %v745_v33 = vadd.f32 %v1080_v29, %v971_v27  ;;  %v1083_v34 = vadd.f32 %v1082_v32, %v1081_v30  ;;  %v1108_v36 = vadd.f32 %v1107_v35, %v1106_v31  ;;  %v1109_v37 = vpop.f32.mrb[2].mxu1 }
  0xfa   :  { %v1110_v39 = vpop.f32.mrb[3].mxu1 }
  0xfb   :  { %v748_v38 = vadd.f32 %v1083_v34, %v971_v27  ;;  %v794_v40 = vadd.f32 %v1108_v36, %v745_v33  ;;  %v1111_v41 = vadd.f32 %v1110_v39, %v1109_v37 }
  0xfd   :  { %v797_v42 = vadd.f32 %v1111_v41, %v748_v38  ;;  %v1084_v43 = vpop.f32.mrb[4].mxu0 }
  0xfe   :  { %v1085_v44 = vpop.f32.mrb[5].mxu0 }
  0xff   :  { %v1086_v45 = vadd.f32 %v1085_v44, %v1084_v43  ;;  %v1087_v46 = vpop.f32.mrb[6].mxu0  ;;  %v1112_v47 = vpop.f32.mrb[4].mxu1 }
 0x100   :  { %v1088_v48 = vpop.f32.mrb[7].mxu0  ;;  %v1113_v51 = vpop.f32.mrb[5].mxu1 }
 0x101   :  { %v753_v49 = vadd.f32 %v1086_v45, %v971_v27  ;;  %v1089_v50 = vadd.f32 %v1088_v48, %v1087_v46  ;;  %v1114_v52 = vadd.f32 %v1113_v51, %v1112_v47  ;;  %v1115_v53 = vpop.f32.mrb[6].mxu1 }
 0x102   :  { %v1116_v55 = vpop.f32.mrb[7].mxu1 }
 0x103   :  { %v756_v54 = vadd.f32 %v1089_v50, %v971_v27  ;;  %v802_v56 = vadd.f32 %v1114_v52, %v753_v49  ;;  %v1117_v57 = vadd.f32 %v1116_v55, %v1115_v53 }
 0x105   :  { %v805_v58 = vadd.f32 %v1117_v57, %v756_v54 }
 0x115   :  { %v1134_v59 = vpop.f32.mrb[8].mxu0 }
 0x116   :  { %v1135_v60 = vpop.f32.mrb[9].mxu0 }
 0x117   :  { %v1136_v61 = vadd.f32 %v1135_v60, %v1134_v59  ;;  %v1137_v62 = vpop.f32.mrb[10].mxu0  ;;  %v1162_v63 = vpop.f32.mrb[8].mxu1 }
 0x118   :  { %v1138_v0 = vpop.f32.mrb[11].mxu0  ;;  %v1163_v3 = vpop.f32.mrb[9].mxu1 }
 0x119   :  { %v843_v1 = vadd.f32 %v1136_v61, %v794_v40  ;;  %v1139_v2 = vadd.f32 %v1138_v0, %v1137_v62  ;;  %v1164_v4 = vadd.f32 %v1163_v3, %v1162_v63  ;;  %v1165_v5 = vpop.f32.mrb[10].mxu1 }
 0x11a   :  { %v1166_v7 = vpop.f32.mrb[11].mxu1 }
 0x11b   :  { %v846_v6 = vadd.f32 %v1139_v2, %v797_v42  ;;  %v1167_v8 = vadd.f32 %v1166_v7, %v1165_v5  ;;  %v892_v9 = vadd.f32 %v1164_v4, %v843_v1 }
 0x11d   :  { %v1140_v10 = vpop.f32.mrb[12].mxu0  ;;  %v895_v12 = vadd.f32 %v1167_v8, %v846_v6 }
 0x11e   :  { %v1141_v11 = vpop.f32.mrb[13].mxu0 }
 0x11f   :  { %v1142_v13 = vadd.f32 %v1141_v11, %v1140_v10  ;;  %v1143_v14 = vpop.f32.mrb[14].mxu0  ;;  %v1168_v15 = vpop.f32.mrb[12].mxu1 }
 0x120   :  { %v1144_v16 = vpop.f32.mrb[15].mxu0  ;;  %v1169_v19 = vpop.f32.mrb[13].mxu1 }
 0x121   :  { %v851_v17 = vadd.f32 %v1142_v13, %v802_v56  ;;  %v1145_v18 = vadd.f32 %v1144_v16, %v1143_v14  ;;  %v1170_v20 = vadd.f32 %v1169_v19, %v1168_v15  ;;  %v1171_v21 = vpop.f32.mrb[14].mxu1 }
 0x122   :  { %v1172_v23 = vpop.f32.mrb[15].mxu1 }
 0x123   :  { %v854_v22 = vadd.f32 %v1145_v18, %v805_v58  ;;  %v1173_v24 = vadd.f32 %v1172_v23, %v1171_v21  ;;  %v900_v25 = vadd.f32 %v1170_v20, %v851_v17 }
 0x125   :  { %v903_v26 = vadd.f32 %v1173_v24, %v854_v22 }
 0x135   :  { %v1202_v27 = vpop.f32.mrb[16].mxu0 }
 0x136   :  { %v949_v28 = vadd.f32 %v1202_v27, %v900_v25  ;;  %v940_v29 = vpop.f32.mrb[17].mxu0 }
 0x137   :  { %v941_v30 = vadd.f32 %v940_v29, %v892_v9  ;;  %v1203_v31 = vpop.f32.mrb[18].mxu0 }
 0x138   :  { %v957_v32 = vmax.f32 %v949_v28, 0.0  ;;  %v952_v33 = vadd.f32 %v1203_v31, %v903_v26  ;;  %v943_v34 = vpop.f32.mrb[19].mxu0 }
 0x139   :  { %v955_v35 = vmax.f32 %v941_v30, 0.0  ;;  %v944_v36 = vadd.f32 %v943_v34, %v895_v12 }
 0x13a   :  { %v961_v37 = vmin.f32 %v957_v32, 1.0  ;;  %v958_v38 = vmax.f32 %v952_v33, 0.0 }
 0x13b   :  { %v959_v39 = vmin.f32 %v955_v35, 1.0  ;;  %v956_v40 = vmax.f32 %v944_v36, 0.0 }
 0x13c   :  { %965 = vst [vmem:[%s1610_s3 + $0x10] sm:$0xff] %v961_v37  ;;  %v962_v41 = vmin.f32 %v958_v38, 1.0 }
 0x13d   :  { %963 = vst [vmem:[%s1610_s3] sm:$0xff] %v959_v39  ;;  %v960_v42 = vmin.f32 %v956_v40, 1.0 }
 0x13e   :  { %966 = vst [vmem:[%s1610_s3 + $0x18] sm:$0xff] %v962_v41 }
 0x13f   :  { %964 = vst [vmem:[%s1610_s3 + $0x8] sm:$0xff] %v960_v42 }

// kernel: a_call__.11
= control target key start
LH: loop header
LB: loop body
LE: loop exit
PB: predicated region body
PF: predicated region fallthrough
CT: control target
= control target key end

     0   :  { %s339_s1 = inlined_call_operand.vmem [shape: bf16[256,128], index: 1, kind: input, shape index: {}]   ;;  %s340_s0 = inlined_call_operand.vmem [shape: bf16[8,256], index: 0, kind: input, shape index: {}]   ;;  %s341_s2 = inlined_call_operand.vmem [shape: f32[1,128], index: 2, kind: input, shape index: {}]   ;;  %s342_s3 = inlined_call_operand.vmem [shape: f32[8,128], index: 3, kind: output, shape index: {}]  }
   0x1   :  { %v244_v0 = vld [vmem:[%s339_s1 + $0x40] sm:$0xff]   ;;  %v246_v2 = vld [vmem:[%s339_s1 + $0x48] sm:$0xff]   ;;  %v248_v4 = vld [vmem:[%s339_s1 + $0x50] sm:$0xff]  }
   0x2   :  { %v245_v1 = vld [vmem:[%s339_s1] sm:$0xff]   ;;  %222 = vmatprep.subr.bf16.mxu0 %v244_v0  ;;  %v247_v3 = vld [vmem:[%s339_s1 + $0x8] sm:$0xff]   ;;  %v249_v5 = vld [vmem:[%s339_s1 + $0x10] sm:$0xff]  }
   0x3   :  { %223 = vmatpush3.bf16.msra.mxu0 %v245_v1  ;;  %v250_v6 = vld [vmem:[%s339_s1 + $0x58] sm:$0xff]   ;;  %v252_v8 = vld [vmem:[%s339_s1 + $0x60] sm:$0xff]   ;;  %v254_v10 = vld [vmem:[%s339_s1 + $0x68] sm:$0xff]  }
   0x4   :  { %224 = vmatprep.subr.bf16.mxu0 %v246_v2  ;;  %v251_v7 = vld [vmem:[%s339_s1 + $0x18] sm:$0xff]   ;;  %v253_v9 = vld [vmem:[%s339_s1 + $0x20] sm:$0xff]   ;;  %v255_v13 = vld [vmem:[%s339_s1 + $0x28] sm:$0xff]  }
   0x5   :  { %v15_v11 = vld [vmem:[%s340_s0] sm:$0xff]  ;;  %v256_v14 = vld [vmem:[%s339_s1 + $0x70] sm:$0xff]   ;;  %v258_v16 = vld [vmem:[%s339_s1 + $0x78] sm:$0xff]  }
   0x6   :  { %v205_v12 = vcombine.high %v15_v11, %v15_v11  ;;  %v257_v15 = vld [vmem:[%s339_s1 + $0x30] sm:$0xff]   ;;  %v259_v17 = vld [vmem:[%s339_s1 + $0x38] sm:$0xff]   ;;  %v204_v18 = vcombine.low %v15_v11, %v15_v11  ;;  %v203_v20 = vld [vmem:[%s341_s2] ss:$0 sm:$0xff] }
   0x7   :  { %225 = vmatpush3.bf16.msra.mxu0 %v247_v3 }
   0x8   :  { %226 = vmatprep.subr.bf16.mxu0 %v248_v4  ;;  %190 = vmatprep.mubr.bf16.mxu0 %v205_v12 }
   0xb   :  { %227 = vmatpush3.bf16.msra.mxu0 %v249_v5 }
   0xc   :  { %228 = vmatprep.subr.bf16.mxu0 %v250_v6 }
   0xf   :  { %229 = vmatpush3.bf16.msra.mxu0 %v251_v7 }
  0x10   :  { %230 = vmatprep.subr.bf16.mxu0 %v252_v8 }
  0x13   :  { %231 = vmatpush3.bf16.msra.mxu0 %v253_v9 }
  0x14   :  { %232 = vmatprep.subr.bf16.mxu0 %v254_v10 }
  0x17   :  { %233 = vmatpush3.bf16.msra.mxu0 %v255_v13 }
  0x18   :  { %234 = vmatprep.subr.bf16.mxu0 %v256_v14 }
  0x1b   :  { %235 = vmatpush3.bf16.msra.mxu0 %v257_v15 }
  0x1c   :  { %236 = vmatprep.subr.bf16.mxu0 %v258_v16 }
  0x1f   :  { %237 = vmatpush3.bf16.msra.mxu0 %v259_v17 }
  0x22   :  { %191 = vmatmul.mubr.bf16.vlgmr.msra.gmra.mrb[0].mxu0 %v204_v18 }
  0xf5   :  { %v238_v19 = vpop.f32.mrb[0].mxu0 }
  0xf6   :  { %v239_v21 = vpop.f32.mrb[1].mxu0 }
  0xf7   :  { %v240_v22 = vadd.f32 %v239_v21, %v238_v19  ;;  %v241_v23 = vpop.f32.mrb[2].mxu0 }
  0xf8   :  { %v242_v24 = vpop.f32.mrb[3].mxu0 }
  0xf9   :  { %v193_v25 = vadd.f32 %v240_v22, %v203_v20 }
  0xfb   :  { %198 = vst [vmem:[%s342_s3] sm:$0xff] %v193_v25 }

</bundles_post_ra>
